<compile_context>
chip_gen: v6e
topology: v6e:2x2x1
jax: 0.10.0
libtpu: 0.0.40
codegen_flags: <defaults>
</compile_context>

<pallas_src>
import jax
import jax.numpy as jnp
from jax import lax
from jax.experimental import pallas as pl
from jax.experimental.pallas import tpu as pltpu


# ---------------------------------------------------------------------------
# Kernel 1: cv1 = 1x1 conv (MXU, BN scale folded into weights) + bias + SiLU
# ---------------------------------------------------------------------------
def _conv_bn_silu_kernel(x_ref, w_ref, b_ref, o_ref):
    # x_ref: (TILE_P, Cin) f32, w_ref: (Cin, Cout) bf16, b_ref: (1, Cout) f32
    x = x_ref[...].astype(jnp.bfloat16)
    y = jnp.dot(x, w_ref[...], preferred_element_type=jnp.float32)
    y = y + b_ref[...]
    o_ref[...] = (y * jax.nn.sigmoid(y)).astype(o_ref.dtype)   # SiLU


def conv_bn_silu(x2d, w_bf16, bias, *, tile_p=512):
    p, cin = x2d.shape
    cout = w_bf16.shape[1]
    grid_p = pl.cdiv(p, tile_p)
    p_pad = grid_p * tile_p
    if p_pad != p:  # ragged P: zero-pad the tail (sliced off afterwards)
        x2d = jnp.pad(x2d, ((0, p_pad - p), (0, 0)))
    out = pl.pallas_call(
        _conv_bn_silu_kernel,
        out_shape=jax.ShapeDtypeStruct((p_pad, cout), jnp.float32),
        grid_spec=pltpu.PrefetchScalarGridSpec(
            num_scalar_prefetch=0,
            grid=(grid_p,),
            in_specs=[
                pl.BlockSpec((tile_p, cin), lambda i: (i, 0)),
                pl.BlockSpec((cin, cout), lambda i: (0, 0)),
                pl.BlockSpec((1, cout), lambda i: (0, 0)),
            ],
            out_specs=pl.BlockSpec((tile_p, cout), lambda i: (i, 0)),
        ),
        compiler_params=pltpu.CompilerParams(
            dimension_semantics=("parallel",)),
    )(x2d, w_bf16, bias)
    return out if p_pad == p else out[:p]


# ---------------------------------------------------------------------------
# Kernel 2: fused SPP max pools (SPPF cascade, shift-max) + cv2 (K-split) +
#           bias + SiLU, NHWC with channels on the lane axis.
# ---------------------------------------------------------------------------
def _maxpool_same_1d(x, k, axis):
    """Stride-1 'same' max over an odd window k along `axis`, -inf padding."""
    r = k // 2
    n = x.shape[axis]
    pad_shape = list(x.shape)
    pad_shape[axis] = r
    ninf = jnp.full(pad_shape, -jnp.inf, dtype=x.dtype)
    xp = lax.concatenate([ninf, x, ninf], axis)              # length n + 2r
    out = lax.slice_in_dim(xp, 0, n, axis=axis)
    for s in range(1, k):                                    # k shifted slices
        out = jnp.maximum(out, lax.slice_in_dim(xp, s, s + n, axis=axis))
    return out


def _maxpool5_2d(x):
    # x: (H, W, C); separable 5x5 stride-1 'same' max pool (H axis then W axis).
    return _maxpool_same_1d(_maxpool_same_1d(x, 5, axis=0), 5, axis=1)


def _spp_pool_cv2_kernel(y_ref, w_ref, b_ref, o_ref):
    # y_ref: (1, H, W, C_) f32   (channels on lanes)
    # w_ref: (4, C_, C2)   bf16  (cv2 weights, BN scale folded, K-split blocks)
    # b_ref: (1, C2)       f32
    # o_ref: (1, H*W, C2)  f32
    y = y_ref[0]                                   # (H, W, C_)
    p5 = _maxpool5_2d(y)                           # SPPF cascade:
    p9 = _maxpool5_2d(p5)                          #   pool5(pool5)  == pool9
    p13 = _maxpool5_2d(p9)                         #   pool5(pool9)  == pool13
    hh, ww, cc = y.shape

    def mm(a, j):
        a2 = a.reshape(hh * ww, cc).astype(jnp.bfloat16)
        return jnp.dot(a2, w_ref[j], preferred_element_type=jnp.float32)

    acc = mm(y, 0) + mm(p5, 1) + mm(p9, 2) + mm(p13, 3)   # concat folded as K-split
    acc = acc + b_ref[...]
    o_ref[0] = (acc * jax.nn.sigmoid(acc)).astype(o_ref.dtype)   # SiLU


def spp_pool_cv2(y4d, w2_blocks_bf16, bias2):
    n, h, w, c_ = y4d.shape
    c2 = w2_blocks_bf16.shape[-1]
    return pl.pallas_call(
        _spp_pool_cv2_kernel,
        out_shape=jax.ShapeDtypeStruct((n, h * w, c2), jnp.float32),
        grid_spec=pltpu.PrefetchScalarGridSpec(
            num_scalar_prefetch=0,
            grid=(n,),
            in_specs=[
                pl.BlockSpec((1, h, w, c_), lambda i: (i, 0, 0, 0)),
                pl.BlockSpec((4, c_, c2), lambda i: (0, 0, 0)),
                pl.BlockSpec((1, c2), lambda i: (0, 0)),
            ],
            out_specs=pl.BlockSpec((1, h * w, c2), lambda i: (i, 0, 0)),
        ),
        compiler_params=pltpu.CompilerParams(
            dimension_semantics=("parallel",)),
    )(y4d, w2_blocks_bf16, bias2)


# ---------------------------------------------------------------------------
# SPP forward (glue: BN folding, layout plumbing)
# ---------------------------------------------------------------------------
def spp_forward(x, params):
    n, c1, h, w = x.shape
    c_ = params["w1"].shape[1]
    c2 = params["w2"].shape[1]

    # Fold eval-mode BN scale into the conv weights; store weights bf16 for the
    # MXU (activation tiles are cast in-kernel).
    w1f = (params["w1"] * params["s1"]).astype(jnp.bfloat16)        # (C1, C_)
    w2f = (params["w2"] * params["s2"]).astype(jnp.bfloat16)        # (4*C_, C2)
    w2_blocks = w2f.reshape(4, c_, c2)    # row blocks for [y | p5 | p9 | p13]

    # cv1: pixel-major 1x1 conv + bias + SiLU.
    x2d = jnp.transpose(x, (0, 2, 3, 1)).reshape(n * h * w, c1)
    y2d = conv_bn_silu(x2d, w1f, params["b1"])
    y4d = y2d.reshape(n, h, w, c_)                                   # NHWC

    # Fused SPP pools + cv2.
    o3d = spp_pool_cv2(y4d, w2_blocks, params["b2"])                 # (N, H*W, C2)
    return jnp.transpose(o3d.reshape(n, h, w, c2), (0, 3, 1, 2))     # NCHW


# ---------------------------------------------------------------------------
# Deterministic synthetic parameters (Conv weights + folded BatchNorm)
# ---------------------------------------------------------------------------
def init_spp_params(key, c1, c2):
    c_ = c1 // 2
    ks = jax.random.split(key, 10)

    def bn_fold(kg, kb, km, kv, c):
        gamma = 1.0 + 0.1 * jax.random.normal(kg, (c,))
        beta = 0.1 * jax.random.normal(kb, (c,))
        mean = 0.1 * jax.random.normal(km, (c,))
        var = jax.nn.softplus(jax.random.normal(kv, (c,))) + 0.5
        scale = gamma / jnp.sqrt(var + 1e-3)          # BN eps = 0.001
        bias = beta - mean * scale
        return (scale.reshape(1, c).astype(jnp.float32),
                bias.reshape(1, c).astype(jnp.float32))

    w1 = 0.1 * jax.random.normal(ks[0], (c1, c_), dtype=jnp.float32)
    w2 = 0.1 * jax.random.normal(ks[1], (c_ * 4, c2), dtype=jnp.float32)
    s1, b1 = bn_fold(ks[2], ks[3], ks[4], ks[5], c_)
    s2, b2 = bn_fold(ks[6], ks[7], ks[8], ks[9], c2)
    return dict(w1=w1, s1=s1, b1=b1, w2=w2, s2=s2, b2=b2)


# ---------------------------------------------------------------------------
# Pure-JAX reference (matches PyTorch SPP eval-mode semantics)
# ---------------------------------------------------------------------------
def spp_reference(x, params):
    def conv_bn_silu_ref(x, w, scale, bias):
        y = jnp.einsum("nihw,io->nohw", x, w,
                       precision=lax.Precision.HIGHEST)
        y = y * scale.reshape(1, -1, 1, 1) + bias.reshape(1, -1, 1, 1)
        return y * jax.nn.sigmoid(y)

    def maxpool(x, k):
        p = k // 2
        return lax.reduce_window(x, -jnp.inf, lax.max,
                                 (1, 1, k, k), (1, 1, 1, 1),
                                 ((0, 0), (0, 0), (p, p), (p, p)))

    a = conv_bn_silu_ref(x, params["w1"], params["s1"], params["b1"])
    cat = jnp.concatenate([a, maxpool(a, 5), maxpool(a, 9), maxpool(a, 13)],
                          axis=1)
    return conv_bn_silu_ref(cat, params["w2"], params["s2"], params["b2"])


if __name__ == "__main__":
    key = jax.random.PRNGKey(0)
    kx, kp = jax.random.split(key)

    N, C1, H, W = 2, 32, 16, 16
    C2 = 32

    x = jax.random.normal(kx, (N, C1, H, W), dtype=jnp.float32)
    params = init_spp_params(kp, C1, C2)

    out = jax.jit(spp_forward)(x, params)
    out = jax.block_until_ready(out)

    ref = spp_reference(x, params)
    assert out.shape == (N, C2, H, W), out.shape
    # bf16 MXU operands (f32 accumulation) -> slightly looser tolerance than f32.
    if not bool(jnp.allclose(out, ref, rtol=2e-2, atol=2e-2)):
        raise AssertionError(
            f"mismatch, max abs diff = {float(jnp.max(jnp.abs(out - ref)))}")

    print("KERNEL_OK")
</pallas_src>

<mosaic_0001>
module attributes {stable_mosaic.version = 11 : i64} {
  func.func @_conv_bn_silu_kernel(%arg0: i32, %arg1: memref<512x32xf32, #tpu.memory_space<vmem>>, %arg2: memref<32x16xbf16, #tpu.memory_space<vmem>>, %arg3: memref<1x16xf32, #tpu.memory_space<vmem>>, %arg4: memref<512x16xf32, #tpu.memory_space<vmem>>) attributes {dimension_semantics = [#tpu.dimension_semantics<parallel>], iteration_bounds = array<i64: 1>, scalar_prefetch = 0 : i64, scratch_operands = 0 : i64, tpu.core_type = #tpu.core_type<tc>, window_params = [{transform_indices = @transform_0, window_bounds = array<i64: 512, 32>}, {pipeline_mode = #tpu.pipeline_mode<synchronous>, transform_indices = @transform_1, window_bounds = array<i64: 32, 16>}, {pipeline_mode = #tpu.pipeline_mode<synchronous>, transform_indices = @transform_2, window_bounds = array<i64: 1, 16>}, {transform_indices = @transform_3, window_bounds = array<i64: 512, 16>}]} {
    %c0 = arith.constant 0 : index
    %c0_0 = arith.constant 0 : index
    %0 = vector.load %arg1[%c0, %c0_0] : memref<512x32xf32, #tpu.memory_space<vmem>>, vector<512x32xf32>
    %1 = arith.truncf %0 : vector<512x32xf32> to vector<512x32xbf16>
    %c0_1 = arith.constant 0 : index
    %c0_2 = arith.constant 0 : index
    %2 = vector.load %arg2[%c0_1, %c0_2] : memref<32x16xbf16, #tpu.memory_space<vmem>>, vector<32x16xbf16>
    %cst = arith.constant dense<0.000000e+00> : vector<512x16xf32>
    %3 = tpu.matmul %1, %2, %cst {dimension_numbers = #tpu.dot_dimension_numbers<[1], [0], [0], [1], [0, 0, 1, 1], [], []>} : vector<512x32xbf16>, vector<32x16xbf16>, vector<512x16xf32> -> vector<512x16xf32>
    %c0_3 = arith.constant 0 : index
    %c0_4 = arith.constant 0 : index
    %4 = vector.load %arg3[%c0_3, %c0_4] : memref<1x16xf32, #tpu.memory_space<vmem>>, vector<1x16xf32>
    %5 = vector.broadcast %4 : vector<1x16xf32> to vector<512x16xf32>
    %6 = arith.addf %3, %5 : vector<512x16xf32>
    %7 = arith.negf %6 : vector<512x16xf32>
    %8 = math.exp %7 : vector<512x16xf32>
    %cst_5 = arith.constant 1.000000e+00 : f32
    %9 = vector.broadcast %cst_5 : f32 to vector<512x16xf32>
    %10 = arith.addf %9, %8 : vector<512x16xf32>
    %11 = arith.divf %9, %10 : vector<512x16xf32>
    %12 = arith.mulf %6, %11 : vector<512x16xf32>
    %c0_6 = arith.constant 0 : index
    %c0_7 = arith.constant 0 : index
    %13 = vector.load %arg4[%c0_6, %c0_7] : memref<512x16xf32, #tpu.memory_space<vmem>>, vector<512x16xf32>
    tpu.vector_store %arg4[%c0_6, %c0_7], %12 {strides = array<i32>} : memref<512x16xf32, #tpu.memory_space<vmem>>, vector<512x16xf32>,
    return
  }
  func.func @transform_0(%arg0: i32) -> (i32, i32) {
    %c0_i32 = arith.constant 0 : i32
    %c0_i32_0 = arith.constant 0 : i32
    return %arg0, %c0_i32 : i32, i32
  }
  func.func @transform_1(%arg0: i32) -> (i32, i32) {
    %c0_i32 = arith.constant 0 : i32
    %c0_i32_0 = arith.constant 0 : i32
    %c0_i32_1 = arith.constant 0 : i32
    return %c0_i32, %c0_i32_0 : i32, i32
  }
  func.func @transform_2(%arg0: i32) -> (i32, i32) {
    %c0_i32 = arith.constant 0 : i32
    %c0_i32_0 = arith.constant 0 : i32
    %c0_i32_1 = arith.constant 0 : i32
    return %c0_i32, %c0_i32_0 : i32, i32
  }
  func.func @transform_3(%arg0: i32) -> (i32, i32) {
    %c0_i32 = arith.constant 0 : i32
    %c0_i32_0 = arith.constant 0 : i32
    return %arg0, %c0_i32 : i32, i32
  }
}

module attributes {stable_mosaic.version = 11 : i64} {
  func.func @_spp_pool_cv2_kernel(%arg0: i32, %arg1: memref<1x16x16x16xf32, #tpu.memory_space<vmem>>, %arg2: memref<4x16x32xbf16, #tpu.memory_space<vmem>>, %arg3: memref<1x32xf32, #tpu.memory_space<vmem>>, %arg4: memref<1x256x32xf32, #tpu.memory_space<vmem>>) attributes {dimension_semantics = [#tpu.dimension_semantics<parallel>], iteration_bounds = array<i64: 2>, scalar_prefetch = 0 : i64, scratch_operands = 0 : i64, tpu.core_type = #tpu.core_type<tc>, window_params = [{transform_indices = @transform_0, window_bounds = array<i64: 1, 16, 16, 16>}, {pipeline_mode = #tpu.pipeline_mode<synchronous>, transform_indices = @transform_1, window_bounds = array<i64: 4, 16, 32>}, {pipeline_mode = #tpu.pipeline_mode<synchronous>, transform_indices = @transform_2, window_bounds = array<i64: 1, 32>}, {transform_indices = @transform_3, window_bounds = array<i64: 1, 256, 32>}]} {
    %c0 = arith.constant 0 : index
    %c0_0 = arith.constant 0 : index
    %c0_1 = arith.constant 0 : index
    %c0_2 = arith.constant 0 : index
    %0 = vector.load %arg1[%c0, %c0_0, %c0_1, %c0_2] : memref<1x16x16x16xf32, #tpu.memory_space<vmem>>, vector<1x16x16x16xf32>
    %1 = vector.shape_cast %0 : vector<1x16x16x16xf32> to vector<16x16x16xf32>
    %cst = arith.constant 0xFF800000 : f32
    %2 = vector.broadcast %cst : f32 to vector<2x16x16xf32>
    %3 = tpu.concatenate %2, %1, %2 in 0 : vector<2x16x16xf32>, vector<16x16x16xf32>, vector<2x16x16xf32> -> vector<20x16x16xf32>
    %4 = vector.extract_strided_slice %3 {offsets = [0, 0, 0], sizes = [16, 16, 16], strides = [1, 1, 1]} : vector<20x16x16xf32> to vector<16x16x16xf32>
    %5 = vector.extract_strided_slice %3 {offsets = [1, 0, 0], sizes = [16, 16, 16], strides = [1, 1, 1]} : vector<20x16x16xf32> to vector<16x16x16xf32>
    %6 = arith.maximumf %4, %5 : vector<16x16x16xf32>
    %7 = vector.extract_strided_slice %3 {offsets = [2, 0, 0], sizes = [16, 16, 16], strides = [1, 1, 1]} : vector<20x16x16xf32> to vector<16x16x16xf32>
    %8 = arith.maximumf %6, %7 : vector<16x16x16xf32>
    %9 = vector.extract_strided_slice %3 {offsets = [3, 0, 0], sizes = [16, 16, 16], strides = [1, 1, 1]} : vector<20x16x16xf32> to vector<16x16x16xf32>
    %10 = arith.maximumf %8, %9 : vector<16x16x16xf32>
    %11 = vector.extract_strided_slice %3 {offsets = [4, 0, 0], sizes = [16, 16, 16], strides = [1, 1, 1]} : vector<20x16x16xf32> to vector<16x16x16xf32>
    %12 = arith.maximumf %10, %11 : vector<16x16x16xf32>
    %cst_3 = arith.constant 0xFF800000 : f32
    %13 = vector.broadcast %cst_3 : f32 to vector<16x2x16xf32>
    %14 = tpu.concatenate %13, %12, %13 in 1 : vector<16x2x16xf32>, vector<16x16x16xf32>, vector<16x2x16xf32> -> vector<16x20x16xf32>
    %15 = vector.extract_strided_slice %14 {offsets = [0, 0, 0], sizes = [16, 16, 16], strides = [1, 1, 1]} : vector<16x20x16xf32> to vector<16x16x16xf32>
    %16 = vector.extract_strided_slice %14 {offsets = [0, 1, 0], sizes = [16, 16, 16], strides = [1, 1, 1]} : vector<16x20x16xf32> to vector<16x16x16xf32>
    %17 = arith.maximumf %15, %16 : vector<16x16x16xf32>
    %18 = vector.extract_strided_slice %14 {offsets = [0, 2, 0], sizes = [16, 16, 16], strides = [1, 1, 1]} : vector<16x20x16xf32> to vector<16x16x16xf32>
    %19 = arith.maximumf %17, %18 : vector<16x16x16xf32>
    %20 = vector.extract_strided_slice %14 {offsets = [0, 3, 0], sizes = [16, 16, 16], strides = [1, 1, 1]} : vector<16x20x16xf32> to vector<16x16x16xf32>
    %21 = arith.maximumf %19, %20 : vector<16x16x16xf32>
    %22 = vector.extract_strided_slice %14 {offsets = [0, 4, 0], sizes = [16, 16, 16], strides = [1, 1, 1]} : vector<16x20x16xf32> to vector<16x16x16xf32>
    %23 = arith.maximumf %21, %22 : vector<16x16x16xf32>
    %cst_4 = arith.constant 0xFF800000 : f32
    %24 = vector.broadcast %cst_4 : f32 to vector<2x16x16xf32>
    %25 = tpu.concatenate %24, %23, %24 in 0 : vector<2x16x16xf32>, vector<16x16x16xf32>, vector<2x16x16xf32> -> vector<20x16x16xf32>
    %26 = vector.extract_strided_slice %25 {offsets = [0, 0, 0], sizes = [16, 16, 16], strides = [1, 1, 1]} : vector<20x16x16xf32> to vector<16x16x16xf32>
    %27 = vector.extract_strided_slice %25 {offsets = [1, 0, 0], sizes = [16, 16, 16], strides = [1, 1, 1]} : vector<20x16x16xf32> to vector<16x16x16xf32>
    %28 = arith.maximumf %26, %27 : vector<16x16x16xf32>
    %29 = vector.extract_strided_slice %25 {offsets = [2, 0, 0], sizes = [16, 16, 16], strides = [1, 1, 1]} : vector<20x16x16xf32> to vector<16x16x16xf32>
    %30 = arith.maximumf %28, %29 : vector<16x16x16xf32>
    %31 = vector.extract_strided_slice %25 {offsets = [3, 0, 0], sizes = [16, 16, 16], strides = [1, 1, 1]} : vector<20x16x16xf32> to vector<16x16x16xf32>
    %32 = arith.maximumf %30, %31 : vector<16x16x16xf32>
    %33 = vector.extract_strided_slice %25 {offsets = [4, 0, 0], sizes = [16, 16, 16], strides = [1, 1, 1]} : vector<20x16x16xf32> to vector<16x16x16xf32>
    %34 = arith.maximumf %32, %33 : vector<16x16x16xf32>
    %cst_5 = arith.constant 0xFF800000 : f32
    %35 = vector.broadcast %cst_5 : f32 to vector<16x2x16xf32>
    %36 = tpu.concatenate %35, %34, %35 in 1 : vector<16x2x16xf32>, vector<16x16x16xf32>, vector<16x2x16xf32> -> vector<16x20x16xf32>
    %37 = vector.extract_strided_slice %36 {offsets = [0, 0, 0], sizes = [16, 16, 16], strides = [1, 1, 1]} : vector<16x20x16xf32> to vector<16x16x16xf32>
    %38 = vector.extract_strided_slice %36 {offsets = [0, 1, 0], sizes = [16, 16, 16], strides = [1, 1, 1]} : vector<16x20x16xf32> to vector<16x16x16xf32>
    %39 = arith.maximumf %37, %38 : vector<16x16x16xf32>
    %40 = vector.extract_strided_slice %36 {offsets = [0, 2, 0], sizes = [16, 16, 16], strides = [1, 1, 1]} : vector<16x20x16xf32> to vector<16x16x16xf32>
    %41 = arith.maximumf %39, %40 : vector<16x16x16xf32>
    %42 = vector.extract_strided_slice %36 {offsets = [0, 3, 0], sizes = [16, 16, 16], strides = [1, 1, 1]} : vector<16x20x16xf32> to vector<16x16x16xf32>
    %43 = arith.maximumf %41, %42 : vector<16x16x16xf32>
    %44 = vector.extract_strided_slice %36 {offsets = [0, 4, 0], sizes = [16, 16, 16], strides = [1, 1, 1]} : vector<16x20x16xf32> to vector<16x16x16xf32>
    %45 = arith.maximumf %43, %44 : vector<16x16x16xf32>
    %cst_6 = arith.constant 0xFF800000 : f32
    %46 = vector.broadcast %cst_6 : f32 to vector<2x16x16xf32>
    %47 = tpu.concatenate %46, %45, %46 in 0 : vector<2x16x16xf32>, vector<16x16x16xf32>, vector<2x16x16xf32> -> vector<20x16x16xf32>
    %48 = vector.extract_strided_slice %47 {offsets = [0, 0, 0], sizes = [16, 16, 16], strides = [1, 1, 1]} : vector<20x16x16xf32> to vector<16x16x16xf32>
    %49 = vector.extract_strided_slice %47 {offsets = [1, 0, 0], sizes = [16, 16, 16], strides = [1, 1, 1]} : vector<20x16x16xf32> to vector<16x16x16xf32>
    %50 = arith.maximumf %48, %49 : vector<16x16x16xf32>
    %51 = vector.extract_strided_slice %47 {offsets = [2, 0, 0], sizes = [16, 16, 16], strides = [1, 1, 1]} : vector<20x16x16xf32> to vector<16x16x16xf32>
    %52 = arith.maximumf %50, %51 : vector<16x16x16xf32>
    %53 = vector.extract_strided_slice %47 {offsets = [3, 0, 0], sizes = [16, 16, 16], strides = [1, 1, 1]} : vector<20x16x16xf32> to vector<16x16x16xf32>
    %54 = arith.maximumf %52, %53 : vector<16x16x16xf32>
    %55 = vector.extract_strided_slice %47 {offsets = [4, 0, 0], sizes = [16, 16, 16], strides = [1, 1, 1]} : vector<20x16x16xf32> to vector<16x16x16xf32>
    %56 = arith.maximumf %54, %55 : vector<16x16x16xf32>
    %cst_7 = arith.constant 0xFF800000 : f32
    %57 = vector.broadcast %cst_7 : f32 to vector<16x2x16xf32>
    %58 = tpu.concatenate %57, %56, %57 in 1 : vector<16x2x16xf32>, vector<16x16x16xf32>, vector<16x2x16xf32> -> vector<16x20x16xf32>
    %59 = vector.extract_strided_slice %58 {offsets = [0, 0, 0], sizes = [16, 16, 16], strides = [1, 1, 1]} : vector<16x20x16xf32> to vector<16x16x16xf32>
    %60 = vector.extract_strided_slice %58 {offsets = [0, 1, 0], sizes = [16, 16, 16], strides = [1, 1, 1]} : vector<16x20x16xf32> to vector<16x16x16xf32>
    %61 = arith.maximumf %59, %60 : vector<16x16x16xf32>
    %62 = vector.extract_strided_slice %58 {offsets = [0, 2, 0], sizes = [16, 16, 16], strides = [1, 1, 1]} : vector<16x20x16xf32> to vector<16x16x16xf32>
    %63 = arith.maximumf %61, %62 : vector<16x16x16xf32>
    %64 = vector.extract_strided_slice %58 {offsets = [0, 3, 0], sizes = [16, 16, 16], strides = [1, 1, 1]} : vector<16x20x16xf32> to vector<16x16x16xf32>
    %65 = arith.maximumf %63, %64 : vector<16x16x16xf32>
    %66 = vector.extract_strided_slice %58 {offsets = [0, 4, 0], sizes = [16, 16, 16], strides = [1, 1, 1]} : vector<16x20x16xf32> to vector<16x16x16xf32>
    %67 = arith.maximumf %65, %66 : vector<16x16x16xf32>
    %68 = vector.shape_cast %1 : vector<16x16x16xf32> to vector<256x16xf32>
    %69 = arith.truncf %68 : vector<256x16xf32> to vector<256x16xbf16>
    %c0_8 = arith.constant 0 : index
    %c0_9 = arith.constant 0 : index
    %c0_10 = arith.constant 0 : index
    %70 = vector.load %arg2[%c0_8, %c0_9, %c0_10] : memref<4x16x32xbf16, #tpu.memory_space<vmem>>, vector<1x16x32xbf16>
    %71 = vector.shape_cast %70 : vector<1x16x32xbf16> to vector<16x32xbf16>
    %cst_11 = arith.constant dense<0.000000e+00> : vector<256x32xf32>
    %72 = tpu.matmul %69, %71, %cst_11 {dimension_numbers = #tpu.dot_dimension_numbers<[1], [0], [0], [1], [0, 0, 1, 1], [], []>} : vector<256x16xbf16>, vector<16x32xbf16>, vector<256x32xf32> -> vector<256x32xf32>
    %73 = vector.shape_cast %23 : vector<16x16x16xf32> to vector<256x16xf32>
    %74 = arith.truncf %73 : vector<256x16xf32> to vector<256x16xbf16>
    %c1 = arith.constant 1 : index
    %c0_12 = arith.constant 0 : index
    %c0_13 = arith.constant 0 : index
    %75 = vector.load %arg2[%c1, %c0_12, %c0_13] : memref<4x16x32xbf16, #tpu.memory_space<vmem>>, vector<1x16x32xbf16>
    %76 = vector.shape_cast %75 : vector<1x16x32xbf16> to vector<16x32xbf16>
    %cst_14 = arith.constant dense<0.000000e+00> : vector<256x32xf32>
    %77 = tpu.matmul %74, %76, %cst_14 {dimension_numbers = #tpu.dot_dimension_numbers<[1], [0], [0], [1], [0, 0, 1, 1], [], []>} : vector<256x16xbf16>, vector<16x32xbf16>, vector<256x32xf32> -> vector<256x32xf32>
    %78 = arith.addf %72, %77 : vector<256x32xf32>
    %79 = vector.shape_cast %45 : vector<16x16x16xf32> to vector<256x16xf32>
    %80 = arith.truncf %79 : vector<256x16xf32> to vector<256x16xbf16>
    %c2 = arith.constant 2 : index
    %c0_15 = arith.constant 0 : index
    %c0_16 = arith.constant 0 : index
    %81 = vector.load %arg2[%c2, %c0_15, %c0_16] : memref<4x16x32xbf16, #tpu.memory_space<vmem>>, vector<1x16x32xbf16>
    %82 = vector.shape_cast %81 : vector<1x16x32xbf16> to vector<16x32xbf16>
    %cst_17 = arith.constant dense<0.000000e+00> : vector<256x32xf32>
    %83 = tpu.matmul %80, %82, %cst_17 {dimension_numbers = #tpu.dot_dimension_numbers<[1], [0], [0], [1], [0, 0, 1, 1], [], []>} : vector<256x16xbf16>, vector<16x32xbf16>, vector<256x32xf32> -> vector<256x32xf32>
    %84 = arith.addf %78, %83 : vector<256x32xf32>
    %85 = vector.shape_cast %67 : vector<16x16x16xf32> to vector<256x16xf32>
    %86 = arith.truncf %85 : vector<256x16xf32> to vector<256x16xbf16>
    %c3 = arith.constant 3 : index
    %c0_18 = arith.constant 0 : index
    %c0_19 = arith.constant 0 : index
    %87 = vector.load %arg2[%c3, %c0_18, %c0_19] : memref<4x16x32xbf16, #tpu.memory_space<vmem>>, vector<1x16x32xbf16>
    %88 = vector.shape_cast %87 : vector<1x16x32xbf16> to vector<16x32xbf16>
    %cst_20 = arith.constant dense<0.000000e+00> : vector<256x32xf32>
    %89 = tpu.matmul %86, %88, %cst_20 {dimension_numbers = #tpu.dot_dimension_numbers<[1], [0], [0], [1], [0, 0, 1, 1], [], []>} : vector<256x16xbf16>, vector<16x32xbf16>, vector<256x32xf32> -> vector<256x32xf32>
    %90 = arith.addf %84, %89 : vector<256x32xf32>
    %c0_21 = arith.constant 0 : index
    %c0_22 = arith.constant 0 : index
    %91 = vector.load %arg3[%c0_21, %c0_22] : memref<1x32xf32, #tpu.memory_space<vmem>>, vector<1x32xf32>
    %92 = vector.broadcast %91 : vector<1x32xf32> to vector<256x32xf32>
    %93 = arith.addf %90, %92 : vector<256x32xf32>
    %94 = arith.negf %93 : vector<256x32xf32>
    %95 = math.exp %94 : vector<256x32xf32>
    %cst_23 = arith.constant 1.000000e+00 : f32
    %96 = vector.broadcast %cst_23 : f32 to vector<256x32xf32>
    %97 = arith.addf %96, %95 : vector<256x32xf32>
    %98 = arith.divf %96, %97 : vector<256x32xf32>
    %99 = arith.mulf %93, %98 : vector<256x32xf32>
    %c0_24 = arith.constant 0 : index
    %c0_25 = arith.constant 0 : index
    %c0_26 = arith.constant 0 : index
    %100 = vector.load %arg4[%c0_24, %c0_25, %c0_26] : memref<1x256x32xf32, #tpu.memory_space<vmem>>, vector<1x256x32xf32>
    %101 = vector.shape_cast %100 : vector<1x256x32xf32> to vector<256x32xf32>
    %102 = vector.shape_cast %99 : vector<256x32xf32> to vector<1x256x32xf32>
    tpu.vector_store %arg4[%c0_24, %c0_25, %c0_26], %102 {strides = array<i32>} : memref<1x256x32xf32, #tpu.memory_space<vmem>>, vector<1x256x32xf32>,
    return
  }
  func.func @transform_0(%arg0: i32) -> (i32, i32, i32, i32) {
    %c0_i32 = arith.constant 0 : i32
    %c0_i32_0 = arith.constant 0 : i32
    %c0_i32_1 = arith.constant 0 : i32
    %c0_i32_2 = arith.constant 0 : i32
    return %arg0, %c0_i32, %c0_i32_0, %c0_i32_1 : i32, i32, i32, i32
  }
  func.func @transform_1(%arg0: i32) -> (i32, i32, i32) {
    %c0_i32 = arith.constant 0 : i32
    %c0_i32_0 = arith.constant 0 : i32
    %c0_i32_1 = arith.constant 0 : i32
    %c0_i32_2 = arith.constant 0 : i32
    return %c0_i32, %c0_i32_0, %c0_i32_1 : i32, i32, i32
  }
  func.func @transform_2(%arg0: i32) -> (i32, i32) {
    %c0_i32 = arith.constant 0 : i32
    %c0_i32_0 = arith.constant 0 : i32
    %c0_i32_1 = arith.constant 0 : i32
    return %c0_i32, %c0_i32_0 : i32, i32
  }
  func.func @transform_3(%arg0: i32) -> (i32, i32, i32) {
    %c0_i32 = arith.constant 0 : i32
    %c0_i32_0 = arith.constant 0 : i32
    %c0_i32_1 = arith.constant 0 : i32
    return %arg0, %c0_i32, %c0_i32_0 : i32, i32, i32
  }
}

</mosaic_0001>

<bundles_post_ra>
// kernel: spp_forward.2
= control target key start
LH: loop header
LB: loop body
LE: loop exit
PB: predicated region body
PF: predicated region fallthrough
CT: control target
= control target key end

     0   :  { %8 = vsyncpa [#allocation3], 0  ;;  %s1541_s12 = smov [#allocation2]   ;;  %s2200_s0 = inlined_call_operand.hbm [shape: f32[512,32], index: 0, kind: input, shape index: {}]   ;;  %s2201_s1 = inlined_call_operand.vmem [shape: bf16[32,16], index: 1, kind: input, shape index: {}]   ;;  %s2202_s2 = inlined_call_operand.vmem [shape: f32[1,16], index: 2, kind: input, shape index: {}]   ;;  %s2203_s3 = inlined_call_operand.vmem [shape: f32[512,16], index: 3, kind: output, shape index: {}]  }
   0x1   :  { %s14_s13 = sshll.u32 %s1541_s12, 4  ;;  %s15_s13 = int_to_ptr.vmem [resolvable:$true] %s14_s13 }
   0x2   :  { %s1527_s14 = scalar_lea.vmem %s15_s13, 8192  ;;  %p1532_p1 = scmp.lt.s32.totalorder %s15_s13, %s15_s13 }
   0x3   :  { %p1528_p0 = scmp.ne.s32.totalorder %s15_s13, %s1527_s14  ;;  %p1533_p2 = scmp.lt.s32.totalorder %s1527_s14, %s1527_s14 }
   0x5   :  { %p1534_p3 = por %p1533_p2, %p1532_p1 }
   0x7   :  { %p1535_p4 = pnand %p1534_p3, %p1528_p0 }
   0x9   :  { %1538 = shalt.err (!%p1535_p4)
}
   0xa   :  { %s1542_s15 = smov 128   ;;  %s1543_s16 = smov 8  }
   0xb   :  { %20 = dma.hbm_to_vmem [thread:$0]  %s2200_s0, 8192, %s15_s13, [#allocation3], %s1542_s15, %s1542_s15, %s1543_s16  }
   0xc   :  { %1539 = dma.done.wait [#allocation3], 8192  }
   0xd   :  { %1540 = vsyncadd [#allocation3], 4294959104  ;;  %v1260_v0 = vld [vmem:[%s2201_s1 + $0x8] sm:$0xff]   ;;  %v1261_v1 = vld [vmem:[%s2201_s1] sm:$0xff]   ;;  %vm148_vm0 = vcmask 261120   ;;  %vm982_vm1 = vcmask 130048  }
   0xe   :  { %1185 = vmatprep.subr.bf16.mxu0 %v1260_v0  ;;  %1253 = vmatprep.subr.bf16.mxu1 %v1260_v0  ;;  %v29_v2 = vld [vmem:[#allocation2] sm:$0xff]  ;;  %v30_v3 = vld [vmem:[#allocation2 + $0x8] sm:$0xff]  ;;  %v31_v7 = vld [vmem:[#allocation2 + $0x10] sm:$0xff] }
   0xf   :  { %v61_v4 = vld [vmem:[#allocation2 + $0x100] sm:$0xff]  ;;  %1186 = vmatpush3.bf16.msra.mxu0 %v1260_v0  ;;  %1255 = vmatpush3.bf16.msra.mxu1 %v1260_v0  ;;  %v93_v5 = vpack.c.bf16 %v30_v3, %v29_v2  ;;  %v62_v6 = vld [vmem:[#allocation2 + $0x108] sm:$0xff]  ;;  %v32_v8 = vld [vmem:[#allocation2 + $0x18] sm:$0xff] }
  0x10   :  { %1187 = vmatprep.subr.bf16.mxu0 %v1261_v1  ;;  %1254 = vmatprep.subr.bf16.mxu1 %v1261_v1  ;;  %v109_v9 = vpack.c.bf16 %v62_v6, %v61_v4  ;;  %v63_v10 = vld [vmem:[#allocation2 + $0x110] sm:$0xff]  ;;  %v64_v11 = vld [vmem:[#allocation2 + $0x118] sm:$0xff]  ;;  %v33_v12 = vld [vmem:[#allocation2 + $0x20] sm:$0xff]  ;;  %v94_v16 = vpack.c.bf16 %v32_v8, %v31_v7 }
  0x11   :  { %1189 = vmatprep.mubr.msk.bf16.mxu0 %vm148_vm0, %v93_v5  ;;  %v34_v13 = vld [vmem:[#allocation2 + $0x28] sm:$0xff]  ;;  %v65_v14 = vld [vmem:[#allocation2 + $0x120] sm:$0xff]  ;;  %v110_v17 = vpack.c.bf16 %v64_v11, %v63_v10  ;;  %v35_v20 = vld [vmem:[#allocation2 + $0x30] sm:$0xff] }
  0x12   :  { %v66_v15 = vld [vmem:[#allocation2 + $0x128] sm:$0xff]  ;;  %1221 = vmatprep.mubr.msk.bf16.mxu1 %vm148_vm0, %v109_v9  ;;  %v95_v18 = vpack.c.bf16 %v34_v13, %v33_v12  ;;  %v36_v21 = vld [vmem:[#allocation2 + $0x38] sm:$0xff]  ;;  %v67_v22 = vld [vmem:[#allocation2 + $0x130] sm:$0xff] }
  0x13   :  { %1188 = vmatpush3.bf16.msra.mxu0 %v1261_v1  ;;  %1256 = vmatpush3.bf16.msra.mxu1 %v1261_v1  ;;  %v111_v19 = vpack.c.bf16 %v66_v15, %v65_v14  ;;  %v68_v23 = vld [vmem:[#allocation2 + $0x138] sm:$0xff]  ;;  %v37_v24 = vld [vmem:[#allocation2 + $0x40] sm:$0xff]  ;;  %v38_v25 = vld [vmem:[#allocation2 + $0x48] sm:$0xff]  ;;  %v96_v28 = vpack.c.bf16 %v36_v21, %v35_v20 }
  0x14   :  { %v69_v26 = vld [vmem:[#allocation2 + $0x140] sm:$0xff]  ;;  %v70_v27 = vld [vmem:[#allocation2 + $0x148] sm:$0xff]  ;;  %v112_v29 = vpack.c.bf16 %v68_v23, %v67_v22  ;;  %v97_v30 = vpack.c.bf16 %v38_v25, %v37_v24  ;;  %v39_v32 = vld [vmem:[#allocation2 + $0x50] sm:$0xff] }
  0x15   :  { %v113_v31 = vpack.c.bf16 %v70_v27, %v69_v26  ;;  %v40_v33 = vld [vmem:[#allocation2 + $0x58] sm:$0xff]  ;;  %v71_v34 = vld [vmem:[#allocation2 + $0x150] sm:$0xff]  ;;  %v41_v36 = vld [vmem:[#allocation2 + $0x60] sm:$0xff] }
  0x16   :  { %1190 = vmatmul.mubr.msk.bf16.vlgmr.msra.gmra.mxu0 %vm148_vm0, %v94_v16  ;;  %1222 = vmatmul.mubr.msk.bf16.vlgmr.msra.gmra.mxu1 %vm148_vm0, %v110_v17  ;;  %v72_v35 = vld [vmem:[#allocation2 + $0x158] sm:$0xff]  ;;  %v42_v37 = vld [vmem:[#allocation2 + $0x68] sm:$0xff]  ;;  %v73_v38 = vld [vmem:[#allocation2 + $0x160] sm:$0xff]  ;;  %v98_v40 = vpack.c.bf16 %v40_v33, %v39_v32 }
  0x17   :  { %1193 = vmatprep.mubr.msk.bf16.mxu0 %vm148_vm0, %v95_v18  ;;  %1225 = vmatprep.mubr.msk.bf16.mxu1 %vm148_vm0, %v111_v19  ;;  %v74_v39 = vld [vmem:[#allocation2 + $0x168] sm:$0xff]  ;;  %v114_v41 = vpack.c.bf16 %v72_v35, %v71_v34  ;;  %v99_v42 = vpack.c.bf16 %v42_v37, %v41_v36  ;;  %v43_v44 = vld [vmem:[#allocation2 + $0x70] sm:$0xff]  ;;  %v44_v45 = vld [vmem:[#allocation2 + $0x78] sm:$0xff] }
  0x18   :  { %v115_v43 = vpack.c.bf16 %v74_v39, %v73_v38  ;;  %v75_v46 = vld [vmem:[#allocation2 + $0x170] sm:$0xff]  ;;  %v76_v47 = vld [vmem:[#allocation2 + $0x178] sm:$0xff]  ;;  %v45_v48 = vld [vmem:[#allocation2 + $0x80] sm:$0xff]  ;;  %v100_v52 = vpack.c.bf16 %v44_v45, %v43_v44 }
  0x19   :  { %v46_v49 = vld [vmem:[#allocation2 + $0x88] sm:$0xff]  ;;  %v77_v50 = vld [vmem:[#allocation2 + $0x180] sm:$0xff]  ;;  %v116_v53 = vpack.c.bf16 %v76_v47, %v75_v46  ;;  %v47_v56 = vld [vmem:[#allocation2 + $0x90] sm:$0xff] }
  0x1a   :  { %v78_v51 = vld [vmem:[#allocation2 + $0x188] sm:$0xff]  ;;  %v101_v54 = vpack.c.bf16 %v46_v49, %v45_v48  ;;  %v48_v57 = vld [vmem:[#allocation2 + $0x98] sm:$0xff]  ;;  %v79_v58 = vld [vmem:[#allocation2 + $0x190] sm:$0xff] }
  0x1b   :  { %v117_v55 = vpack.c.bf16 %v78_v51, %v77_v50  ;;  %v80_v59 = vld [vmem:[#allocation2 + $0x198] sm:$0xff]  ;;  %v49_v60 = vld [vmem:[#allocation2 + $0xa0] sm:$0xff]  ;;  %v50_v61 = vld [vmem:[#allocation2 + $0xa8] sm:$0xff]  ;;  %v102_v0 = vpack.c.bf16 %v48_v57, %v47_v56 }
  0x1c   :  { %v81_v62 = vld [vmem:[#allocation2 + $0x1a0] sm:$0xff]  ;;  %v82_v63 = vld [vmem:[#allocation2 + $0x1a8] sm:$0xff]  ;;  %v118_v1 = vpack.c.bf16 %v80_v59, %v79_v58  ;;  %v103_v2 = vpack.c.bf16 %v50_v61, %v49_v60  ;;  %v51_v4 = vld [vmem:[#allocation2 + $0xb0] sm:$0xff] }
  0x1d   :  { %v119_v3 = vpack.c.bf16 %v82_v63, %v81_v62  ;;  %v52_v5 = vld [vmem:[#allocation2 + $0xb8] sm:$0xff]  ;;  %v83_v6 = vld [vmem:[#allocation2 + $0x1b0] sm:$0xff]  ;;  %v53_v8 = vld [vmem:[#allocation2 + $0xc0] sm:$0xff] }
  0x1e   :  { %1194 = vmatmul.mubr.msk.bf16.gmra.mxu0 %vm148_vm0, %v96_v28  ;;  %1226 = vmatmul.mubr.msk.bf16.gmra.mxu1 %vm148_vm0, %v112_v29  ;;  %v84_v7 = vld [vmem:[#allocation2 + $0x1b8] sm:$0xff]  ;;  %v54_v9 = vld [vmem:[#allocation2 + $0xc8] sm:$0xff]  ;;  %v85_v10 = vld [vmem:[#allocation2 + $0x1c0] sm:$0xff]  ;;  %v104_v12 = vpack.c.bf16 %v52_v5, %v51_v4 }
  0x1f   :  { %1197 = vmatprep.mubr.msk.bf16.mxu0 %vm148_vm0, %v97_v30  ;;  %1229 = vmatprep.mubr.msk.bf16.mxu1 %vm148_vm0, %v113_v31  ;;  %v86_v11 = vld [vmem:[#allocation2 + $0x1c8] sm:$0xff]  ;;  %v120_v13 = vpack.c.bf16 %v84_v7, %v83_v6  ;;  %v105_v14 = vpack.c.bf16 %v54_v9, %v53_v8  ;;  %v55_v16 = vld [vmem:[#allocation2 + $0xd0] sm:$0xff]  ;;  %v56_v17 = vld [vmem:[#allocation2 + $0xd8] sm:$0xff] }
  0x20   :  { %v121_v15 = vpack.c.bf16 %v86_v11, %v85_v10  ;;  %v87_v18 = vld [vmem:[#allocation2 + $0x1d0] sm:$0xff]  ;;  %v88_v19 = vld [vmem:[#allocation2 + $0x1d8] sm:$0xff]  ;;  %v57_v20 = vld [vmem:[#allocation2 + $0xe0] sm:$0xff]  ;;  %v106_v24 = vpack.c.bf16 %v56_v17, %v55_v16 }
  0x21   :  { %v58_v21 = vld [vmem:[#allocation2 + $0xe8] sm:$0xff]  ;;  %v89_v22 = vld [vmem:[#allocation2 + $0x1e0] sm:$0xff]  ;;  %v122_v25 = vpack.c.bf16 %v88_v19, %v87_v18  ;;  %v59_v28 = vld [vmem:[#allocation2 + $0xf0] sm:$0xff] }
  0x22   :  { %v90_v23 = vld [vmem:[#allocation2 + $0x1e8] sm:$0xff]  ;;  %v107_v26 = vpack.c.bf16 %v58_v21, %v57_v20  ;;  %v60_v29 = vld [vmem:[#allocation2 + $0xf8] sm:$0xff]  ;;  %v91_v30 = vld [vmem:[#allocation2 + $0x1f0] sm:$0xff] }
  0x23   :  { %v123_v27 = vpack.c.bf16 %v90_v23, %v89_v22  ;;  %v92_v31 = vld [vmem:[#allocation2 + $0x1f8] sm:$0xff]  ;;  %v108_v32 = vpack.c.bf16 %v60_v29, %v59_v28  ;;  %v1608_v34 = vld [vmem:[%s2202_s2] ss:$0 sm:$0xff] }
  0x24   :  { %v124_v33 = vpack.c.bf16 %v92_v31, %v91_v30 }
  0x26   :  { %1198 = vmatmul.mubr.msk.bf16.gmra.mxu0 %vm148_vm0, %v98_v40  ;;  %1230 = vmatmul.mubr.msk.bf16.gmra.mxu1 %vm148_vm0, %v114_v41 }
  0x27   :  { %1201 = vmatprep.mubr.msk.bf16.mxu0 %vm148_vm0, %v99_v42  ;;  %1233 = vmatprep.mubr.msk.bf16.mxu1 %vm148_vm0, %v115_v43 }
  0x2e   :  { %1202 = vmatmul.mubr.msk.bf16.gmra.mxu0 %vm148_vm0, %v100_v52  ;;  %1234 = vmatmul.mubr.msk.bf16.gmra.mxu1 %vm148_vm0, %v116_v53 }
  0x2f   :  { %1205 = vmatprep.mubr.msk.bf16.mxu0 %vm148_vm0, %v101_v54  ;;  %1237 = vmatprep.mubr.msk.bf16.mxu1 %vm148_vm0, %v117_v55 }
  0x36   :  { %1206 = vmatmul.mubr.msk.bf16.gmra.mxu0 %vm148_vm0, %v102_v0  ;;  %1238 = vmatmul.mubr.msk.bf16.gmra.mxu1 %vm148_vm0, %v118_v1 }
  0x37   :  { %1209 = vmatprep.mubr.msk.bf16.mxu0 %vm148_vm0, %v103_v2  ;;  %1241 = vmatprep.mubr.msk.bf16.mxu1 %vm148_vm0, %v119_v3 }
  0x3e   :  { %1210 = vmatmul.mubr.msk.bf16.gmra.mxu0 %vm148_vm0, %v104_v12  ;;  %1242 = vmatmul.mubr.msk.bf16.gmra.mxu1 %vm148_vm0, %v120_v13 }
  0x3f   :  { %1213 = vmatprep.mubr.msk.bf16.mxu0 %vm148_vm0, %v105_v14  ;;  %1245 = vmatprep.mubr.msk.bf16.mxu1 %vm148_vm0, %v121_v15 }
  0x46   :  { %1214 = vmatmul.mubr.msk.bf16.gmra.mxu0 %vm148_vm0, %v106_v24  ;;  %1246 = vmatmul.mubr.msk.bf16.gmra.mxu1 %vm148_vm0, %v122_v25 }
  0x47   :  { %1217 = vmatprep.mubr.msk.bf16.mxu0 %vm148_vm0, %v107_v26  ;;  %1249 = vmatprep.mubr.msk.bf16.mxu1 %vm148_vm0, %v123_v27 }
  0x4e   :  { %1218 = vmatmul.mubr.msk.bf16.gmra.mxu0 %vm148_vm0, %v108_v32  ;;  %1250 = vmatmul.mubr.msk.bf16.gmra.mxu1 %vm148_vm0, %v124_v33 }
  0xd6   :  { %v1191_v35 = vpop.f32.mrf.mxu0  ;;  %v1223_v36 = vpop.f32.mrf.mxu1 }
  0xd7   :  { %v1611_v37 = vadd.f32 %v1191_v35, %v1608_v34  ;;  %v1614_v38 = vadd.f32 %v1223_v36, %v1608_v34 }
  0xd8   :  { %v279_v39 = vpop.f32.mrf.mxu0  ;;  %v407_v40 = vpop.f32.mrf.mxu1 }
  0xd9   :  { %v1089_v41 = vmul.f32 -1.442695, %v1611_v37  ;;  %v1121_v42 = vmul.f32 -1.442695, %v1614_v38  ;;  %v1619_v43 = vadd.f32 %v1608_v34, %v279_v39  ;;  %v1622_v44 = vadd.f32 %v1608_v34, %v407_v40 }
  0xda   :  { %v1192_v45 = vpop.f32.mrf.mxu0  ;;  %v1224_v46 = vpop.f32.mrf.mxu1 }
  0xdb   :  { %1262 = vpow2.f32 %v1089_v41  ;;  %v1087_v47 = vmul.f32 -1.442695, %v1619_v43  ;;  %v1119_v48 = vmul.f32 -1.442695, %v1622_v44  ;;  %v1627_v49 = vadd.f32 %v1192_v45, %v1608_v34 }
  0xdc   :  { %1264 = vpow2.f32 %v1121_v42  ;;  %v1630_v50 = vadd.f32 %v1224_v46, %v1608_v34  ;;  %v282_v51 = vpop.f32.mrf.mxu0  ;;  %v410_v52 = vpop.f32.mrf.mxu1 }
  0xdd   :  { %1266 = vpow2.f32 %v1087_v47  ;;  %v1090_v53 = vmul.f32 -1.442695, %v1627_v49  ;;  %v1634_v54 = vadd.f32 %v1608_v34, %v282_v51  ;;  %v1637_v55 = vadd.f32 %v1608_v34, %v410_v52 }
  0xde   :  { %1268 = vpow2.f32 %v1119_v48  ;;  %v1122_v56 = vmul.f32 -1.442695, %v1630_v50  ;;  %v1195_v57 = vpop.f32.mrf.mxu0  ;;  %v1227_v58 = vpop.f32.mrf.mxu1 }
  0xdf   :  { %1270 = vpow2.f32 %v1090_v53  ;;  %v1088_v59 = vmul.f32 -1.442695, %v1634_v54  ;;  %v1120_v60 = vmul.f32 -1.442695, %v1637_v55  ;;  %v1643_v61 = vadd.f32 %v1195_v57, %v1608_v34 }
  0xe0   :  { %1272 = vpow2.f32 %v1122_v56  ;;  %v1646_v62 = vadd.f32 %v1227_v58, %v1608_v34  ;;  %v295_v63 = vpop.f32.mrf.mxu0  ;;  %v423_v0 = vpop.f32.mrf.mxu1 }
  0xe1   :  { %1274 = vpow2.f32 %v1088_v59  ;;  %v1093_v1 = vmul.f32 -1.442695, %v1643_v61  ;;  %v1650_v2 = vadd.f32 %v1608_v34, %v295_v63  ;;  %v1653_v3 = vadd.f32 %v1608_v34, %v423_v0 }
  0xe2   :  { %1276 = vpow2.f32 %v1120_v60  ;;  %v1125_v4 = vmul.f32 -1.442695, %v1646_v62  ;;  %v1196_v5 = vpop.f32.mrf.mxu0  ;;  %v1228_v6 = vpop.f32.mrf.mxu1 }
  0xe3   :  { %1278 = vpow2.f32 %v1093_v1  ;;  %v1091_v7 = vmul.f32 -1.442695, %v1650_v2  ;;  %v1123_v8 = vmul.f32 -1.442695, %v1653_v3  ;;  %v1659_v9 = vadd.f32 %v1196_v5, %v1608_v34 }
  0xe4   :  { %1280 = vpow2.f32 %v1125_v4  ;;  %v1662_v10 = vadd.f32 %v1228_v6, %v1608_v34  ;;  %v298_v11 = vpop.f32.mrf.mxu0  ;;  %v426_v12 = vpop.f32.mrf.mxu1 }
  0xe5   :  { %1282 = vpow2.f32 %v1091_v7  ;;  %v1094_v13 = vmul.f32 -1.442695, %v1659_v9  ;;  %v1666_v14 = vadd.f32 %v1608_v34, %v298_v11  ;;  %v1669_v15 = vadd.f32 %v1608_v34, %v426_v12 }
  0xe6   :  { %1284 = vpow2.f32 %v1123_v8  ;;  %v1126_v16 = vmul.f32 -1.442695, %v1662_v10  ;;  %v1199_v17 = vpop.f32.mrf.mxu0  ;;  %v1231_v18 = vpop.f32.mrf.mxu1 }
  0xe7   :  { %1286 = vpow2.f32 %v1094_v13  ;;  %v1092_v19 = vmul.f32 -1.442695, %v1666_v14  ;;  %v1124_v20 = vmul.f32 -1.442695, %v1669_v15  ;;  %v1675_v60 = vadd.f32 %v1199_v17, %v1608_v34 }
  0xe8   :  { %v1263_v21 = vpop.eup %1262  ;;  %1288 = vpow2.f32 %v1126_v16  ;;  %v311_v22 = vpop.f32.mrf.mxu0  ;;  %v1678_v4 = vadd.f32 %v1231_v18, %v1608_v34 }
  0xe9   :  { %v439_v23 = vpop.f32.mrf.mxu1  ;;  %v1265_v24 = vpop.eup %1264  ;;  %v728_v25 = vadd.f32 1.0, %v1263_v21  ;;  %1290 = vpow2.f32 %v1092_v19  ;;  %v1681_v7 = vadd.f32 %v1608_v34, %v311_v22  ;;  %v1097_v18 = vmul.f32 -1.442695, %v1675_v60 }
  0xea   :  { %v1267_v26 = vpop.eup %1266  ;;  %v760_v27 = vadd.f32 1.0, %v1265_v24  ;;  %1292 = vpow2.f32 %v1124_v20  ;;  %v1200_v28 = vpop.f32.mrf.mxu0  ;;  %v1684_v12 = vadd.f32 %v1608_v34, %v439_v23  ;;  %v1129_v24 = vmul.f32 -1.442695, %v1678_v4 }
  0xeb   :  { %v1269_v29 = vpop.eup %1268  ;;  %1294 = vrcp.f32 %v728_v25  ;;  %v726_v30 = vadd.f32 1.0, %v1267_v26  ;;  %v1232_v31 = vpop.f32.mrf.mxu1  ;;  %v1688_v19 = vadd.f32 %v1200_v28, %v1608_v34 }
  0xec   :  { %v1271_v32 = vpop.eup %1270  ;;  %1296 = vrcp.f32 %v760_v27  ;;  %v758_v33 = vadd.f32 1.0, %v1269_v29  ;;  %v314_v41 = vpop.f32.mrf.mxu0  ;;  %v1692_v25 = vadd.f32 %v1232_v31, %v1608_v34  ;;  %v1095_v27 = vmul.f32 -1.442695, %v1681_v7 }
  0xed   :  { %v1273_v35 = vpop.eup %1272  ;;  %1298 = vrcp.f32 %v726_v30  ;;  %v729_v36 = vadd.f32 1.0, %v1271_v32  ;;  %v442_v46 = vpop.f32.mrf.mxu1  ;;  %v1697_v29 = vadd.f32 %v1608_v34, %v314_v41  ;;  %v1127_v32 = vmul.f32 -1.442695, %v1684_v12 }
  0xee   :  { %v1275_v39 = vpop.eup %1274  ;;  %1300 = vrcp.f32 %v758_v33  ;;  %v761_v40 = vadd.f32 1.0, %v1273_v35  ;;  %v1203_v57 = vpop.f32.mrf.mxu0  ;;  %v1702_v33 = vadd.f32 %v1608_v34, %v442_v46 }
  0xef   :  { %v1277_v42 = vpop.eup %1276  ;;  %1302 = vrcp.f32 %v729_v36  ;;  %v727_v45 = vadd.f32 1.0, %v1275_v39  ;;  %v1235_v63 = vpop.f32.mrf.mxu1  ;;  %v1098_v36 = vmul.f32 -1.442695, %v1688_v19 }
  0xf0   :  { %v1279_v47 = vpop.eup %1278  ;;  %1304 = vrcp.f32 %v761_v40  ;;  %v759_v48 = vadd.f32 1.0, %v1277_v42  ;;  %v327_v13 = vpop.f32.mrf.mxu0  ;;  %v1130_v42 = vmul.f32 -1.442695, %v1692_v25 }
  0xf1   :  { %v1281_v51 = vpop.eup %1280  ;;  %1306 = vrcp.f32 %v727_v45  ;;  %v732_v52 = vadd.f32 1.0, %v1279_v47  ;;  %v455_v20 = vpop.f32.mrf.mxu1  ;;  %v1096_v47 = vmul.f32 -1.442695, %v1697_v29 }
  0xf2   :  { %v1283_v53 = vpop.eup %1282  ;;  %1308 = vrcp.f32 %v759_v48  ;;  %v764_v56 = vadd.f32 1.0, %v1281_v51  ;;  %v1204_v31 = vpop.f32.mrf.mxu0  ;;  %v1729_v48 = vadd.f32 %v1608_v34, %v327_v13 }
  0xf3   :  { %v1285_v58 = vpop.eup %1284  ;;  %1310 = vrcp.f32 %v732_v52  ;;  %v730_v59 = vadd.f32 1.0, %v1283_v53  ;;  %v1236_v39 = vpop.f32.mrf.mxu1  ;;  %v1128_v52 = vmul.f32 -1.442695, %v1702_v33  ;;  %v1738_v53 = vadd.f32 %v1608_v34, %v455_v20 }
  0xf4   :  { %v1287_v0 = vpop.eup %1286  ;;  %1312 = vrcp.f32 %v764_v56  ;;  %v762_v1 = vadd.f32 1.0, %v1285_v58 }
  0xf5   :  { %v1289_v5 = vpop.eup %1288  ;;  %1314 = vrcp.f32 %v730_v59  ;;  %v733_v6 = vadd.f32 1.0, %v1287_v0  ;;  %v458_v59 = vpop.f32.mrf.mxu1 }
  0xf6   :  { %v1291_v8 = vpop.eup %1290  ;;  %1316 = vrcp.f32 %v762_v1  ;;  %v765_v11 = vadd.f32 1.0, %v1289_v5 }
  0xf7   :  { %v1293_v16 = vpop.eup %1292  ;;  %1318 = vrcp.f32 %v733_v6  ;;  %v731_v17 = vadd.f32 1.0, %v1291_v8  ;;  %v1099_v8 = vmul.f32 -1.442695, %v1729_v48 }
  0xf8   :  { %v1295_v21 = vpop.eup %1294  ;;  %1320 = vrcp.f32 %v765_v11  ;;  %v763_v22 = vadd.f32 1.0, %v1293_v16  ;;  %v1131_v16 = vmul.f32 -1.442695, %v1738_v53 }
  0xf9   :  { %v1297_v23 = vpop.eup %1296  ;;  %v920_v26 = vmul.f32 %v1295_v21, %v1611_v37  ;;  %1322 = vrcp.f32 %v731_v17  ;;  %v1774_v17 = vadd.f32 %v1608_v34, %v458_v59 }
  0xfa   :  { %v1299_v28 = vpop.eup %1298  ;;  %v952_v30 = vmul.f32 %v1297_v23, %v1614_v38  ;;  %1324 = vrcp.f32 %v763_v22  ;;  %v1711_v38 = vadd.f32 %v1203_v57, %v1608_v34 }
  0xfb   :  { %v1301_v35 = vpop.eup %1300  ;;  %985 = vst.msk [vmem:[%s2203_s3 + $0x10] sm:$0xff] %vm982_vm1, %v920_v26  ;;  %v918_v37 = vmul.f32 %v1299_v28, %v1619_v43  ;;  %1326 = vpow2.f32 %v1097_v18  ;;  %v1720_v43 = vadd.f32 %v1235_v63, %v1608_v34 }
  0xfc   :  { %v1303_v40 = vpop.eup %1302  ;;  %1017 = vst.msk [vmem:[%s2203_s3 + $0x110] sm:$0xff] %vm982_vm1, %v952_v30  ;;  %v950_v41 = vmul.f32 %v1301_v35, %v1622_v44  ;;  %1328 = vpow2.f32 %v1129_v24  ;;  %v1101_v58 = vmul.f32 -1.442695, %v1711_v38  ;;  %v1132_v30 = vmul.f32 -1.442695, %v1774_v17 }
  0xfd   :  { %v1305_v45 = vpop.eup %1304  ;;  %983 = vst.msk [vmem:[%s2203_s3] sm:$0xff] %vm982_vm1, %v918_v37  ;;  %v921_v46 = vmul.f32 %v1303_v40, %v1627_v49  ;;  %1330 = vpow2.f32 %v1095_v27  ;;  %v330_v49 = vpop.f32.mrf.mxu0  ;;  %v1133_v1 = vmul.f32 -1.442695, %v1720_v43 }
  0xfe   :  { %v1307_v44 = vpop.eup %1306  ;;  %1015 = vst.msk [vmem:[%s2203_s3 + $0x100] sm:$0xff] %vm982_vm1, %v950_v41  ;;  %v953_v51 = vmul.f32 %v1305_v45, %v1630_v50  ;;  %1332 = vpow2.f32 %v1127_v32  ;;  %v1747_v50 = vadd.f32 %v1204_v31, %v1608_v34  ;;  %v1765_v11 = vadd.f32 %v1608_v34, %v330_v49 }
  0xff   :  { %v1309_v56 = vpop.eup %1308  ;;  %986 = vst.msk [vmem:[%s2203_s3 + $0x18] sm:$0xff] %vm982_vm1, %v921_v46  ;;  %v919_v57 = vmul.f32 %v1307_v44, %v1634_v54  ;;  %1334 = vpow2.f32 %v1098_v36  ;;  %v1756_v54 = vadd.f32 %v1236_v39, %v1608_v34 }
 0x100   :  { %v1311_v63 = vpop.eup %1310  ;;  %1018 = vst.msk [vmem:[%s2203_s3 + $0x118] sm:$0xff] %vm982_vm1, %v953_v51  ;;  %v951_v0 = vmul.f32 %v1309_v56, %v1637_v55  ;;  %1336 = vpow2.f32 %v1130_v42  ;;  %v1102_v21 = vmul.f32 -1.442695, %v1747_v50  ;;  %v1100_v27 = vmul.f32 -1.442695, %v1765_v11 }
 0x101   :  { %v1313_v5 = vpop.eup %1312  ;;  %984 = vst.msk [vmem:[%s2203_s3 + $0x8] sm:$0xff] %vm982_vm1, %v919_v57  ;;  %v924_v6 = vmul.f32 %v1311_v63, %v1643_v61  ;;  %1338 = vpow2.f32 %v1096_v47  ;;  %v1776_v61 = vpop.f32.mrf.mxu0  ;;  %v1134_v23 = vmul.f32 -1.442695, %v1756_v54 }
 0x102   :  { %v1315_v55 = vpop.eup %1314  ;;  %1016 = vst.msk [vmem:[%s2203_s3 + $0x108] sm:$0xff] %vm982_vm1, %v951_v0  ;;  %v956_v13 = vmul.f32 %v1313_v5, %v1646_v62  ;;  %1340 = vpow2.f32 %v1128_v52  ;;  %v1784_v62 = vpop.f32.mrf.mxu1 }
 0x103   :  { %v1317_v18 = vpop.eup %1316  ;;  %989 = vst.msk [vmem:[%s2203_s3 + $0x30] sm:$0xff] %vm982_vm1, %v924_v6  ;;  %v922_v20 = vmul.f32 %v1315_v55, %v1650_v2  ;;  %1342 = vpow2.f32 %v1101_v58  ;;  %v343_v32 = vpop.f32.mrf.mxu0 }
 0x104   :  { %v1319_v22 = vpop.eup %1318  ;;  %1021 = vst.msk [vmem:[%s2203_s3 + $0x130] sm:$0xff] %vm982_vm1, %v956_v13  ;;  %v954_v24 = vmul.f32 %v1317_v18, %v1653_v3  ;;  %1344 = vpow2.f32 %v1133_v1  ;;  %v471_v35 = vpop.f32.mrf.mxu1  ;;  %v1824_v18 = vadd.f32 %v1776_v61, %v1608_v34 }
 0x105   :  { %v1321_v26 = vpop.eup %1320  ;;  %987 = vst.msk [vmem:[%s2203_s3 + $0x20] sm:$0xff] %vm982_vm1, %v922_v20  ;;  %v925_v2 = vmul.f32 %v1319_v22, %v1659_v9  ;;  %1346 = vpow2.f32 %v1099_v8  ;;  %v1208_v41 = vpop.f32.mrf.mxu0  ;;  %v1834_v61 = vadd.f32 %v1608_v34, %v471_v35 }
 0x106   :  { %v1323_v28 = vpop.eup %1322  ;;  %1019 = vst.msk [vmem:[%s2203_s3 + $0x120] sm:$0xff] %vm982_vm1, %v954_v24  ;;  %v957_v3 = vmul.f32 %v1321_v26, %v1662_v10  ;;  %1348 = vpow2.f32 %v1131_v16  ;;  %v1240_v45 = vpop.f32.mrf.mxu1  ;;  %v1828_v24 = vadd.f32 %v1784_v62, %v1608_v34  ;;  %v1838_v62 = vadd.f32 %v1208_v41, %v1608_v34 }
 0x107   :  { %v1325_v31 = vpop.eup %1324  ;;  %990 = vst.msk [vmem:[%s2203_s3 + $0x38] sm:$0xff] %vm982_vm1, %v925_v2  ;;  %v923_v9 = vmul.f32 %v1323_v28, %v1666_v14  ;;  %1350 = vpow2.f32 %v1102_v21  ;;  %v346_v56 = vpop.f32.mrf.mxu0  ;;  %v1831_v2 = vadd.f32 %v1608_v34, %v343_v32 }
 0x108   :  { %v1327_v37 = vpop.eup %1326  ;;  %1022 = vst.msk [vmem:[%s2203_s3 + $0x138] sm:$0xff] %vm982_vm1, %v957_v3  ;;  %v955_v10 = vmul.f32 %v1325_v31, %v1669_v15  ;;  %1352 = vpow2.f32 %v1134_v23  ;;  %v474_v59 = vpop.f32.mrf.mxu1 }
 0x109   :  { %v1329_v36 = vpop.eup %1328  ;;  %988 = vst.msk [vmem:[%s2203_s3 + $0x28] sm:$0xff] %vm982_vm1, %v923_v9  ;;  %v736_v39 = vadd.f32 1.0, %v1327_v37  ;;  %1354 = vpow2.f32 %v1100_v27  ;;  %v1211_v55 = vpop.f32.mrf.mxu0  ;;  %v1105_v9 = vmul.f32 -1.442695, %v1824_v18 }
 0x10a   :  { %v1331_v14 = vpop.eup %1330  ;;  %1020 = vst.msk [vmem:[%s2203_s3 + $0x128] sm:$0xff] %vm982_vm1, %v955_v10  ;;  %v768_v40 = vadd.f32 1.0, %v1329_v36  ;;  %1356 = vpow2.f32 %v1132_v30  ;;  %v1243_v20 = vpop.f32.mrf.mxu1  ;;  %v1137_v36 = vmul.f32 -1.442695, %v1828_v24 }
 0x10b   :  { %v1333_v42 = vpop.eup %1332  ;;  %1358 = vrcp.f32 %v736_v39  ;;  %v734_v15 = vadd.f32 1.0, %v1331_v14  ;;  %v359_v3 = vpop.f32.mrf.mxu0  ;;  %v1842_v39 = vadd.f32 %v1240_v45, %v1608_v34 }
 0x10c   :  { %v1335_v46 = vpop.eup %1334  ;;  %1360 = vrcp.f32 %v768_v40  ;;  %v766_v47 = vadd.f32 1.0, %v1333_v42  ;;  %v487_v37 = vpop.f32.mrf.mxu1  ;;  %v1103_v40 = vmul.f32 -1.442695, %v1831_v2  ;;  %v1847_v42 = vadd.f32 %v1608_v34, %v346_v56 }
 0x10d   :  { %v1337_v44 = vpop.eup %1336  ;;  %1362 = vrcp.f32 %v734_v15  ;;  %v737_v51 = vadd.f32 1.0, %v1335_v46  ;;  %v1135_v46 = vmul.f32 -1.442695, %v1834_v61  ;;  %v1212_v45 = vpop.f32.mrf.mxu0 }
 0x10e   :  { %v1339_v52 = vpop.eup %1338  ;;  %1364 = vrcp.f32 %v766_v47  ;;  %v769_v49 = vadd.f32 1.0, %v1337_v44  ;;  %v1852_v47 = vadd.f32 %v1608_v34, %v474_v59 }
 0x10f   :  { %v1341_v57 = vpop.eup %1340  ;;  %1366 = vrcp.f32 %v737_v51  ;;  %v735_v58 = vadd.f32 1.0, %v1339_v52  ;;  %v1106_v51 = vmul.f32 -1.442695, %v1838_v62  ;;  %v1244_v52 = vpop.f32.mrf.mxu1 }
 0x110   :  { %v1343_v63 = vpop.eup %1342  ;;  %1368 = vrcp.f32 %v769_v49  ;;  %v767_v0 = vadd.f32 1.0, %v1341_v57  ;;  %v1138_v57 = vmul.f32 -1.442695, %v1842_v39 }
 0x111   :  { %v1345_v1 = vpop.eup %1344  ;;  %1370 = vrcp.f32 %v735_v58  ;;  %v740_v5 = vadd.f32 1.0, %v1343_v63  ;;  %v1104_v63 = vmul.f32 -1.442695, %v1847_v42 }
 0x112   :  { %v1347_v6 = vpop.eup %1346  ;;  %1372 = vrcp.f32 %v767_v0  ;;  %v772_v8 = vadd.f32 1.0, %v1345_v1  ;;  %v1879_v0 = vadd.f32 %v1608_v34, %v359_v3 }
 0x113   :  { %v1349_v13 = vpop.eup %1348  ;;  %1374 = vrcp.f32 %v740_v5  ;;  %v738_v16 = vadd.f32 1.0, %v1347_v6  ;;  %v1136_v5 = vmul.f32 -1.442695, %v1852_v47  ;;  %v1888_v6 = vadd.f32 %v1608_v34, %v487_v37 }
 0x114   :  { %v1351_v21 = vpop.eup %1350  ;;  %1376 = vrcp.f32 %v772_v8  ;;  %v770_v22 = vadd.f32 1.0, %v1349_v13 }
 0x115   :  { %v1353_v23 = vpop.eup %1352  ;;  %1378 = vrcp.f32 %v738_v16  ;;  %v741_v26 = vadd.f32 1.0, %v1351_v21  ;;  %v490_v16 = vpop.f32.mrf.mxu1 }
 0x116   :  { %v1355_v27 = vpop.eup %1354  ;;  %1380 = vrcp.f32 %v770_v22  ;;  %v773_v28 = vadd.f32 1.0, %v1353_v23 }
 0x117   :  { %v1357_v30 = vpop.eup %1356  ;;  %1382 = vrcp.f32 %v741_v26  ;;  %v739_v31 = vadd.f32 1.0, %v1355_v27  ;;  %v1107_v27 = vmul.f32 -1.442695, %v1879_v0 }
 0x118   :  { %v1359_v10 = vpop.eup %1358  ;;  %1384 = vrcp.f32 %v773_v28  ;;  %v771_v32 = vadd.f32 1.0, %v1357_v30  ;;  %v1139_v30 = vmul.f32 -1.442695, %v1888_v6 }
 0x119   :  { %v1361_v35 = vpop.eup %1360  ;;  %v928_v14 = vmul.f32 %v1359_v10, %v1675_v60  ;;  %1386 = vrcp.f32 %v739_v31  ;;  %v1924_v31 = vadd.f32 %v1608_v34, %v490_v16 }
 0x11a   :  { %v1363_v41 = vpop.eup %1362  ;;  %v960_v15 = vmul.f32 %v1361_v35, %v1678_v4  ;;  %1388 = vrcp.f32 %v771_v32  ;;  %v1861_v4 = vadd.f32 %v1211_v55, %v1608_v34 }
 0x11b   :  { %v1365_v44 = vpop.eup %1364  ;;  %993 = vst.msk [vmem:[%s2203_s3 + $0x50] sm:$0xff] %vm982_vm1, %v928_v14  ;;  %v926_v60 = vmul.f32 %v1363_v41, %v1681_v7  ;;  %1390 = vpow2.f32 %v1105_v9  ;;  %v1870_v7 = vadd.f32 %v1243_v20, %v1608_v34 }
 0x11c   :  { %v1367_v49 = vpop.eup %1366  ;;  %1025 = vst.msk [vmem:[%s2203_s3 + $0x150] sm:$0xff] %vm982_vm1, %v960_v15  ;;  %v958_v56 = vmul.f32 %v1365_v44, %v1684_v12  ;;  %1392 = vpow2.f32 %v1137_v36  ;;  %v1109_v13 = vmul.f32 -1.442695, %v1861_v4  ;;  %v1140_v15 = vmul.f32 -1.442695, %v1924_v31 }
 0x11d   :  { %v1369_v58 = vpop.eup %1368  ;;  %991 = vst.msk [vmem:[%s2203_s3 + $0x40] sm:$0xff] %vm982_vm1, %v926_v60  ;;  %v929_v59 = vmul.f32 %v1367_v49, %v1688_v19  ;;  %1394 = vpow2.f32 %v1103_v40  ;;  %v362_v19 = vpop.f32.mrf.mxu0  ;;  %v1141_v22 = vmul.f32 -1.442695, %v1870_v7 }
 0x11e   :  { %v1371_v12 = vpop.eup %1370  ;;  %1023 = vst.msk [vmem:[%s2203_s3 + $0x140] sm:$0xff] %vm982_vm1, %v958_v56  ;;  %v961_v1 = vmul.f32 %v1369_v58, %v1692_v25  ;;  %1396 = vpow2.f32 %v1135_v46  ;;  %v1897_v25 = vadd.f32 %v1212_v45, %v1608_v34  ;;  %v1915_v28 = vadd.f32 %v1608_v34, %v362_v19 }
 0x11f   :  { %v1373_v8 = vpop.eup %1372  ;;  %994 = vst.msk [vmem:[%s2203_s3 + $0x58] sm:$0xff] %vm982_vm1, %v929_v59  ;;  %v927_v55 = vmul.f32 %v1371_v12, %v1697_v29  ;;  %1398 = vpow2.f32 %v1106_v51  ;;  %v1906_v29 = vadd.f32 %v1244_v52, %v1608_v34 }
 0x120   :  { %v1375_v20 = vpop.eup %1374  ;;  %1026 = vst.msk [vmem:[%s2203_s3 + $0x158] sm:$0xff] %vm982_vm1, %v961_v1  ;;  %v959_v21 = vmul.f32 %v1373_v8, %v1702_v33  ;;  %1400 = vpow2.f32 %v1138_v57  ;;  %v1110_v10 = vmul.f32 -1.442695, %v1897_v25  ;;  %v1108_v40 = vmul.f32 -1.442695, %v1915_v28 }
 0x121   :  { %v1377_v23 = vpop.eup %1376  ;;  %992 = vst.msk [vmem:[%s2203_s3 + $0x48] sm:$0xff] %vm982_vm1, %v927_v55  ;;  %v932_v26 = vmul.f32 %v1375_v20, %v1711_v38  ;;  %1402 = vpow2.f32 %v1104_v63  ;;  %v1926_v38 = vpop.f32.mrf.mxu0  ;;  %v1142_v35 = vmul.f32 -1.442695, %v1906_v29 }
 0x122   :  { %v1379_v33 = vpop.eup %1378  ;;  %1024 = vst.msk [vmem:[%s2203_s3 + $0x148] sm:$0xff] %vm982_vm1, %v959_v21  ;;  %v964_v3 = vmul.f32 %v1377_v23, %v1720_v43  ;;  %1404 = vpow2.f32 %v1136_v5  ;;  %v1934_v43 = vpop.f32.mrf.mxu1 }
 0x123   :  { %v1381_v9 = vpop.eup %1380  ;;  %997 = vst.msk [vmem:[%s2203_s3 + $0x70] sm:$0xff] %vm982_vm1, %v932_v26  ;;  %v930_v37 = vmul.f32 %v1379_v33, %v1729_v48  ;;  %1406 = vpow2.f32 %v1109_v13  ;;  %v375_v46 = vpop.f32.mrf.mxu0 }
 0x124   :  { %v1383_v32 = vpop.eup %1382  ;;  %1029 = vst.msk [vmem:[%s2203_s3 + $0x170] sm:$0xff] %vm982_vm1, %v964_v3  ;;  %v962_v36 = vmul.f32 %v1381_v9, %v1738_v53  ;;  %1408 = vpow2.f32 %v1141_v22  ;;  %v503_v44 = vpop.f32.mrf.mxu1  ;;  %v1974_v9 = vadd.f32 %v1926_v38, %v1608_v34 }
 0x125   :  { %v1385_v14 = vpop.eup %1384  ;;  %995 = vst.msk [vmem:[%s2203_s3 + $0x60] sm:$0xff] %vm982_vm1, %v930_v37  ;;  %v933_v48 = vmul.f32 %v1383_v32, %v1747_v50  ;;  %1410 = vpow2.f32 %v1107_v27  ;;  %v1216_v56 = vpop.f32.mrf.mxu0  ;;  %v1984_v38 = vadd.f32 %v1608_v34, %v503_v44 }
 0x126   :  { %v1387_v41 = vpop.eup %1386  ;;  %1027 = vst.msk [vmem:[%s2203_s3 + $0x160] sm:$0xff] %vm982_vm1, %v962_v36  ;;  %v965_v53 = vmul.f32 %v1385_v14, %v1756_v54  ;;  %1412 = vpow2.f32 %v1139_v30  ;;  %v1248_v58 = vpop.f32.mrf.mxu1  ;;  %v1978_v36 = vadd.f32 %v1934_v43, %v1608_v34  ;;  %v1988_v43 = vadd.f32 %v1216_v56, %v1608_v34 }
 0x127   :  { %v1389_v45 = vpop.eup %1388  ;;  %998 = vst.msk [vmem:[%s2203_s3 + $0x78] sm:$0xff] %vm982_vm1, %v933_v48  ;;  %v931_v50 = vmul.f32 %v1387_v41, %v1765_v11  ;;  %1414 = vpow2.f32 %v1110_v10  ;;  %v378_v8 = vpop.f32.mrf.mxu0  ;;  %v1981_v48 = vadd.f32 %v1608_v34, %v375_v46 }
 0x128   :  { %v1391_v60 = vpop.eup %1390  ;;  %1030 = vst.msk [vmem:[%s2203_s3 + $0x178] sm:$0xff] %vm982_vm1, %v965_v53  ;;  %v963_v54 = vmul.f32 %v1389_v45, %v1774_v17  ;;  %1416 = vpow2.f32 %v1142_v35  ;;  %v506_v16 = vpop.f32.mrf.mxu1 }
 0x129   :  { %v1393_v51 = vpop.eup %1392  ;;  %996 = vst.msk [vmem:[%s2203_s3 + $0x68] sm:$0xff] %vm982_vm1, %v931_v50  ;;  %v744_v52 = vadd.f32 1.0, %v1391_v60  ;;  %1418 = vpow2.f32 %v1108_v40  ;;  %v1219_v33 = vpop.f32.mrf.mxu0  ;;  %v1113_v50 = vmul.f32 -1.442695, %v1974_v9 }
 0x12a   :  { %v1395_v11 = vpop.eup %1394  ;;  %1028 = vst.msk [vmem:[%s2203_s3 + $0x168] sm:$0xff] %vm982_vm1, %v963_v54  ;;  %v776_v49 = vadd.f32 1.0, %v1393_v51  ;;  %1420 = vpow2.f32 %v1140_v15  ;;  %v1251_v37 = vpop.f32.mrf.mxu1  ;;  %v1145_v51 = vmul.f32 -1.442695, %v1978_v36 }
 0x12b   :  { %v1397_v57 = vpop.eup %1396  ;;  %1422 = vrcp.f32 %v744_v52  ;;  %v742_v17 = vadd.f32 1.0, %v1395_v11  ;;  %v391_v53 = vpop.f32.mrf.mxu0  ;;  %v1992_v52 = vadd.f32 %v1248_v58, %v1608_v34 }
 0x12c   :  { %v1399_v59 = vpop.eup %1398  ;;  %1424 = vrcp.f32 %v776_v49  ;;  %v774_v63 = vadd.f32 1.0, %v1397_v57  ;;  %v519_v60 = vpop.f32.mrf.mxu1  ;;  %v1111_v49 = vmul.f32 -1.442695, %v1981_v48  ;;  %v1997_v57 = vadd.f32 %v1608_v34, %v378_v8 }
 0x12d   :  { %v1401_v12 = vpop.eup %1400  ;;  %1426 = vrcp.f32 %v742_v17  ;;  %v745_v1 = vadd.f32 1.0, %v1399_v59  ;;  %v1143_v59 = vmul.f32 -1.442695, %v1984_v38  ;;  %v1220_v58 = vpop.f32.mrf.mxu0 }
 0x12e   :  { %v1403_v5 = vpop.eup %1402  ;;  %1428 = vrcp.f32 %v774_v63  ;;  %v777_v19 = vadd.f32 1.0, %v1401_v12  ;;  %v2002_v63 = vadd.f32 %v1608_v34, %v506_v16 }
 0x12f   :  { %v1405_v55 = vpop.eup %1404  ;;  %1430 = vrcp.f32 %v745_v1  ;;  %v743_v13 = vadd.f32 1.0, %v1403_v5  ;;  %v1114_v1 = vmul.f32 -1.442695, %v1988_v43  ;;  %v1252_v5 = vpop.f32.mrf.mxu1 }
 0x130   :  { %v1407_v20 = vpop.eup %1406  ;;  %1432 = vrcp.f32 %v777_v19  ;;  %v775_v21 = vadd.f32 1.0, %v1405_v55  ;;  %v1146_v55 = vmul.f32 -1.442695, %v1992_v52 }
 0x131   :  { %v1409_v22 = vpop.eup %1408  ;;  %1434 = vrcp.f32 %v743_v13  ;;  %v748_v23 = vadd.f32 1.0, %v1407_v20  ;;  %v1112_v20 = vmul.f32 -1.442695, %v1997_v57 }
 0x132   :  { %v1411_v26 = vpop.eup %1410  ;;  %1436 = vrcp.f32 %v775_v21  ;;  %v780_v27 = vadd.f32 1.0, %v1409_v22  ;;  %v2029_v21 = vadd.f32 %v1608_v34, %v391_v53 }
 0x133   :  { %v1413_v3 = vpop.eup %1412  ;;  %1438 = vrcp.f32 %v748_v23  ;;  %v746_v30 = vadd.f32 1.0, %v1411_v26  ;;  %v1144_v23 = vmul.f32 -1.442695, %v2002_v63  ;;  %v2038_v26 = vadd.f32 %v1608_v34, %v519_v60 }
 0x134   :  { %v1415_v10 = vpop.eup %1414  ;;  %1440 = vrcp.f32 %v780_v27  ;;  %v778_v32 = vadd.f32 1.0, %v1413_v3 }
 0x135   :  { %v1417_v35 = vpop.eup %1416  ;;  %1442 = vrcp.f32 %v746_v30  ;;  %v749_v14 = vadd.f32 1.0, %v1415_v10  ;;  %v522_v30 = vpop.f32.mrf.mxu1 }
 0x136   :  { %v1419_v40 = vpop.eup %1418  ;;  %1444 = vrcp.f32 %v778_v32  ;;  %v781_v41 = vadd.f32 1.0, %v1417_v35 }
 0x137   :  { %v1421_v15 = vpop.eup %1420  ;;  %1446 = vrcp.f32 %v749_v14  ;;  %v747_v45 = vadd.f32 1.0, %v1419_v40  ;;  %v1115_v40 = vmul.f32 -1.442695, %v2029_v21 }
 0x138   :  { %v1423_v54 = vpop.eup %1422  ;;  %1448 = vrcp.f32 %v781_v41  ;;  %v779_v46 = vadd.f32 1.0, %v1421_v15  ;;  %v1147_v15 = vmul.f32 -1.442695, %v2038_v26 }
 0x139   :  { %v1425_v44 = vpop.eup %1424  ;;  %v936_v11 = vmul.f32 %v1423_v54, %v1824_v18  ;;  %1450 = vrcp.f32 %v747_v45 }
 0x13a   :  { %v1427_v56 = vpop.eup %1426  ;;  %v968_v17 = vmul.f32 %v1425_v44, %v1828_v24  ;;  %1452 = vrcp.f32 %v779_v46  ;;  %v2011_v24 = vadd.f32 %v1219_v33, %v1608_v34 }
 0x13b   :  { %v1429_v12 = vpop.eup %1428  ;;  %1001 = vst.msk [vmem:[%s2203_s3 + $0x90] sm:$0xff] %vm982_vm1, %v936_v11  ;;  %v934_v18 = vmul.f32 %v1427_v56, %v1831_v2  ;;  %1454 = vpow2.f32 %v1113_v50  ;;  %v2020_v2 = vadd.f32 %v1251_v37, %v1608_v34 }
 0x13c   :  { %v1431_v19 = vpop.eup %1430  ;;  %1033 = vst.msk [vmem:[%s2203_s3 + $0x190] sm:$0xff] %vm982_vm1, %v968_v17  ;;  %v966_v8 = vmul.f32 %v1429_v12, %v1834_v61  ;;  %1456 = vpow2.f32 %v1145_v51  ;;  %v1117_v3 = vmul.f32 -1.442695, %v2011_v24 }
 0x13d   :  { %v1433_v13 = vpop.eup %1432  ;;  %999 = vst.msk [vmem:[%s2203_s3 + $0x80] sm:$0xff] %vm982_vm1, %v934_v18  ;;  %v937_v16 = vmul.f32 %v1431_v19, %v1838_v62  ;;  %1458 = vpow2.f32 %v1111_v49  ;;  %v394_v62 = vpop.f32.mrf.mxu0  ;;  %v1149_v32 = vmul.f32 -1.442695, %v2020_v2 }
 0x13e   :  { %v1435_v61 = vpop.eup %1434  ;;  %1031 = vst.msk [vmem:[%s2203_s3 + $0x180] sm:$0xff] %vm982_vm1, %v966_v8  ;;  %v969_v22 = vmul.f32 %v1433_v13, %v1842_v39  ;;  %1460 = vpow2.f32 %v1143_v59  ;;  %v2047_v39 = vadd.f32 %v1220_v58, %v1608_v34  ;;  %v2065_v41 = vadd.f32 %v1608_v34, %v394_v62 }
 0x13f   :  { %v1437_v27 = vpop.eup %1436  ;;  %1002 = vst.msk [vmem:[%s2203_s3 + $0x98] sm:$0xff] %vm982_vm1, %v937_v16  ;;  %v935_v33 = vmul.f32 %v1435_v61, %v1847_v42  ;;  %1462 = vpow2.f32 %v1114_v1  ;;  %v2056_v42 = vadd.f32 %v1252_v5, %v1608_v34 }
 0x140   :  { %v1439_v37 = vpop.eup %1438  ;;  %1034 = vst.msk [vmem:[%s2203_s3 + $0x198] sm:$0xff] %vm982_vm1, %v969_v22  ;;  %v967_v10 = vmul.f32 %v1437_v27, %v1852_v47  ;;  %1464 = vpow2.f32 %v1146_v55  ;;  %v1116_v44 = vmul.f32 -1.442695, %v2065_v41 }
 0x141   :  { %v1441_v35 = vpop.eup %1440  ;;  %1000 = vst.msk [vmem:[%s2203_s3 + $0x88] sm:$0xff] %vm982_vm1, %v935_v33  ;;  %v940_v14 = vmul.f32 %v1439_v37, %v1861_v4  ;;  %1466 = vpow2.f32 %v1112_v20  ;;  %v1518_v4 = vld [vmem:[%s2202_s2] ss:$0 sm:$0xff]  ;;  %v1150_v46 = vmul.f32 -1.442695, %v2056_v42 }
 0x142   :  { %v1443_v47 = vpop.eup %1442  ;;  %1032 = vst.msk [vmem:[%s2203_s3 + $0x188] sm:$0xff] %vm982_vm1, %v967_v10  ;;  %v972_v53 = vmul.f32 %v1441_v35, %v1870_v7  ;;  %1468 = vpow2.f32 %v1144_v23  ;;  %v2076_v45 = vadd.f32 %v1518_v4, %v522_v30  ;;  %v1118_v7 = vmul.f32 -1.442695, %v2047_v39 }
 0x143   :  { %v1445_v50 = vpop.eup %1444  ;;  %1005 = vst.msk [vmem:[%s2203_s3 + $0xb0] sm:$0xff] %vm982_vm1, %v940_v14  ;;  %v938_v34 = vmul.f32 %v1443_v47, %v1879_v0  ;;  %1470 = vpow2.f32 %v1117_v3 }
 0x144   :  { %v1447_v60 = vpop.eup %1446  ;;  %1037 = vst.msk [vmem:[%s2203_s3 + $0x1b0] sm:$0xff] %vm982_vm1, %v972_v53  ;;  %v970_v54 = vmul.f32 %v1445_v50, %v1888_v6  ;;  %1472 = vpow2.f32 %v1149_v32  ;;  %v1148_v49 = vmul.f32 -1.442695, %v2076_v45 }
 0x145   :  { %v1449_v51 = vpop.eup %1448  ;;  %1003 = vst.msk [vmem:[%s2203_s3 + $0xa0] sm:$0xff] %vm982_vm1, %v938_v34  ;;  %v941_v0 = vmul.f32 %v1447_v60, %v1897_v25  ;;  %1474 = vpow2.f32 %v1115_v40 }
 0x146   :  { %v1451_v11 = vpop.eup %1450  ;;  %1035 = vst.msk [vmem:[%s2203_s3 + $0x1a0] sm:$0xff] %vm982_vm1, %v970_v54  ;;  %v973_v6 = vmul.f32 %v1449_v51, %v1906_v29  ;;  %1476 = vpow2.f32 %v1147_v15 }
 0x147   :  { %v1453_v56 = vpop.eup %1452  ;;  %1006 = vst.msk [vmem:[%s2203_s3 + $0xb8] sm:$0xff] %vm982_vm1, %v941_v0  ;;  %v939_v25 = vmul.f32 %v1451_v11, %v1915_v28  ;;  %1478 = vpow2.f32 %v1118_v7 }
 0x148   :  { %v1455_v17 = vpop.eup %1454  ;;  %1038 = vst.msk [vmem:[%s2203_s3 + $0x1b8] sm:$0xff] %vm982_vm1, %v973_v6  ;;  %v971_v29 = vmul.f32 %v1453_v56, %v1924_v31  ;;  %1480 = vpow2.f32 %v1150_v46 }
 0x149   :  { %v1457_v59 = vpop.eup %1456  ;;  %1004 = vst.msk [vmem:[%s2203_s3 + $0xa8] sm:$0xff] %vm982_vm1, %v939_v25  ;;  %v752_v58 = vadd.f32 1.0, %v1455_v17  ;;  %1482 = vpow2.f32 %v1116_v44 }
 0x14a   :  { %v1459_v12 = vpop.eup %1458  ;;  %1036 = vst.msk [vmem:[%s2203_s3 + $0x1a8] sm:$0xff] %vm982_vm1, %v971_v29  ;;  %v784_v28 = vadd.f32 1.0, %v1457_v59  ;;  %1484 = vpow2.f32 %v1148_v49 }
 0x14b   :  { %v1461_v18 = vpop.eup %1460  ;;  %1486 = vrcp.f32 %v752_v58  ;;  %v750_v31 = vadd.f32 1.0, %v1459_v12 }
 0x14c   :  { %v1463_v1 = vpop.eup %1462  ;;  %1488 = vrcp.f32 %v784_v28  ;;  %v782_v5 = vadd.f32 1.0, %v1461_v18 }
 0x14d   :  { %v1465_v19 = vpop.eup %1464  ;;  %1490 = vrcp.f32 %v750_v31  ;;  %v753_v8 = vadd.f32 1.0, %v1463_v1 }
 0x14e   :  { %v1467_v55 = vpop.eup %1466  ;;  %1492 = vrcp.f32 %v782_v5  ;;  %v785_v13 = vadd.f32 1.0, %v1465_v19 }
 0x14f   :  { %v1469_v16 = vpop.eup %1468  ;;  %1494 = vrcp.f32 %v753_v8  ;;  %v751_v20 = vadd.f32 1.0, %v1467_v55 }
 0x150   :  { %v1471_v61 = vpop.eup %1470  ;;  %1496 = vrcp.f32 %v785_v13  ;;  %v783_v22 = vadd.f32 1.0, %v1469_v16 }
 0x151   :  { %v1473_v23 = vpop.eup %1472  ;;  %1498 = vrcp.f32 %v751_v20  ;;  %v756_v62 = vadd.f32 1.0, %v1471_v61 }
 0x152   :  { %v1475_v27 = vpop.eup %1474  ;;  %1500 = vrcp.f32 %v783_v22  ;;  %v788_v33 = vadd.f32 1.0, %v1473_v23 }
 0x153   :  { %v1477_v3 = vpop.eup %1476  ;;  %1502 = vrcp.f32 %v756_v62  ;;  %v754_v30 = vadd.f32 1.0, %v1475_v27 }
 0x154   :  { %v1479_v37 = vpop.eup %1478  ;;  %1504 = vrcp.f32 %v788_v33  ;;  %v786_v10 = vadd.f32 1.0, %v1477_v3 }
 0x155   :  { %v1481_v32 = vpop.eup %1480  ;;  %1506 = vrcp.f32 %v754_v30  ;;  %v757_v35 = vadd.f32 1.0, %v1479_v37 }
 0x156   :  { %v1483_v14 = vpop.eup %1482  ;;  %1508 = vrcp.f32 %v786_v10  ;;  %v789_v40 = vadd.f32 1.0, %v1481_v32 }
 0x157   :  { %v1485_v47 = vpop.eup %1484  ;;  %1510 = vrcp.f32 %v757_v35  ;;  %v755_v53 = vadd.f32 1.0, %v1483_v14 }
 0x158   :  { %v1487_v15 = vpop.eup %1486  ;;  %1512 = vrcp.f32 %v789_v40  ;;  %v787_v4 = vadd.f32 1.0, %v1485_v47 }
 0x159   :  { %v1489_v50 = vpop.eup %1488  ;;  %v944_v34 = vmul.f32 %v1487_v15, %v1974_v9  ;;  %1514 = vrcp.f32 %v755_v53 }
 0x15a   :  { %v1491_v7 = vpop.eup %1490  ;;  %v976_v60 = vmul.f32 %v1489_v50, %v1978_v36  ;;  %1516 = vrcp.f32 %v787_v4 }
 0x15b   :  { %v1493_v54 = vpop.eup %1492  ;;  %1009 = vst.msk [vmem:[%s2203_s3 + $0xd0] sm:$0xff] %vm982_vm1, %v944_v34  ;;  %v942_v46 = vmul.f32 %v1491_v7, %v1981_v48 }
 0x15c   :  { %v1495_v51 = vpop.eup %1494  ;;  %1041 = vst.msk [vmem:[%s2203_s3 + $0x1d0] sm:$0xff] %vm982_vm1, %v976_v60  ;;  %v974_v9 = vmul.f32 %v1493_v54, %v1984_v38 }
 0x15d   :  { %v1497_v0 = vpop.eup %1496  ;;  %1007 = vst.msk [vmem:[%s2203_s3 + $0xc0] sm:$0xff] %vm982_vm1, %v942_v46  ;;  %v945_v36 = vmul.f32 %v1495_v51, %v1988_v43 }
 0x15e   :  { %v1499_v44 = vpop.eup %1498  ;;  %1039 = vst.msk [vmem:[%s2203_s3 + $0x1c0] sm:$0xff] %vm982_vm1, %v974_v9  ;;  %v977_v48 = vmul.f32 %v1497_v0, %v1992_v52 }
 0x15f   :  { %v1501_v11 = vpop.eup %1500  ;;  %1010 = vst.msk [vmem:[%s2203_s3 + $0xd8] sm:$0xff] %vm982_vm1, %v945_v36  ;;  %v943_v38 = vmul.f32 %v1499_v44, %v1997_v57 }
 0x160   :  { %v1503_v6 = vpop.eup %1502  ;;  %1042 = vst.msk [vmem:[%s2203_s3 + $0x1d8] sm:$0xff] %vm982_vm1, %v977_v48  ;;  %v975_v43 = vmul.f32 %v1501_v11, %v2002_v63 }
 0x161   :  { %v1505_v49 = vpop.eup %1504  ;;  %1008 = vst.msk [vmem:[%s2203_s3 + $0xc8] sm:$0xff] %vm982_vm1, %v943_v38  ;;  %v948_v52 = vmul.f32 %v1503_v6, %v2011_v24 }
 0x162   :  { %v1507_v56 = vpop.eup %1506  ;;  %1040 = vst.msk [vmem:[%s2203_s3 + $0x1c8] sm:$0xff] %vm982_vm1, %v975_v43  ;;  %v980_v57 = vmul.f32 %v1505_v49, %v2020_v2 }
 0x163   :  { %v1509_v25 = vpop.eup %1508  ;;  %1013 = vst.msk [vmem:[%s2203_s3 + $0xf0] sm:$0xff] %vm982_vm1, %v948_v52  ;;  %v946_v63 = vmul.f32 %v1507_v56, %v2029_v21 }
 0x164   :  { %v1511_v17 = vpop.eup %1510  ;;  %1045 = vst.msk [vmem:[%s2203_s3 + $0x1f0] sm:$0xff] %vm982_vm1, %v980_v57  ;;  %v978_v24 = vmul.f32 %v1509_v25, %v2038_v26 }
 0x165   :  { %v1513_v29 = vpop.eup %1512  ;;  %1011 = vst.msk [vmem:[%s2203_s3 + $0xe0] sm:$0xff] %vm982_vm1, %v946_v63  ;;  %v949_v2 = vmul.f32 %v1511_v17, %v2047_v39 }
 0x166   :  { %v1515_v59 = vpop.eup %1514  ;;  %1043 = vst.msk [vmem:[%s2203_s3 + $0x1e0] sm:$0xff] %vm982_vm1, %v978_v24  ;;  %v981_v21 = vmul.f32 %v1513_v29, %v2056_v42 }
 0x167   :  { %v1517_v58 = vpop.eup %1516  ;;  %1014 = vst.msk [vmem:[%s2203_s3 + $0xf8] sm:$0xff] %vm982_vm1, %v949_v2  ;;  %v947_v26 = vmul.f32 %v1515_v59, %v2065_v41 }
 0x168   :  { %1046 = vst.msk [vmem:[%s2203_s3 + $0x1f8] sm:$0xff] %vm982_vm1, %v981_v21  ;;  %v979_v39 = vmul.f32 %v1517_v58, %v2076_v45 }
 0x169   :  { %1012 = vst.msk [vmem:[%s2203_s3 + $0xe8] sm:$0xff] %vm982_vm1, %v947_v26 }
 0x16a   :  { %1044 = vst.msk [vmem:[%s2203_s3 + $0x1e8] sm:$0xff] %vm982_vm1, %v979_v39 }
 0x16b   :  { %1051 = vsyncpa [#allocation3], 1 }

// kernel: spp_forward.3
= control target key start
LH: loop header
LB: loop body
LE: loop exit
PB: predicated region body
PF: predicated region fallthrough
CT: control target
= control target key end

     0   :  { %8 = vsyncpa [#allocation3], 0  ;;  %s7479_s0 = inlined_call_operand.vmem [shape: f32[2,16,16,16], index: 0, kind: input, shape index: {}]   ;;  %s7480_s1 = inlined_call_operand.vmem [shape: bf16[4,16,32], index: 1, kind: input, shape index: {}]   ;;  %s7481_s2 = inlined_call_operand.vmem [shape: f32[1,32], index: 2, kind: input, shape index: {}]   ;;  %s7482_s3 = inlined_call_operand.hbm [shape: f32[2,256,32], index: 3, kind: output, shape index: {}]  }
   0x1   :  { %10 = vsyncpa [#allocation3 + $0x1], 0  ;;  %s4788_s12 = smov 0   ;;  %s4790_s13 = smov 0  }
   0x2   :  { %s4792_s14 = smov 0   ;;  %s4794_s15 = smov 0  }
   0x3 LB: > { %s4809_s16 = sadd.s32 4294967295, %s4763_s15   ;;  %s4201_s17 = sadd.s32 4294967294, %s4763_s15   ;;  %s4763_s15 = sphi %s4794_s15, %s7757_s15   ;;  %s4759_s14 = sphi %s4792_s14, %s7756_s14   ;;  %s4755_s13 = sphi %s4790_s13, %s7755_s13   ;;  %s4751_s12 = sphi %s4788_s12, %s7754_s12  }
   0x4   : > { %s4813_s18 = sadd.s32 1, %s4763_s15   ;;  %s91_s19 = sadd.s32 1, %s4759_s14 }
   0x5   : > { %s88_s20 = ssub.s32 %s4763_s15, %s4813_s18  ;;  %p101_p0 = scmp.ne.s32.totalorder %s4759_s14, %s4755_s13 }
   0x6   : > { %p89_p1 = scmp.eq.s32.totalorder %s88_s20, 0  ;;  %p102_p2 = scmp.eq.s32.totalorder %s4809_s16, 1 }
   0x7   : > { %p107_p3 = scmp.ne.s32.totalorder %s4755_s13, %s4751_s12  ;;  %p108_p4 = scmp.eq.s32.totalorder %s4201_s17, 1 }
   0x8   : > { %s4824_s21 = scalar_select %p89_p1, %s4759_s14, %s91_s19  }
   0x9   : > { %p4826_p5 = por %p102_p2, %p101_p0  ;;  %p4830_p6 = por %p108_p4, %p107_p3 }
   0xa   : > { %p4204_p7 = scmp.ge.s32.totalorder %s4763_s15, 1  ;;  %p140_p8 = scmp.lt.s32.totalorder %s4763_s15, 3 }
   0xc   : > { %p141_p9 = pnand %p4204_p7, %p140_p8 }
   0xe   : > { %144 = sbr.rel (%p141_p9) target bundleno = 784 (0x310), region = 32 }
  0x13   : > { %v4567_v0 = vld [vmem:[%s7480_s1] sm:$0xff]   ;;  %p164_p10 = scmp.lt.s32.totalorder %s4809_s16, 1  ;;  %v4568_v1 = vld [vmem:[%s7480_s1 + $0x8] sm:$0xff]   ;;  %v4847_v2 = vld [vmem:[%s7480_s1 + $0x10] sm:$0xff]   ;;  %vm2872_vm0 = vcmask 130048   ;;  %vm340_vm1 = vcmask 1041408  }
  0x14   : > { %4424 = vmatprep.subr.bf16.mxu1 %v4567_v0  ;;  %7528 = vst [vmem:[#allocation5_spill] sm:$0xff] %v4847_v2  ;;  %4390 = vmatprep.subr.bf16.mxu0 %v4568_v1  ;;  %v4570_v3 = vld [vmem:[%s7480_s1 + $0x18] sm:$0xff]   ;;  %vm501_vm2 = vcmask 1046528   ;;  %vm646_vm3 = vcmask 1045504   ;;  %vm791_vm4 = vcmask 1044480   ;;  %vm936_vm5 = vcmask 1043456  }
  0x15   : > { %s165_s28 = scalar_select %p164_p10, %s4809_s16, 1  ;;  %4425 = vmatpush3.bf16.msra.mxu1 %v4567_v0  ;;  %4391 = vmatpush3.bf16.msra.mxu0 %v4568_v1  ;;  %vm4092_vm6 = vcmask 261120  }
  0x16   : > { %4458 = vmatprep.subr.bf16.mxu0 %v4847_v2  ;;  %4492 = vmatprep.subr.bf16.mxu1 %v4570_v3  ;;  %s161_s17 = sand.u32 1, %s4755_s13   ;;  %s4321_s24 = sshll.u32 %s4809_s16, 12 }
  0x17   : > { %s4320_s6 = sshll.u32 %s165_s28, 8  ;;  %s4205_s19 = sshll.u32 %s161_s17, 8 }
  0x18   : > { %s4855_s9 = scalar_lea.vmem %s7479_s0, %s4320_s6  ;;  %s7239_s20 = scalar_lea.vmem [#allocation2], %s4205_s19 }
  0x19   : > { %v170_v4 = vld [vmem:[%s4855_s9] sm:$0xff]  ;;  %v171_v5 = vld [vmem:[%s4855_s9 + $0x8] sm:$0xff]  ;;  %v172_v6 = vld [vmem:[%s4855_s9 + $0x10] sm:$0xff]  ;;  %s4139_s25 = sshll.u32 %s7239_s20, 4  ;;  %s7429_s28 = scalar_lea.hbm %s7482_s3, %s4321_s24  ;;  %s7431_s25 = int_to_ptr.vmem [resolvable:$true] %s4139_s25 }
  0x1a   : > { %v173_v7 = vld [vmem:[%s4855_s9 + $0x18] sm:$0xff]  ;;  %v4863_v8 = vld [vmem:[%s4855_s9 + $0x20] sm:$0xff]  ;;  %v4866_v9 = vld [vmem:[%s4855_s9 + $0x28] sm:$0xff]  ;;  %v202_v10 = vmax.f32 %v170_v4, %v172_v6  ;;  %v2829_v11 = vpack.c.bf16 %v171_v5, %v170_v4  ;;  %s7439_s16 = scalar_lea.sflag [#allocation3], %s161_s17  ;;  %s4703_s29 = scalar_lea.vmem %s7431_s25, 4096 }
  0x1b   : > { %v4869_v12 = vld [vmem:[%s4855_s9 + $0x30] sm:$0xff]  ;;  %v4872_v13 = vld [vmem:[%s4855_s9 + $0x38] sm:$0xff]  ;;  %v4875_v14 = vld [vmem:[%s4855_s9 + $0x40] sm:$0xff]  ;;  %v203_v15 = vmax.f32 %v171_v5, %v173_v7  ;;  %v204_v16 = vmax.f32 %v172_v6, %v4863_v8  ;;  %v205_v17 = vmax.f32 %v173_v7, %v4866_v9  ;;  %v2830_v18 = vpack.c.bf16 %v173_v7, %v172_v6  ;;  %p4704_p11 = scmp.ne.s32.totalorder %s7431_s25, %s4703_s29  ;;  %s4765_s30 = smov [#allocation2]  }
  0x1c   : > { %v4880_v19 = vld [vmem:[%s4855_s9 + $0x48] sm:$0xff]  ;;  %v4883_v20 = vld [vmem:[%s4855_s9 + $0x50] sm:$0xff]  ;;  %v4886_v21 = vld [vmem:[%s4855_s9 + $0x58] sm:$0xff]  ;;  %v206_v22 = vmax.f32 %v4863_v8, %v4869_v12  ;;  %v207_v23 = vmax.f32 %v4866_v9, %v4872_v13  ;;  %v208_v24 = vmax.f32 %v4869_v12, %v4875_v14  ;;  %v4895_v25 = vmax.f32 %v202_v10, %v4863_v8  ;;  %4426 = vmatprep.mubr.msk.bf16.mxu1 %vm2872_vm0, %v2829_v11  ;;  %s4707_s4 = sshll.u32 %s4765_s30, 4  ;;  %s4708_s4 = int_to_ptr.vmem [resolvable:$false] %s4707_s4 }
  0x1d   : > { %v4899_v26 = vld [vmem:[%s4855_s9 + $0x60] sm:$0xff]  ;;  %v4902_v27 = vld [vmem:[%s4855_s9 + $0x68] sm:$0xff]  ;;  %v4905_v28 = vld [vmem:[%s4855_s9 + $0x70] sm:$0xff]  ;;  %v209_v29 = vmax.f32 %v4872_v13, %v4880_v19  ;;  %v210_v30 = vmax.f32 %v4875_v14, %v4883_v20  ;;  %v211_v31 = vmax.f32 %v4880_v19, %v4886_v21  ;;  %v4914_v32 = vmax.f32 %v203_v15, %v4866_v9  ;;  %4427 = vmatmul.mubr.msk.bf16.vlgmr.msra.gmra.mxu1 %vm2872_vm0, %v2830_v18  ;;  %p4705_p12 = pnand %p4704_p11, %p4826_p5  ;;  %s4709_s5 = scalar_lea.vmem %s4708_s4, 8192 }
  0x1e   : > { %7529 = vst [vmem:[#allocation6_spill] sm:$0xff] %v4902_v27  ;;  %7530 = vst [vmem:[#allocation7_spill] sm:$0xff] %v4905_v28  ;;  %v4918_v33 = vld [vmem:[%s4855_s9 + $0x78] sm:$0xff]  ;;  %v4921_v34 = vld [vmem:[%s4855_s9 + $0x80] sm:$0xff]  ;;  %v212_v35 = vmax.f32 %v4883_v20, %v4899_v26  ;;  %v213_v36 = vmax.f32 %v4886_v21, %v4902_v27  ;;  %v214_v37 = vmax.f32 %v4899_v26, %v4905_v28  ;;  %4493 = vmatpush3.bf16.msra.mxu1 %v4570_v3  ;;  %p4710_p0 = scmp.lt.s32.totalorder %s7431_s25, %s4708_s4  ;;  %p4711_p1 = scmp.lt.s32.totalorder %s4709_s5, %s4703_s29 }
  0x1f   : > { %7531 = vst [vmem:[#allocation8_spill] sm:$0xff] %v4918_v33  ;;  %7532 = vst [vmem:[#allocation9_spill] sm:$0xff] %v4921_v34  ;;  %v232_v38 = vmax.f32 %v204_v16, %v4869_v12  ;;  %v215_v39 = vmax.f32 %v4902_v27, %v4918_v33  ;;  %v233_v41 = vmax.f32 %v205_v17, %v4872_v13  ;;  %v4941_v47 = vld [vmem:[%s4855_s9 + $0x88] sm:$0xff]  ;;  %v4964_v60 = vld [vmem:[%s4855_s9 + $0x90] sm:$0xff]  ;;  %p4706_p13 = pneg %p4705_p12 }
  0x20   : > { %v234_v42 = vmax.f32 %v206_v22, %v4875_v14  ;;  %v235_v43 = vmax.f32 %v207_v23, %v4880_v19  ;;  %v236_v44 = vmax.f32 %v208_v24, %v4883_v20  ;;  %v237_v45 = vmax.f32 %v209_v29, %v4886_v21  ;;  %7533 = vst [vmem:[#allocation10_spill] sm:$0xff] %v4941_v47  ;;  %p4712_p2 = por %p4711_p1, %p4710_p0 }
  0x21   : > { %v238_v46 = vmax.f32 %v210_v30, %v4899_v26  ;;  %v239_v48 = vmax.f32 %v211_v31, %v4902_v27  ;;  %v240_v49 = vmax.f32 %v212_v35, %v4905_v28  ;;  %v4946_v50 = vmax.f32 %v213_v36, %v4918_v33  ;;  %7537 = vst [vmem:[#allocation14_spill] sm:$0xff] %v4964_v60 }
  0x22   : > { %v4949_v51 = vmax.f32 %v214_v37, %v4921_v34  ;;  %v4952_v52 = vmax.f32 %v215_v39, %v4941_v47  ;;  %v258_v53 = vmax.f32 %v4895_v25, %v4869_v12  ;;  %v259_v54 = vmax.f32 %v4914_v32, %v4872_v13  ;;  %p4713_p3 = pnand %p4712_p2, %p4706_p13 }
  0x23   : > { %7534 = vst [vmem:[#allocation11_spill] sm:$0xff] %v4946_v50  ;;  %v260_v55 = vmax.f32 %v232_v38, %v4875_v14  ;;  %v261_v56 = vmax.f32 %v233_v41, %v4880_v19  ;;  %v262_v57 = vmax.f32 %v234_v42, %v4883_v20  ;;  %v263_v58 = vmax.f32 %v235_v43, %v4886_v21 }
  0x24   : > { %7535 = vst [vmem:[#allocation12_spill] sm:$0xff] %v4949_v51  ;;  %7536 = vst [vmem:[#allocation13_spill] sm:$0xff] %v4952_v52  ;;  %v264_v59 = vmax.f32 %v236_v44, %v4899_v26  ;;  %v265_v61 = vmax.f32 %v237_v45, %v4902_v27  ;;  %v266_v62 = vmax.f32 %v238_v46, %v4905_v28  ;;  %v341_v23 = vrot.slane %v4895_v25, 6 }
  0x25   : > { %v267_v63 = vmax.f32 %v239_v48, %v4918_v33  ;;  %v268_v0 = vmax.f32 %v240_v49, %v4921_v34  ;;  %v284_v4 = vmax.f32 %v258_v53, %v4875_v14  ;;  %v285_v5 = vmax.f32 %v259_v54, %v4880_v19 }
  0x26   : > { %v286_v6 = vmax.f32 %v260_v55, %v4883_v20  ;;  %v287_v7 = vmax.f32 %v261_v56, %v4886_v21  ;;  %v288_v10 = vmax.f32 %v262_v57, %v4899_v26  ;;  %v289_v11 = vmax.f32 %v263_v58, %v4902_v27 }
  0x27   : > { %v290_v15 = vmax.f32 %v264_v59, %v4905_v28  ;;  %v291_v16 = vmax.f32 %v265_v61, %v4918_v33  ;;  %v4983_v17 = vmax.f32 %v266_v62, %v4921_v34  ;;  %v4986_v18 = vmax.f32 %v267_v63, %v4941_v47 }
  0x28   : > { %v4989_v22 = vmax.f32 %v268_v0, %v4964_v60  ;;  %v342_v24 = vrot.slane %v4914_v32, 6  ;;  %v344_v29 = vrot.slane %v258_v53, 6  ;;  %v345_v30 = vrot.slane %v259_v54, 6 }
  0x29   : > { %7538 = vst [vmem:[#allocation15_spill] sm:$0xff] %v4983_v17  ;;  %7539 = vst [vmem:[#allocation16_spill] sm:$0xff] %v4986_v18  ;;  %v347_v31 = vrot.slane %v284_v4, 6  ;;  %v348_v35 = vrot.slane %v285_v5, 6  ;;  %v350_v36 = vrot.slane %v286_v6, 6  ;;  %v351_v38 = vrot.slane %v287_v7, 6 }
  0x2a   : > { %7540 = vst [vmem:[#allocation17_spill] sm:$0xff] %v4989_v22  ;;  %v4994_v37 = vsel %vm340_vm1, %v341_v23, %v342_v24  ;;  %v353_v39 = vrot.slane %v288_v10, 6  ;;  %v354_v41 = vrot.slane %v289_v11, 6  ;;  %v4997_v42 = vsel %vm340_vm1, %v344_v29, %v345_v30 }
  0x2b   : > { %v5000_v43 = vsel %vm340_vm1, %v347_v31, %v348_v35  ;;  %v356_v25 = vrot.slane %v290_v15, 6  ;;  %v357_v44 = vrot.slane %v291_v16, 6  ;;  %v5003_v32 = vsel %vm340_vm1, %v350_v36, %v351_v38 }
  0x2c   : > { %v5006_v45 = vsel %vm340_vm1, %v353_v39, %v354_v41  ;;  %v7483_v46 = vrot.slane %v4983_v17, 6  ;;  %v5015_v54 = vsel %vm340_vm1, -inf, %v341_v23  ;;  %v5018_v55 = vsel %vm340_vm1, -inf, %v344_v29 }
  0x2d   : > { %v5011_v49 = vsel %vm340_vm1, %v356_v25, %v357_v44  ;;  %v5021_v56 = vsel %vm340_vm1, -inf, %v347_v31  ;;  %v5024_v57 = vsel %vm340_vm1, -inf, %v350_v36  ;;  %v5027_v58 = vsel %vm340_vm1, -inf, %v353_v39 }
  0x2e   : > { %v5030_v59 = vsel %vm340_vm1, -inf, %v356_v25  ;;  %v5035_v61 = vsel %vm340_vm1, -inf, %v7483_v46  ;;  %v5038_v62 = vsel %vm340_vm1, %v342_v24, -inf  ;;  %v5041_v63 = vsel %vm340_vm1, %v345_v30, -inf }
  0x2f   : > { %7541 = vst [vmem:[#allocation18_spill] sm:$0xff] %v5035_v61  ;;  %v5044_v0 = vsel %vm340_vm1, %v348_v35, -inf  ;;  %v5047_v4 = vsel %vm340_vm1, %v351_v38, -inf  ;;  %v5050_v5 = vsel %vm340_vm1, %v354_v41, -inf  ;;  %v5053_v6 = vsel %vm340_vm1, %v357_v44, -inf }
  0x30   : > { %v512_v16 = vrot.slane %v5021_v56, 1  ;;  %v513_v23 = vrot.slane %v5000_v43, 1  ;;  %v515_v24 = vrot.slane %v5044_v0, 1  ;;  %v517_v29 = vrot.slane %v5024_v57, 1 }
  0x31   : > { %v518_v30 = vrot.slane %v5003_v32, 1  ;;  %v520_v31 = vrot.slane %v5047_v4, 1  ;;  %v522_v35 = vrot.slane %v5027_v58, 1  ;;  %v523_v36 = vrot.slane %v5006_v45, 1 }
  0x32   : > { %v525_v38 = vrot.slane %v5050_v5, 1  ;;  %v5069_v39 = vsel %vm501_vm2, %v512_v16, %v513_v23  ;;  %v5072_v41 = vsel %vm501_vm2, %v513_v23, %v515_v24  ;;  %v527_v44 = vrot.slane %v5030_v59, 1 }
  0x33   : > { %v519_v25 = vsel %vm501_vm2, %v517_v29, %v518_v30  ;;  %v5077_v40 = vsel %vm501_vm2, %v518_v30, %v520_v31  ;;  %v524_v3 = vsel %vm501_vm2, %v522_v35, %v523_v36  ;;  %v528_v1 = vrot.slane %v5011_v49, 1 }
  0x34   : > { %v526_v53 = vsel %vm501_vm2, %v523_v36, %v525_v38  ;;  %v530_v46 = vrot.slane %v5053_v6, 1  ;;  %v620_v24 = vmax.f32 %v5024_v57, %v519_v25  ;;  %v622_v31 = vmax.f32 %v5027_v58, %v524_v3 }
  0x35   : > { %v529_v29 = vsel %vm501_vm2, %v527_v44, %v528_v1  ;;  %v623_v35 = vmax.f32 %v5006_v45, %v526_v53  ;;  %v662_v3 = vrot.slane %v5024_v57, 2  ;;  %v663_v53 = vrot.slane %v5003_v32, 2 }
  0x36   : > { %v531_v36 = vsel %vm501_vm2, %v528_v1, %v530_v46  ;;  %v624_v38 = vmax.f32 %v5030_v59, %v529_v29  ;;  %v665_v1 = vrot.slane %v5047_v4, 2  ;;  %v667_v46 = vrot.slane %v5027_v58, 2 }
  0x37   : > { %v625_v23 = vmax.f32 %v5011_v49, %v531_v36  ;;  %v668_v29 = vrot.slane %v5006_v45, 2  ;;  %v670_v16 = vrot.slane %v5050_v5, 2  ;;  %v672_v36 = vrot.slane %v5030_v59, 2 }
  0x38   : > { %v673_v48 = vrot.slane %v5011_v49, 2  ;;  %v664_v25 = vsel %vm646_vm3, %v662_v3, %v663_v53  ;;  %v5111_v30 = vsel %vm646_vm3, %v663_v53, %v665_v1  ;;  %v675_v44 = vrot.slane %v5053_v6, 2 }
  0x39   : > { %v669_v15 = vsel %vm646_vm3, %v667_v46, %v668_v29  ;;  %v671_v10 = vsel %vm646_vm3, %v668_v29, %v670_v16  ;;  %v5118_v51 = vmax.f32 %v620_v24, %v664_v25  ;;  %v7546_v46 = vrot.slane %v5038_v62, 1 }
  0x3a   : > { %v674_v11 = vsel %vm646_vm3, %v672_v36, %v673_v48  ;;  %v676_v52 = vsel %vm646_vm3, %v673_v48, %v675_v44  ;;  %v5121_v60 = vmax.f32 %v622_v31, %v669_v15  ;;  %v5123_v3 = vmax.f32 %v623_v35, %v671_v10 }
  0x3b   : > { %v5125_v53 = vmax.f32 %v624_v38, %v674_v11  ;;  %v770_v1 = vmax.f32 %v625_v23, %v676_v52  ;;  %v7489_v10 = vrot.slane %v5006_v45, 3  ;;  %v815_v11 = vrot.slane %v5050_v5, 3 }
  0x3c   : > { %v817_v52 = vrot.slane %v5030_v59, 3  ;;  %v818_v23 = vrot.slane %v5011_v49, 3  ;;  %v820_v31 = vrot.slane %v5053_v6, 3  ;;  %v963_v36 = vrot.slane %v5011_v49, 4 }
  0x3d   : > { %v5145_v44 = vsel %vm791_vm4, %v7489_v10, %v815_v11  ;;  %v965_v15 = vrot.slane %v5053_v6, 4  ;;  %v7542_v35 = vrot.slane %v4997_v42, 1  ;;  %v7543_v38 = vrot.slane %v5018_v55, 1 }
  0x3e   : > { %v5148_v29 = vsel %vm791_vm4, %v817_v52, %v818_v23  ;;  %v821_v48 = vsel %vm791_vm4, %v818_v23, %v820_v31  ;;  %v962_v52 = vrot.slane %v5030_v59, 4  ;;  %v502_v23 = vrot.slane %v5015_v54, 1 }
  0x3f   : > { %v915_v16 = vmax.f32 %v770_v1, %v821_v48  ;;  %v503_v31 = vrot.slane %v4994_v37, 1  ;;  %v509_v1 = vsel %vm501_vm2, %v7543_v38, %v7542_v35  ;;  %v7544_v48 = vrot.slane %v5041_v63, 1 }
  0x40   : > { %v7545_v10 = vmov %v7542_v35  ;;  %v647_v49 = vrot.slane %v5015_v54, 2  ;;  %v648_v6 = vrot.slane %v4994_v37, 2  ;;  %v5177_v25 = vsel %vm936_vm5, %v962_v52, %v963_v36 }
  0x41   : > { %v511_v59 = vsel %vm501_vm2, %v7545_v10, %v7544_v48  ;;  %v966_v11 = vsel %vm936_vm5, %v963_v36, %v965_v15  ;;  %v504_v24 = vsel %vm501_vm2, %v502_v23, %v503_v31  ;;  %v506_v35 = vsel %vm501_vm2, %v503_v31, %v7546_v46 }
  0x42   : > { %v5184_v38 = vmax.f32 %v915_v16, %v966_v11  ;;  %v614_v34 = vmax.f32 %v5015_v54, %v504_v24  ;;  %v615_v10 = vmax.f32 %v4994_v37, %v506_v35  ;;  %v616_v48 = vmax.f32 %v5018_v55, %v509_v1 }
  0x43   : > { %v617_v7 = vmax.f32 %v4997_v42, %v511_v59  ;;  %v649_v52 = vsel %vm646_vm3, %v647_v49, %v648_v6  ;;  %v650_v15 = vrot.slane %v5038_v62, 2  ;;  %v653_v36 = vrot.slane %v4997_v42, 2 }
  0x44   : > { %v7547_v23 = vrot.slane %v5000_v43, 2  ;;  %v7548_v46 = vrot.slane %v5021_v56, 2  ;;  %v7549_v24 = vrot.slane %v5044_v0, 2  ;;  %v759_v1 = vmax.f32 %v614_v34, %v649_v52 }
  0x45   : > { %v7551_v59 = vmax.f32 %v5003_v32, %v5077_v40  ;;  %v651_v35 = vsel %vm646_vm3, %v648_v6, %v650_v15  ;;  %v7552_v22 = vrot.slane %v5018_v55, 2  ;;  %v7554_v50 = vmax.f32 %v5021_v56, %v5069_v39 }
  0x46   : > { %v659_v16 = vsel %vm646_vm3, %v7548_v46, %v7547_v23  ;;  %v7550_v11 = vmov %v7547_v23  ;;  %v7553_v23 = vrot.slane %v5041_v63, 2  ;;  %v760_v34 = vmax.f32 %v615_v10, %v651_v35 }
  0x47   : > { %v661_v31 = vsel %vm646_vm3, %v7550_v11, %v7549_v24  ;;  %v766_v49 = vmax.f32 %v7551_v59, %v5111_v30  ;;  %v654_v47 = vsel %vm646_vm3, %v7552_v22, %v653_v36  ;;  %v763_v24 = vmax.f32 %v7554_v50, %v659_v16 }
  0x48   : > { %v656_v46 = vsel %vm646_vm3, %v653_v36, %v7553_v23  ;;  %v761_v52 = vmax.f32 %v616_v48, %v654_v47  ;;  %v7555_v40 = vmax.f32 %v5000_v43, %v5072_v41  ;;  %v792_v6 = vrot.slane %v5015_v54, 3 }
  0x49   : > { %v762_v11 = vmax.f32 %v617_v7, %v656_v46  ;;  %v793_v15 = vrot.slane %v4994_v37, 3  ;;  %v795_v22 = vrot.slane %v5038_v62, 3  ;;  %v797_v59 = vrot.slane %v5018_v55, 3 }
  0x4a   : > { %v764_v30 = vmax.f32 %v7555_v40, %v661_v31  ;;  %v798_v36 = vrot.slane %v4997_v42, 3  ;;  %v7556_v39 = vrot.slane %v5000_v43, 3  ;;  %v7557_v50 = vrot.slane %v5021_v56, 3 }
  0x4b   : > { %v7558_v7 = vrot.slane %v5044_v0, 3  ;;  %v7560_v48 = vrot.slane %v5003_v32, 3  ;;  %v7561_v16 = vrot.slane %v5024_v57, 3  ;;  %v794_v35 = vsel %vm791_vm4, %v792_v6, %v793_v15 }
  0x4c   : > { %v804_v47 = vsel %vm791_vm4, %v7557_v50, %v7556_v39  ;;  %v7559_v41 = vmov %v7556_v39  ;;  %v796_v23 = vsel %vm791_vm4, %v793_v15, %v795_v22  ;;  %v7562_v46 = vrot.slane %v5047_v4, 3 }
  0x4d   : > { %v806_v10 = vsel %vm791_vm4, %v7559_v41, %v7558_v7  ;;  %v809_v31 = vsel %vm791_vm4, %v7561_v16, %v7560_v48  ;;  %v7563_v40 = vmov %v7560_v48  ;;  %v7564_v50 = vrot.slane %v5006_v45, 3 }
  0x4e   : > { %v811_v39 = vsel %vm791_vm4, %v7563_v40, %v7562_v46  ;;  %v7565_v7 = vrot.slane %v5027_v58, 3  ;;  %v799_v61 = vsel %vm791_vm4, %v797_v59, %v798_v36  ;;  %v7566_v48 = vrot.slane %v5041_v63, 3 }
  0x4f   : > { %v904_v16 = vmax.f32 %v759_v1, %v794_v35  ;;  %v905_v15 = vmax.f32 %v760_v34, %v796_v23  ;;  %v906_v22 = vmax.f32 %v761_v52, %v799_v61  ;;  %v908_v2 = vmax.f32 %v763_v24, %v804_v47 }
  0x50   : > { %v814_v41 = vsel %vm791_vm4, %v7565_v7, %v7564_v50  ;;  %v801_v6 = vsel %vm791_vm4, %v798_v36, %v7566_v48  ;;  %v909_v18 = vmax.f32 %v764_v30, %v806_v10  ;;  %v910_v46 = vmax.f32 %v5118_v51, %v809_v31 }
  0x51   : > { %v907_v17 = vmax.f32 %v762_v11, %v801_v6  ;;  %v911_v40 = vmax.f32 %v766_v49, %v811_v39  ;;  %v912_v33 = vmax.f32 %v5121_v60, %v814_v41  ;;  %v913_v50 = vmax.f32 %v5123_v3, %v5145_v44 }
  0x52   : > { %v937_v59 = vrot.slane %v5015_v54, 4  ;;  %v938_v7 = vrot.slane %v4994_v37, 4  ;;  %v940_v36 = vrot.slane %v5038_v62, 4  ;;  %v942_v1 = vrot.slane %v5018_v55, 4 }
  0x53   : > { %v943_v61 = vrot.slane %v4997_v42, 4  ;;  %v945_v24 = vrot.slane %v5041_v63, 4  ;;  %v7567_v51 = vrot.slane %v5000_v43, 4  ;;  %v7568_v49 = vrot.slane %v5021_v56, 4 }
  0x54   : > { %v7569_v3 = vrot.slane %v5044_v0, 4  ;;  %v939_v62 = vsel %vm936_vm5, %v937_v59, %v938_v7  ;;  %v941_v55 = vsel %vm936_vm5, %v938_v7, %v940_v36  ;;  %v7571_v42 = vrot.slane %v5003_v32, 4 }
  0x55   : > { %v949_v60 = vsel %vm936_vm5, %v7568_v49, %v7567_v51  ;;  %v7570_v54 = vmov %v7567_v51  ;;  %v7572_v63 = vrot.slane %v5024_v57, 4  ;;  %v7573_v56 = vrot.slane %v5047_v4, 4 }
  0x56   : > { %v951_v37 = vsel %vm936_vm5, %v7570_v54, %v7569_v3  ;;  %v7574_v34 = vmov %v7571_v42  ;;  %v944_v43 = vsel %vm936_vm5, %v942_v1, %v943_v61  ;;  %v946_v52 = vsel %vm936_vm5, %v943_v61, %v945_v24 }
  0x57   : > { %v954_v44 = vsel %vm936_vm5, %v7572_v63, %v7571_v42  ;;  %v956_v0 = vsel %vm936_vm5, %v7574_v34, %v7573_v56  ;;  %v7575_v11 = vrot.slane %v5006_v45, 4  ;;  %v7576_v30 = vrot.slane %v5027_v58, 4 }
  0x58   : > { %v7577_v57 = vrot.slane %v5050_v5, 4  ;;  %v5300_v31 = vmax.f32 %v904_v16, %v939_v62  ;;  %v5302_v32 = vmax.f32 %v905_v15, %v941_v55  ;;  %v5304_v35 = vmax.f32 %v906_v22, %v944_v43 }
  0x59   : > { %v959_v47 = vsel %vm936_vm5, %v7576_v30, %v7575_v11  ;;  %v7578_v10 = vmov %v7575_v11  ;;  %v5306_v23 = vmax.f32 %v907_v17, %v946_v52  ;;  %v5308_v39 = vmax.f32 %v908_v2, %v949_v60 }
  0x5a   : > { %v961_v4 = vsel %vm936_vm5, %v7578_v10, %v7577_v57  ;;  %v5310_v41 = vmax.f32 %v909_v18, %v951_v37  ;;  %v5312_v58 = vmax.f32 %v910_v46, %v954_v44  ;;  %v5314_v48 = vmax.f32 %v911_v40, %v956_v0 }
  0x5b   : > { %v5316_v5 = vmax.f32 %v912_v33, %v959_v47  ;;  %v5318_v45 = vmax.f32 %v913_v50, %v961_v4  ;;  %v7579_v6 = vmax.f32 %v5125_v53, %v5148_v29  ;;  %v1081_v2 = vmax.f32 %v5300_v31, %v5304_v35 }
  0x5c   : > { %v1082_v17 = vmax.f32 %v5302_v32, %v5306_v23  ;;  %v1083_v18 = vmax.f32 %v5304_v35, %v5308_v39  ;;  %v1084_v33 = vmax.f32 %v5306_v23, %v5310_v41  ;;  %v1085_v15 = vmax.f32 %v5308_v39, %v5312_v58 }
  0x5d   : > { %v5324_v16 = vmax.f32 %v7579_v6, %v5177_v25  ;;  %v1086_v53 = vmax.f32 %v5310_v41, %v5314_v48  ;;  %v1087_v25 = vmax.f32 %v5312_v58, %v5316_v5  ;;  %v1088_v29 = vmax.f32 %v5314_v48, %v5318_v45 }
  0x5e   : > { %v1109_v22 = vmax.f32 %v1081_v2, %v5308_v39  ;;  %v1110_v46 = vmax.f32 %v1082_v17, %v5310_v41  ;;  %v1111_v40 = vmax.f32 %v1083_v18, %v5312_v58  ;;  %v1112_v50 = vmax.f32 %v1084_v33, %v5314_v48 }
  0x5f   : > { %v5347_v59 = vmax.f32 %v1085_v15, %v5316_v5  ;;  %v5350_v7 = vmax.f32 %v1086_v53, %v5318_v45  ;;  %v5353_v36 = vmax.f32 %v1087_v25, %v5324_v16  ;;  %v5356_v1 = vmax.f32 %v1088_v29, %v5184_v38 }
  0x60   : > { %v1137_v61 = vmax.f32 %v1109_v22, %v5312_v58  ;;  %v1138_v24 = vmax.f32 %v1110_v46, %v5314_v48  ;;  %v1139_v51 = vmax.f32 %v1111_v40, %v5316_v5  ;;  %v1140_v49 = vmax.f32 %v1112_v50, %v5318_v45 }
  0x61   : > { %7580 = vst [vmem:[#allocation19_spill] sm:$0xff] %v5347_v59  ;;  %7581 = vst [vmem:[#allocation20_spill] sm:$0xff] %v5350_v7  ;;  %v1219_v37 = vrot.slane %v1109_v22, 6  ;;  %v1220_v62 = vrot.slane %v1110_v46, 6 }
  0x62   : > { %7582 = vst [vmem:[#allocation21_spill] sm:$0xff] %v5353_v36  ;;  %7583 = vst [vmem:[#allocation22_spill] sm:$0xff] %v5356_v1  ;;  %v1163_v54 = vmax.f32 %v1137_v61, %v5316_v5  ;;  %v1164_v55 = vmax.f32 %v1138_v24, %v5318_v45  ;;  %v1165_v42 = vmax.f32 %v1139_v51, %v5324_v16  ;;  %v1222_v44 = vrot.slane %v1137_v61, 6 }
  0x63   : > { %v1166_v63 = vmax.f32 %v1140_v49, %v5184_v38  ;;  %v5371_v56 = vsel %vm340_vm1, %v1219_v37, %v1220_v62  ;;  %v1223_v34 = vrot.slane %v1138_v24, 6  ;;  %v5374_v43 = vsel %vm340_vm1, -inf, %v1219_v37 }
  0x64   : > { %v1225_v0 = vrot.slane %v1163_v54, 6  ;;  %v1226_v52 = vrot.slane %v1164_v55, 6  ;;  %v1228_v11 = vrot.slane %v1165_v42, 6  ;;  %v5377_v47 = vsel %vm340_vm1, -inf, %v1222_v44 }
  0x65   : > { %v1229_v30 = vrot.slane %v1166_v63, 6  ;;  %v5380_v57 = vsel %vm340_vm1, %v1222_v44, %v1223_v34  ;;  %v5386_v4 = vsel %vm340_vm1, %v1220_v62, -inf  ;;  %v5389_v6 = vsel %vm340_vm1, %v1223_v34, -inf }
  0x66   : > { %v5383_v10 = vsel %vm340_vm1, -inf, %v1225_v0  ;;  %v5392_v2 = vsel %vm340_vm1, %v1225_v0, %v1226_v52  ;;  %v5398_v18 = vsel %vm340_vm1, -inf, %v1228_v11  ;;  %v5401_v33 = vsel %vm340_vm1, %v1226_v52, -inf }
  0x67   : > { %v5395_v17 = vsel %vm340_vm1, %v1228_v11, %v1229_v30  ;;  %v5404_v15 = vsel %vm340_vm1, %v1229_v30, -inf  ;;  %v1379_v53 = vrot.slane %v5374_v43, 1  ;;  %v1380_v25 = vrot.slane %v5371_v56, 1 }
  0x68   : > { %v1382_v29 = vrot.slane %v5386_v4, 1  ;;  %v1384_v22 = vrot.slane %v5377_v47, 1  ;;  %v1385_v46 = vrot.slane %v5380_v57, 1  ;;  %v1387_v40 = vrot.slane %v5389_v6, 1 }
  0x69   : > { %v1389_v50 = vrot.slane %v5383_v10, 1  ;;  %v1381_v61 = vsel %vm501_vm2, %v1379_v53, %v1380_v25  ;;  %v1390_v51 = vrot.slane %v5392_v2, 1  ;;  %v1392_v49 = vrot.slane %v5401_v33, 1 }
  0x6a   : > { %v1383_v24 = vsel %vm501_vm2, %v1380_v25, %v1382_v29  ;;  %v1386_v54 = vsel %vm501_vm2, %v1384_v22, %v1385_v46  ;;  %v1388_v37 = vsel %vm501_vm2, %v1385_v46, %v1387_v40  ;;  %v1394_v62 = vrot.slane %v5398_v18, 1 }
  0x6b   : > { %v1395_v55 = vrot.slane %v5395_v17, 1  ;;  %v1391_v42 = vsel %vm501_vm2, %v1389_v50, %v1390_v51  ;;  %v1393_v63 = vsel %vm501_vm2, %v1390_v51, %v1392_v49  ;;  %v1397_v44 = vrot.slane %v5404_v15, 1 }
  0x6c   : > { %v1491_v34 = vmax.f32 %v5374_v43, %v1381_v61  ;;  %v1492_v52 = vmax.f32 %v5371_v56, %v1383_v24  ;;  %v1493_v11 = vmax.f32 %v5377_v47, %v1386_v54  ;;  %v1494_v30 = vmax.f32 %v5380_v57, %v1388_v37 }
  0x6d   : > { %v1396_v0 = vsel %vm501_vm2, %v1394_v62, %v1395_v55  ;;  %v1398_v53 = vsel %vm501_vm2, %v1395_v55, %v1397_v44  ;;  %v1495_v25 = vmax.f32 %v5383_v10, %v1391_v42  ;;  %v1496_v29 = vmax.f32 %v5392_v2, %v1393_v63 }
  0x6e   : > { %v1497_v22 = vmax.f32 %v5398_v18, %v1396_v0  ;;  %v1498_v46 = vmax.f32 %v5395_v17, %v1398_v53  ;;  %v1523_v40 = vrot.slane %v5374_v43, 2  ;;  %v1524_v50 = vrot.slane %v5371_v56, 2 }
  0x6f   : > { %v1526_v61 = vrot.slane %v5386_v4, 2  ;;  %v1528_v24 = vrot.slane %v5377_v47, 2  ;;  %v1529_v51 = vrot.slane %v5380_v57, 2  ;;  %v1531_v49 = vrot.slane %v5389_v6, 2 }
  0x70   : > { %v1533_v54 = vrot.slane %v5383_v10, 2  ;;  %v1525_v37 = vsel %vm646_vm3, %v1523_v40, %v1524_v50  ;;  %v1534_v55 = vrot.slane %v5392_v2, 2  ;;  %v1536_v42 = vrot.slane %v5401_v33, 2 }
  0x71   : > { %v1527_v62 = vsel %vm646_vm3, %v1524_v50, %v1526_v61  ;;  %v1530_v63 = vsel %vm646_vm3, %v1528_v24, %v1529_v51  ;;  %v1532_v44 = vsel %vm646_vm3, %v1529_v51, %v1531_v49  ;;  %v1538_v0 = vrot.slane %v5398_v18, 2 }
  0x72   : > { %v1539_v53 = vrot.slane %v5395_v17, 2  ;;  %v1535_v3 = vsel %vm646_vm3, %v1533_v54, %v1534_v55  ;;  %v1537_v60 = vsel %vm646_vm3, %v1534_v55, %v1536_v42  ;;  %v1541_v40 = vrot.slane %v5404_v15, 2 }
  0x73   : > { %v1635_v7 = vmax.f32 %v1491_v34, %v1525_v37  ;;  %v1636_v61 = vmax.f32 %v1492_v52, %v1527_v62  ;;  %v1637_v59 = vmax.f32 %v1493_v11, %v1530_v63  ;;  %v1638_v1 = vmax.f32 %v1494_v30, %v1532_v44 }
  0x74   : > { %v1540_v50 = vsel %vm646_vm3, %v1538_v0, %v1539_v53  ;;  %v1542_v24 = vsel %vm646_vm3, %v1539_v53, %v1541_v40  ;;  %v1639_v36 = vmax.f32 %v1495_v25, %v1535_v3  ;;  %v1640_v51 = vmax.f32 %v1496_v29, %v1537_v60 }
  0x75   : > { %v1641_v49 = vmax.f32 %v1497_v22, %v1540_v50  ;;  %v1642_v28 = vmax.f32 %v1498_v46, %v1542_v24  ;;  %v1667_v27 = vrot.slane %v5374_v43, 3  ;;  %v1668_v54 = vrot.slane %v5371_v56, 3 }
  0x76   : > { %v1670_v55 = vrot.slane %v5386_v4, 3  ;;  %v1672_v42 = vrot.slane %v5377_v47, 3  ;;  %v1673_v34 = vrot.slane %v5380_v57, 3  ;;  %v1675_v52 = vrot.slane %v5389_v6, 3 }
  0x77   : > { %v1677_v11 = vrot.slane %v5383_v10, 3  ;;  %v1669_v30 = vsel %vm791_vm4, %v1667_v27, %v1668_v54  ;;  %v1678_v3 = vrot.slane %v5392_v2, 3  ;;  %v1680_v25 = vrot.slane %v5401_v33, 3 }
  0x78   : > { %v1671_v60 = vsel %vm791_vm4, %v1668_v54, %v1670_v55  ;;  %v1674_v29 = vsel %vm791_vm4, %v1672_v42, %v1673_v34  ;;  %v1676_v22 = vsel %vm791_vm4, %v1673_v34, %v1675_v52  ;;  %v1682_v46 = vrot.slane %v5398_v18, 3 }
  0x79   : > { %v1683_v37 = vrot.slane %v5395_v17, 3  ;;  %v1679_v62 = vsel %vm791_vm4, %v1677_v11, %v1678_v3  ;;  %v1681_v63 = vsel %vm791_vm4, %v1678_v3, %v1680_v25  ;;  %v1685_v27 = vrot.slane %v5404_v15, 3 }
  0x7a   : > { %v1779_v44 = vmax.f32 %v1635_v7, %v1669_v30  ;;  %v1780_v53 = vmax.f32 %v1636_v61, %v1671_v60  ;;  %v1781_v40 = vmax.f32 %v1637_v59, %v1674_v29  ;;  %v1782_v50 = vmax.f32 %v1638_v1, %v1676_v22 }
  0x7b   : > { %v1684_v0 = vsel %vm791_vm4, %v1682_v46, %v1683_v37  ;;  %v1686_v24 = vsel %vm791_vm4, %v1683_v37, %v1685_v27  ;;  %v1783_v54 = vmax.f32 %v1639_v36, %v1679_v62  ;;  %v1784_v55 = vmax.f32 %v1640_v51, %v1681_v63  ;;  %v5811_v37 = vld [vmem:[%s4855_s9 + $0xc8] sm:$0xff] }
  0x7c   : > { %v1785_v42 = vmax.f32 %v1641_v49, %v1684_v0  ;;  %v1786_v34 = vmax.f32 %v1642_v28, %v1686_v24  ;;  %v1811_v52 = vrot.slane %v5374_v43, 4  ;;  %v1812_v11 = vrot.slane %v5371_v56, 4 }
  0x7d   : > { %v1814_v3 = vrot.slane %v5386_v4, 4  ;;  %v1816_v25 = vrot.slane %v5377_v47, 4  ;;  %v1817_v7 = vrot.slane %v5380_v57, 4  ;;  %v1819_v61 = vrot.slane %v5389_v6, 4 }
  0x7e   : > { %v1821_v59 = vrot.slane %v5383_v10, 4  ;;  %v1813_v1 = vsel %vm936_vm5, %v1811_v52, %v1812_v11  ;;  %v1822_v28 = vrot.slane %v5392_v2, 4  ;;  %v1824_v43 = vrot.slane %v5401_v33, 4 }
  0x7f   : > { %v1815_v36 = vsel %vm936_vm5, %v1812_v11, %v1814_v3  ;;  %v1818_v56 = vsel %vm936_vm5, %v1816_v25, %v1817_v7  ;;  %v1820_v4 = vsel %vm936_vm5, %v1817_v7, %v1819_v61  ;;  %v1826_v47 = vrot.slane %v5398_v18, 4 }
  0x80   : > { %v1827_v57 = vrot.slane %v5395_v17, 4  ;;  %v1823_v6 = vsel %vm936_vm5, %v1821_v59, %v1822_v28  ;;  %v1825_v10 = vsel %vm936_vm5, %v1822_v28, %v1824_v43  ;;  %v1829_v51 = vrot.slane %v5404_v15, 4  ;;  %v5562_v28 = vld [vmem:[%s4855_s9 + $0x98] sm:$0xff] }
  0x81   : > { %v5492_v49 = vmax.f32 %v1779_v44, %v1813_v1  ;;  %v5495_v30 = vmax.f32 %v1780_v53, %v1815_v36  ;;  %v5497_v33 = vmax.f32 %v1781_v40, %v1818_v56  ;;  %v5499_v60 = vmax.f32 %v1782_v50, %v1820_v4  ;;  %v7593_v50 = vld [vmem:[#allocation18_spill] sm:$0xff] }
  0x82   : > { %v1828_v2 = vsel %vm936_vm5, %v1826_v47, %v1827_v57  ;;  %v1830_v18 = vsel %vm936_vm5, %v1827_v57, %v1829_v51  ;;  %v5502_v29 = vmax.f32 %v1783_v54, %v1823_v6  ;;  %v5504_v17 = vmax.f32 %v1784_v55, %v1825_v10 }
  0x83   : > { %v5506_v22 = vmax.f32 %v1785_v42, %v1828_v2  ;;  %v5508_v46 = vmax.f32 %v1786_v34, %v1830_v18  ;;  %v2847_v62 = vpack.c.bf16 %v5302_v32, %v5300_v31  ;;  %v2848_v63 = vpack.c.bf16 %v5306_v23, %v5304_v35  ;;  %v7585_v35 = vld [vmem:[#allocation7_spill] sm:$0xff]  ;;  %v7586_v23 = vld [vmem:[#allocation8_spill] sm:$0xff] }
  0x84   : > { %v2831_v27 = vpack.c.bf16 %v4866_v9, %v4863_v8  ;;  %v2832_v44 = vpack.c.bf16 %v4872_v13, %v4869_v12  ;;  %v2849_v0 = vpack.c.bf16 %v5310_v41, %v5308_v39  ;;  %v2850_v53 = vpack.c.bf16 %v5314_v48, %v5312_v58  ;;  %v7584_v12 = vld [vmem:[#allocation6_spill] sm:$0xff]  ;;  %v7591_v58 = vld [vmem:[#allocation15_spill] sm:$0xff] }
  0x85   : > { %4392 = vmatprep.mubr.msk.bf16.mxu0 %vm2872_vm0, %v2847_v62  ;;  %v2833_v31 = vpack.c.bf16 %v4880_v19, %v4875_v14  ;;  %v2834_v32 = vpack.c.bf16 %v4886_v21, %v4883_v20  ;;  %v2851_v8 = vpack.c.bf16 %v5318_v45, %v5316_v5  ;;  %v2852_v9 = vpack.c.bf16 %v5184_v38, %v5324_v16  ;;  %v7587_v14 = vld [vmem:[#allocation16_spill] sm:$0xff]  ;;  %v7589_v21 = vld [vmem:[#allocation5_spill] sm:$0xff]  ;;  %v7594_v62 = vld [vmem:[#allocation11_spill] sm:$0xff] }
  0x86   : > { %4393 = vmatmul.mubr.msk.bf16.vlgmr.msra.gmra.mxu0 %vm2872_vm0, %v2848_v63  ;;  %4430 = vmatprep.mubr.msk.bf16.mxu1 %vm2872_vm0, %v2831_v27  ;;  %v2835_v13 = vpack.c.bf16 %v7584_v12, %v4899_v26  ;;  %v2836_v39 = vpack.c.bf16 %v7586_v23, %v7585_v35  ;;  %v7588_v19 = vrot.slane %v7587_v14, 6  ;;  %v7592_v48 = vrot.slane %v7591_v58, 6  ;;  %v7595_v63 = vld [vmem:[#allocation10_spill] sm:$0xff]  ;;  %v5582_v14 = vld [vmem:[%s4855_s9 + $0xa0] sm:$0xff] }
  0x87   : > { %4459 = vmatpush3.bf16.msra.mxu0 %v7589_v21  ;;  %4431 = vmatmul.mubr.msk.bf16.gmra.mxu1 %vm2872_vm0, %v2832_v44  ;;  %v532_v24 = vrot.slane %v7593_v50, 1  ;;  %v677_v54 = vrot.slane %v7593_v50, 2  ;;  %v822_v52 = vrot.slane %v7593_v50, 3  ;;  %v967_v25 = vrot.slane %v7593_v50, 4 }
  0x88   : > { %v459_v20 = vsel %vm340_vm1, %v7588_v19, -inf  ;;  %v7590_v41 = vmov %v7588_v19  ;;  %4396 = vmatprep.mubr.msk.bf16.mxu0 %vm2872_vm0, %v2849_v0  ;;  %4434 = vmatprep.mubr.msk.bf16.mxu1 %vm2872_vm0, %v2833_v31  ;;  %v1089_v10 = vmax.f32 %v5316_v5, %v5324_v16  ;;  %v1090_v51 = vmax.f32 %v5318_v45, %v5184_v38  ;;  %v7597_v0 = vld [vmem:[#allocation17_spill] sm:$0xff] }
  0x89   : > { %v361_v40 = vsel %vm340_vm1, %v7592_v48, %v7590_v41  ;;  %v535_v26 = vrot.slane %v459_v20, 1  ;;  %v680_v34 = vrot.slane %v459_v20, 2  ;;  %v825_v3 = vrot.slane %v459_v20, 3 }
  0x8a   : > { %v533_v55 = vrot.slane %v361_v40, 1  ;;  %v678_v42 = vrot.slane %v361_v40, 2  ;;  %v823_v11 = vrot.slane %v361_v40, 3  ;;  %v968_v7 = vrot.slane %v361_v40, 4 }
  0x8b   : > { %v970_v6 = vrot.slane %v459_v20, 4  ;;  %v7596_v27 = vmax.f32 %v7594_v62, %v7595_v63  ;;  %v7598_v31 = vrot.slane %v7597_v0, 6  ;;  %v7609_v62 = vld [vmem:[#allocation20_spill] sm:$0xff] }
  0x8c   : > { %v534_v61 = vsel %vm501_vm2, %v532_v24, %v533_v55  ;;  %v536_v59 = vsel %vm501_vm2, %v533_v55, %v535_v26  ;;  %v679_v1 = vsel %vm646_vm3, %v677_v54, %v678_v42  ;;  %v681_v36 = vsel %vm646_vm3, %v678_v42, %v680_v34  ;;  %v7601_v26 = vld [vmem:[#allocation13_spill] sm:$0xff] }
  0x8d   : > { %v626_v43 = vmax.f32 %v7593_v50, %v534_v61  ;;  %v627_v56 = vmax.f32 %v361_v40, %v536_v59  ;;  %v824_v4 = vsel %vm791_vm4, %v822_v52, %v823_v11  ;;  %v826_v47 = vsel %vm791_vm4, %v823_v11, %v825_v3  ;;  %v7600_v50 = vld [vmem:[#allocation14_spill] sm:$0xff] }
  0x8e   : > { %v969_v57 = vsel %vm936_vm5, %v967_v25, %v968_v7  ;;  %v295_v44 = vmax.f32 %v7596_v27, %v5562_v28  ;;  %v5579_v12 = vsel %vm340_vm1, -inf, %v7598_v31  ;;  %4397 = vmatmul.mubr.msk.bf16.gmra.mxu0 %vm2872_vm0, %v2850_v53  ;;  %v971_v5 = vsel %vm936_vm5, %v968_v7, %v970_v6  ;;  %v7599_v53 = vld [vmem:[#allocation9_spill] sm:$0xff]  ;;  %v7607_v6 = vld [vmem:[#allocation19_spill] sm:$0xff] }
  0x8f   : > { %v771_v2 = vmax.f32 %v626_v43, %v679_v1  ;;  %v772_v18 = vmax.f32 %v627_v56, %v681_v36  ;;  %v537_v45 = vrot.slane %v5579_v12, 1  ;;  %v682_v19 = vrot.slane %v5579_v12, 2  ;;  %4435 = vmatmul.mubr.msk.bf16.gmra.mxu1 %vm2872_vm0, %v2834_v32  ;;  %4400 = vmatprep.mubr.msk.bf16.mxu0 %vm2872_vm0, %v2851_v8  ;;  %v7602_v32 = vld [vmem:[#allocation12_spill] sm:$0xff]  ;;  %v7605_v56 = vld [vmem:[#allocation21_spill] sm:$0xff] }
  0x90   : > { %v827_v20 = vrot.slane %v5579_v12, 3  ;;  %v363_v58 = vrot.slane %v295_v44, 6  ;;  %v972_v48 = vrot.slane %v5579_v12, 4  ;;  %4438 = vmatprep.mubr.msk.bf16.mxu1 %vm2872_vm0, %v2835_v13  ;;  %v2837_v40 = vpack.c.bf16 %v7595_v63, %v7599_v53 }
  0x91   : > { %v916_v21 = vmax.f32 %v771_v2, %v824_v4  ;;  %v917_v41 = vmax.f32 %v772_v18, %v826_v47  ;;  %v2838_v24 = vpack.c.bf16 %v5562_v28, %v7600_v50  ;;  %v271_v54 = vmax.f32 %v7601_v26, %v5562_v28  ;;  %v7606_v47 = vld [vmem:[#allocation22_spill] sm:$0xff] }
  0x92   : > { %v7603_v8 = vmax.f32 %v7602_v32, %v7600_v50  ;;  %v7604_v13 = vmov %v7598_v31  ;;  %v460_v11 = vsel %vm340_vm1, %v363_v58, -inf  ;;  %v7608_v2 = vmax.f32 %v7607_v6, %v5324_v16  ;;  %v4699_v6 = vld [vmem:[%s4855_s9 + $0x78] sm:$0xff]  ;;  %v5808_v32 = vld [vmem:[%s4855_s9 + $0xc0] sm:$0xff] }
  0x93   : > { %v5605_v42 = vmax.f32 %v916_v21, %v969_v57  ;;  %v5607_v34 = vmax.f32 %v917_v41, %v971_v5  ;;  %v364_v52 = vsel %vm340_vm1, %v7604_v13, %v363_v58  ;;  %v540_v25 = vrot.slane %v460_v11, 1 }
  0x94   : > { %v5603_v55 = vmax.f32 %v7603_v8, %v5582_v14  ;;  %v538_v3 = vrot.slane %v364_v52, 1  ;;  %v683_v7 = vrot.slane %v364_v52, 2  ;;  %v685_v61 = vrot.slane %v460_v11, 2 }
  0x95   : > { %v1091_v59 = vmax.f32 %v5324_v16, %v5605_v42  ;;  %v1092_v1 = vmax.f32 %v5184_v38, %v5607_v34  ;;  %v5618_v36 = vmax.f32 %v1089_v10, %v5605_v42  ;;  %v5621_v43 = vmax.f32 %v1090_v51, %v5607_v34 }
  0x96   : > { %v1143_v4 = vmax.f32 %v7605_v56, %v5605_v42  ;;  %v1144_v57 = vmax.f32 %v7606_v47, %v5607_v34  ;;  %v1167_v18 = vmax.f32 %v7608_v2, %v5605_v42  ;;  %v7610_v27 = vmax.f32 %v7609_v62, %v5184_v38  ;;  %4401 = vmatmul.mubr.msk.bf16.gmra.mxu0 %vm2872_vm0, %v2852_v9 }
  0x97   : > { %v2853_v51 = vpack.c.bf16 %v5607_v34, %v5605_v42  ;;  %v539_v44 = vsel %vm501_vm2, %v537_v45, %v538_v3  ;;  %v541_v0 = vsel %vm501_vm2, %v538_v3, %v540_v25  ;;  %v684_v31 = vsel %vm646_vm3, %v682_v19, %v683_v7  ;;  %4439 = vmatmul.mubr.msk.bf16.gmra.mxu1 %vm2872_vm0, %v2836_v39  ;;  %v5662_v39 = vld [vmem:[%s4855_s9 + $0xa8] sm:$0xff] }
  0x98   : > { %v1168_v10 = vmax.f32 %v7610_v27, %v5607_v34  ;;  %v1231_v5 = vrot.slane %v1167_v18, 6  ;;  %v628_v41 = vmax.f32 %v5579_v12, %v539_v44  ;;  %v629_v58 = vmax.f32 %v364_v52, %v541_v0  ;;  %4442 = vmatprep.mubr.msk.bf16.mxu1 %vm2872_vm0, %v2837_v40 }
  0x99   : > { %4404 = vmatprep.mubr.msk.bf16.mxu0 %vm2872_vm0, %v2853_v51  ;;  %v686_v45 = vsel %vm646_vm3, %v683_v7, %v685_v61  ;;  %v828_v19 = vrot.slane %v364_v52, 3  ;;  %v830_v26 = vrot.slane %v460_v11, 3  ;;  %v973_v38 = vrot.slane %v364_v52, 4 }
  0x9a   : > { %v1232_v21 = vrot.slane %v1168_v10, 6  ;;  %v5655_v9 = vsel %vm340_vm1, -inf, %v1231_v5  ;;  %v773_v23 = vmax.f32 %v628_v41, %v684_v31  ;;  %v774_v13 = vmax.f32 %v629_v58, %v686_v45 }
  0x9b   : > { %v829_v52 = vsel %vm791_vm4, %v827_v20, %v828_v19  ;;  %v831_v3 = vsel %vm791_vm4, %v828_v19, %v830_v26  ;;  %v974_v7 = vsel %vm936_vm5, %v972_v48, %v973_v38  ;;  %v975_v61 = vrot.slane %v460_v11, 4 }
  0x9c   : > { %v5652_v16 = vsel %vm340_vm1, %v1231_v5, %v1232_v21  ;;  %v5658_v12 = vsel %vm340_vm1, %v1232_v21, -inf  ;;  %v918_v25 = vmax.f32 %v773_v23, %v829_v52  ;;  %v919_v56 = vmax.f32 %v774_v13, %v831_v3 }
  0x9d   : > { %v297_v47 = vmax.f32 %v271_v54, %v5662_v39  ;;  %v365_v40 = vrot.slane %v5603_v55, 6  ;;  %v217_v2 = vmax.f32 %v4699_v6, %v7595_v63  ;;  %v976_v18 = vsel %vm936_vm5, %v973_v38, %v975_v61 }
  0x9e   : > { %v5674_v62 = vmax.f32 %v918_v25, %v974_v7  ;;  %v7611_v20 = vmax.f32 %v7585_v35, %v7599_v53  ;;  %v2839_v48 = vpack.c.bf16 %v5662_v39, %v5582_v14  ;;  %v5682_v11 = vmax.f32 %v919_v56, %v976_v18 }
  0x9f   : > { %v366_v54 = vrot.slane %v297_v47, 6  ;;  %v445_v55 = vsel %vm340_vm1, -inf, %v365_v40  ;;  %v245_v10 = vmax.f32 %v217_v2, %v5562_v28  ;;  %4443 = vmatmul.mubr.msk.bf16.gmra.mxu1 %vm2872_vm0, %v2838_v24 }
  0xa0   : > { %v244_v27 = vmax.f32 %v7611_v20, %v7600_v50  ;;  %v1093_v63 = vmax.f32 %v5605_v42, %v5674_v62  ;;  %v5689_v51 = vmax.f32 %v1091_v59, %v5674_v62  ;;  %v1145_v35 = vmax.f32 %v5618_v36, %v5674_v62  ;;  %4446 = vmatprep.mubr.msk.bf16.mxu1 %vm2872_vm0, %v2839_v48 }
  0xa1   : > { %v1169_v53 = vmax.f32 %v1143_v4, %v5674_v62  ;;  %v1094_v44 = vmax.f32 %v5607_v34, %v5682_v11  ;;  %v5697_v0 = vmax.f32 %v1092_v1, %v5682_v11  ;;  %v1146_v31 = vmax.f32 %v5621_v43, %v5682_v11 }
  0xa2   : > { %v1170_v5 = vmax.f32 %v1144_v57, %v5682_v11  ;;  %v2854_v4 = vpack.c.bf16 %v5682_v11, %v5674_v62  ;;  %v367_v21 = vsel %vm340_vm1, %v365_v40, %v366_v54  ;;  %v461_v41 = vsel %vm340_vm1, %v366_v54, -inf  ;;  %v5728_v54 = vld [vmem:[%s4855_s9 + $0xb0] sm:$0xff] }
  0xa3   : > { %v1234_v59 = vrot.slane %v1169_v53, 6  ;;  %v542_v58 = vrot.slane %v445_v55, 1  ;;  %v543_v45 = vrot.slane %v367_v21, 1  ;;  %v545_v19 = vrot.slane %v461_v41, 1 }
  0xa4   : > { %v1235_v1 = vrot.slane %v1170_v5, 6  ;;  %4405 = vmatmul.mubr.msk.bf16.gmra.mxu0 %vm2872_vm0, %v2854_v4  ;;  %v687_v50 = vrot.slane %v445_v55, 2  ;;  %v688_v24 = vrot.slane %v367_v21, 2  ;;  %v690_v26 = vrot.slane %v461_v41, 2  ;;  %v5732_v4 = vld [vmem:[%s4855_s9 + $0xb8] sm:$0xff] }
  0xa5   : > { %v5712_v57 = vsel %vm340_vm1, -inf, %v1234_v59  ;;  %v544_v52 = vsel %vm501_vm2, %v542_v58, %v543_v45  ;;  %v546_v25 = vsel %vm501_vm2, %v543_v45, %v545_v19  ;;  %v832_v40 = vrot.slane %v445_v55, 3 }
  0xa6   : > { %v5716_v38 = vsel %vm340_vm1, %v1234_v59, %v1235_v1  ;;  %v5719_v23 = vsel %vm340_vm1, %v1235_v1, -inf  ;;  %v630_v7 = vmax.f32 %v445_v55, %v544_v52  ;;  %v689_v61 = vsel %vm646_vm3, %v687_v50, %v688_v24 }
  0xa7   : > { %v631_v56 = vmax.f32 %v367_v21, %v546_v25  ;;  %v691_v47 = vsel %vm646_vm3, %v688_v24, %v690_v26  ;;  %v833_v6 = vrot.slane %v367_v21, 3  ;;  %v835_v18 = vrot.slane %v461_v41, 3  ;;  %v4701_v25 = vld [vmem:[%s4855_s9 + $0x90] sm:$0xff] }
  0xa8   : > { %v775_v2 = vmax.f32 %v630_v7, %v689_v61  ;;  %v977_v20 = vrot.slane %v445_v55, 4  ;;  %v978_v48 = vrot.slane %v367_v21, 4  ;;  %v980_v59 = vrot.slane %v461_v41, 4  ;;  %v4702_v61 = vld [vmem:[%s4855_s9 + $0x88] sm:$0xff] }
  0xa9   : > { %v776_v53 = vmax.f32 %v631_v56, %v691_v47  ;;  %v834_v5 = vsel %vm791_vm4, %v832_v40, %v833_v6  ;;  %v272_v1 = vmax.f32 %v244_v27, %v5582_v14  ;;  %v836_v58 = vsel %vm791_vm4, %v833_v6, %v835_v18  ;;  %v4700_v27 = vld [vmem:[%s4855_s9 + $0x80] sm:$0xff] }
  0xaa   : > { %v920_v45 = vmax.f32 %v775_v2, %v834_v5  ;;  %v979_v19 = vsel %vm936_vm5, %v977_v20, %v978_v48  ;;  %v273_v55 = vmax.f32 %v245_v10, %v5662_v39  ;;  %v981_v50 = vsel %vm936_vm5, %v978_v48, %v980_v59 }
  0xab   : > { %v921_v21 = vmax.f32 %v776_v53, %v836_v58  ;;  %v298_v24 = vmax.f32 %v272_v1, %v5728_v54  ;;  %v2840_v41 = vpack.c.bf16 %v5732_v4, %v5728_v54  ;;  %v218_v7 = vmax.f32 %v4700_v27, %v4701_v25 }
  0xac   : > { %v5742_v26 = vmax.f32 %v920_v45, %v979_v19  ;;  %v299_v52 = vmax.f32 %v273_v55, %v5732_v4  ;;  %v219_v56 = vmax.f32 %v4702_v61, %v5562_v28  ;;  %v220_v40 = vmax.f32 %v4701_v25, %v5582_v14 }
  0xad   : > { %v5749_v47 = vmax.f32 %v921_v21, %v981_v50  ;;  %v368_v10 = vrot.slane %v298_v24, 6  ;;  %4447 = vmatmul.mubr.msk.bf16.gmra.mxu1 %vm2872_vm0, %v2840_v41  ;;  %v221_v6 = vmax.f32 %v5562_v28, %v5662_v39 }
  0xae   : > { %v1095_v2 = vmax.f32 %v5674_v62, %v5742_v26  ;;  %v5761_v18 = vmax.f32 %v1093_v63, %v5742_v26  ;;  %v1147_v20 = vmax.f32 %v5689_v51, %v5742_v26  ;;  %v1171_v48 = vmax.f32 %v1145_v35, %v5742_v26 }
  0xaf   : > { %v1096_v28 = vmax.f32 %v5682_v11, %v5749_v47  ;;  %v5775_v53 = vmax.f32 %v1094_v44, %v5749_v47  ;;  %v1148_v42 = vmax.f32 %v5697_v0, %v5749_v47  ;;  %v1172_v63 = vmax.f32 %v1146_v31, %v5749_v47 }
  0xb0   : > { %v1237_v5 = vrot.slane %v1171_v48, 6  ;;  %v2855_v36 = vpack.c.bf16 %v5749_v47, %v5742_v26  ;;  %v369_v35 = vrot.slane %v299_v52, 6  ;;  %v446_v59 = vsel %vm340_vm1, -inf, %v368_v10 }
  0xb1   : > { %v1238_v1 = vrot.slane %v1172_v63, 6  ;;  %v547_v58 = vrot.slane %v446_v59, 1  ;;  %v692_v34 = vrot.slane %v446_v59, 2  ;;  %v837_v44 = vrot.slane %v446_v59, 3 }
  0xb2   : > { %v5787_v45 = vsel %vm340_vm1, -inf, %v1237_v5  ;;  %4408 = vmatprep.mubr.msk.bf16.mxu0 %vm2872_vm0, %v2855_v36  ;;  %v370_v19 = vsel %vm340_vm1, %v368_v10, %v369_v35  ;;  %v462_v43 = vsel %vm340_vm1, %v369_v35, -inf  ;;  %v982_v31 = vrot.slane %v446_v59, 4 }
  0xb3   : > { %v5793_v55 = vsel %vm340_vm1, %v1237_v5, %v1238_v1  ;;  %v5796_v21 = vsel %vm340_vm1, %v1238_v1, -inf  ;;  %v548_v24 = vrot.slane %v370_v19, 1  ;;  %v550_v52 = vrot.slane %v462_v43, 1 }
  0xb4   : > { %v693_v27 = vrot.slane %v370_v19, 2  ;;  %v695_v25 = vrot.slane %v462_v43, 2  ;;  %v838_v10 = vrot.slane %v370_v19, 3  ;;  %v840_v48 = vrot.slane %v462_v43, 3 }
  0xb5   : > { %v549_v61 = vsel %vm501_vm2, %v547_v58, %v548_v24  ;;  %v983_v63 = vrot.slane %v370_v19, 4  ;;  %v551_v5 = vsel %vm501_vm2, %v548_v24, %v550_v52  ;;  %v985_v8 = vrot.slane %v462_v43, 4 }
  0xb6   : > { %v632_v36 = vmax.f32 %v446_v59, %v549_v61  ;;  %v694_v35 = vsel %vm646_vm3, %v692_v34, %v693_v27  ;;  %v696_v1 = vsel %vm646_vm3, %v693_v27, %v695_v25  ;;  %v633_v50 = vmax.f32 %v370_v19, %v551_v5  ;;  %v5823_v61 = vld [vmem:[%s4855_s9 + $0xd0] sm:$0xff] }
  0xb7   : > { %v839_v41 = vsel %vm791_vm4, %v837_v44, %v838_v10  ;;  %v841_v3 = vsel %vm791_vm4, %v838_v10, %v840_v48  ;;  %v984_v13 = vsel %vm936_vm5, %v982_v31, %v983_v63  ;;  %v246_v59 = vmax.f32 %v218_v7, %v5582_v14  ;;  %v5826_v7 = vld [vmem:[%s4855_s9 + $0xd8] sm:$0xff] }
  0xb8   : > { %v777_v58 = vmax.f32 %v632_v36, %v694_v35  ;;  %v247_v34 = vmax.f32 %v219_v56, %v5662_v39  ;;  %v778_v24 = vmax.f32 %v633_v50, %v696_v1  ;;  %v248_v19 = vmax.f32 %v220_v40, %v5728_v54 }
  0xb9   : > { %v249_v44 = vmax.f32 %v221_v6, %v5732_v4  ;;  %v2841_v52 = vpack.c.bf16 %v5811_v37, %v5808_v32  ;;  %v986_v27 = vsel %vm936_vm5, %v983_v63, %v985_v8  ;;  %v274_v43 = vmax.f32 %v246_v59, %v5728_v54 }
  0xba   : > { %v922_v31 = vmax.f32 %v777_v58, %v839_v41  ;;  %v275_v25 = vmax.f32 %v247_v34, %v5732_v4  ;;  %v923_v56 = vmax.f32 %v778_v24, %v841_v3  ;;  %v276_v50 = vmax.f32 %v248_v19, %v5808_v32 }
  0xbb   : > { %v277_v40 = vmax.f32 %v249_v44, %v5811_v37  ;;  %4450 = vmatprep.mubr.msk.bf16.mxu1 %vm2872_vm0, %v2841_v52  ;;  %v2842_v6 = vpack.c.bf16 %v5826_v7, %v5823_v61  ;;  %v300_v8 = vmax.f32 %v274_v43, %v5808_v32  ;;  %v222_v48 = vmax.f32 %v5582_v14, %v5728_v54 }
  0xbc   : > { %v5833_v41 = vmax.f32 %v922_v31, %v984_v13  ;;  %v301_v10 = vmax.f32 %v275_v25, %v5811_v37  ;;  %v5839_v63 = vmax.f32 %v923_v56, %v986_v27  ;;  %v302_v3 = vmax.f32 %v276_v50, %v5823_v61 }
  0xbd   : > { %v303_v5 = vmax.f32 %v277_v40, %v5826_v7  ;;  %4451 = vmatmul.mubr.msk.bf16.gmra.mxu1 %vm2872_vm0, %v2842_v6  ;;  %v5877_v11 = vmax.f32 %v222_v48, %v5808_v32 }
  0xbe   : > { %v1097_v13 = vmax.f32 %v5742_v26, %v5833_v41  ;;  %v5852_v35 = vmax.f32 %v1095_v2, %v5833_v41  ;;  %v1173_v1 = vmax.f32 %v1147_v20, %v5833_v41  ;;  %v5866_v59 = vmax.f32 %v1096_v28, %v5839_v63 }
  0xbf   : > { %v1174_v2 = vmax.f32 %v1148_v42, %v5839_v63  ;;  %v2856_v51 = vpack.c.bf16 %v5839_v63, %v5833_v41  ;;  %v371_v20 = vrot.slane %v300_v8, 6  ;;  %v372_v24 = vrot.slane %v301_v10, 6 }
  0xc0   : > { %v1240_v34 = vrot.slane %v1173_v1, 6  ;;  %v374_v44 = vrot.slane %v302_v3, 6  ;;  %v375_v52 = vrot.slane %v303_v5, 6  ;;  %v7614_v26 = vmax.f32 %v5775_v53, %v5839_v63 }
  0xc1   : > { %v1241_v19 = vrot.slane %v1174_v2, 6  ;;  %4409 = vmatmul.mubr.msk.bf16.gmra.mxu0 %vm2872_vm0, %v2856_v51  ;;  %v373_v0 = vsel %vm340_vm1, %v371_v20, %v372_v24  ;;  %v447_v42 = vsel %vm340_vm1, -inf, %v371_v20  ;;  %v463_v31 = vsel %vm340_vm1, %v372_v24, -inf }
  0xc2   : > { %v5880_v28 = vsel %vm340_vm1, -inf, %v1240_v34  ;;  %v552_v56 = vrot.slane %v447_v42, 1  ;;  %v553_v40 = vrot.slane %v373_v0, 1  ;;  %v555_v6 = vrot.slane %v463_v31, 1 }
  0xc3   : > { %v5887_v27 = vsel %vm340_vm1, %v1240_v34, %v1241_v19  ;;  %v5890_v43 = vsel %vm340_vm1, %v1241_v19, -inf  ;;  %v697_v8 = vrot.slane %v447_v42, 2  ;;  %v698_v10 = vrot.slane %v373_v0, 2 }
  0xc4   : > { %v700_v48 = vrot.slane %v463_v31, 2  ;;  %v842_v3 = vrot.slane %v447_v42, 3  ;;  %v843_v5 = vrot.slane %v373_v0, 3  ;;  %v554_v1 = vsel %vm501_vm2, %v552_v56, %v553_v40 }
  0xc5   : > { %v556_v2 = vsel %vm501_vm2, %v553_v40, %v555_v6  ;;  %v845_v34 = vrot.slane %v463_v31, 3  ;;  %v987_v51 = vrot.slane %v447_v42, 4  ;;  %v634_v20 = vmax.f32 %v447_v42, %v554_v1 }
  0xc6   : > { %v635_v24 = vmax.f32 %v373_v0, %v556_v2  ;;  %v699_v19 = vsel %vm646_vm3, %v697_v8, %v698_v10  ;;  %v701_v25 = vsel %vm646_vm3, %v698_v10, %v700_v48  ;;  %v844_v50 = vsel %vm791_vm4, %v842_v3, %v843_v5 }
  0xc7   : > { %v846_v15 = vsel %vm791_vm4, %v843_v5, %v845_v34  ;;  %v988_v36 = vrot.slane %v373_v0, 4  ;;  %v990_v62 = vrot.slane %v463_v31, 4  ;;  %v779_v14 = vmax.f32 %v634_v20, %v699_v19 }
  0xc8   : > { %v780_v58 = vmax.f32 %v635_v24, %v701_v25  ;;  %v376_v56 = vsel %vm340_vm1, %v374_v44, %v375_v52  ;;  %v448_v40 = vsel %vm340_vm1, -inf, %v374_v44  ;;  %v464_v8 = vsel %vm340_vm1, %v375_v52, -inf }
  0xc9   : > { %v989_v6 = vsel %vm936_vm5, %v987_v51, %v988_v36  ;;  %v991_v42 = vsel %vm936_vm5, %v988_v36, %v990_v62  ;;  %v557_v1 = vrot.slane %v448_v40, 1  ;;  %v924_v10 = vmax.f32 %v779_v14, %v844_v50 }
  0xca   : > { %v925_v48 = vmax.f32 %v780_v58, %v846_v15  ;;  %v558_v3 = vrot.slane %v376_v56, 1  ;;  %v560_v2 = vrot.slane %v464_v8, 1  ;;  %v702_v5 = vrot.slane %v448_v40, 2 }
  0xcb   : > { %v703_v0 = vrot.slane %v376_v56, 2  ;;  %v705_v31 = vrot.slane %v464_v8, 2  ;;  %v847_v34 = vrot.slane %v448_v40, 3  ;;  %v5905_v25 = vmax.f32 %v924_v10, %v989_v6 }
  0xcc   : > { %v5907_v20 = vmax.f32 %v925_v48, %v991_v42  ;;  %v559_v44 = vsel %vm501_vm2, %v557_v1, %v558_v3  ;;  %v561_v51 = vsel %vm501_vm2, %v558_v3, %v560_v2  ;;  %v7612_v24 = vmax.f32 %v5749_v47, %v5839_v63 }
  0xcd   : > { %v636_v36 = vmax.f32 %v448_v40, %v559_v44  ;;  %v637_v62 = vmax.f32 %v376_v56, %v561_v51  ;;  %v704_v52 = vsel %vm646_vm3, %v702_v5, %v703_v0  ;;  %v706_v15 = vsel %vm646_vm3, %v703_v0, %v705_v31 }
  0xce   : > { %v1099_v14 = vmax.f32 %v5833_v41, %v5905_v25  ;;  %v1100_v58 = vmax.f32 %v5839_v63, %v5907_v20  ;;  %v5921_v50 = vmax.f32 %v1097_v13, %v5905_v25  ;;  %v5927_v19 = vmax.f32 %v7612_v24, %v5907_v20 }
  0xcf   : > { %v1151_v6 = vmax.f32 %v5852_v35, %v5905_v25  ;;  %v1152_v42 = vmax.f32 %v5866_v59, %v5907_v20  ;;  %v7613_v1 = vmax.f32 %v5761_v18, %v5833_v41  ;;  %v1176_v13 = vmax.f32 %v7614_v26, %v5907_v20 }
  0xd0   : > { %v2857_v47 = vpack.c.bf16 %v5907_v20, %v5905_v25  ;;  %v781_v48 = vmax.f32 %v636_v36, %v704_v52  ;;  %v782_v3 = vmax.f32 %v637_v62, %v706_v15  ;;  %v848_v2 = vrot.slane %v376_v56, 3  ;;  %v5962_v62 = vld [vmem:[%s4855_s9 + $0xe0] sm:$0xff]  ;;  %v5965_v52 = vld [vmem:[%s4855_s9 + $0xe8] sm:$0xff] }
  0xd1   : > { %v1175_v10 = vmax.f32 %v7613_v1, %v5905_v25  ;;  %v1244_v5 = vrot.slane %v1176_v13, 6  ;;  %v850_v59 = vrot.slane %v464_v8, 3  ;;  %v992_v0 = vrot.slane %v448_v40, 4 }
  0xd2   : > { %4412 = vmatprep.mubr.msk.bf16.mxu0 %vm2872_vm0, %v2857_v47  ;;  %v849_v18 = vsel %vm791_vm4, %v847_v34, %v848_v2  ;;  %v993_v41 = vrot.slane %v376_v56, 4  ;;  %v995_v31 = vrot.slane %v464_v8, 4  ;;  %v7615_v53 = vmax.f32 %v5662_v39, %v5732_v4  ;;  %v5977_v47 = vld [vmem:[%s4855_s9 + $0xf0] sm:$0xff] }
  0xd3   : > { %v1243_v35 = vrot.slane %v1175_v10, 6  ;;  %v5956_v40 = vsel %vm340_vm1, %v1244_v5, -inf  ;;  %v851_v34 = vsel %vm791_vm4, %v848_v2, %v850_v59  ;;  %v926_v36 = vmax.f32 %v781_v48, %v849_v18  ;;  %v5980_v48 = vld [vmem:[%s4855_s9 + $0xf8] sm:$0xff] }
  0xd4   : > { %v251_v63 = vmax.f32 %v7615_v53, %v5811_v37  ;;  %7617 = vst [vmem:[#allocation7_spill] sm:$0xff] %v5956_v40  ;;  %v927_v39 = vmax.f32 %v782_v3, %v851_v34  ;;  %v994_v15 = vsel %vm936_vm5, %v992_v0, %v993_v41  ;;  %v996_v24 = vsel %vm936_vm5, %v993_v41, %v995_v31 }
  0xd5   : > { %v5950_v44 = vsel %vm340_vm1, %v1243_v35, %v1244_v5  ;;  %v5953_v51 = vsel %vm340_vm1, -inf, %v1243_v35  ;;  %v278_v1 = vmax.f32 %v5877_v11, %v5823_v61  ;;  %v5972_v26 = vmax.f32 %v926_v36, %v994_v15 }
  0xd6   : > { %7616 = vst [vmem:[#allocation6_spill] sm:$0xff] %v5953_v51  ;;  %v279_v10 = vmax.f32 %v251_v63, %v5826_v7  ;;  %v5974_v13 = vmax.f32 %v927_v39, %v996_v24  ;;  %v224_v3 = vmax.f32 %v5728_v54, %v5808_v32  ;;  %v225_v2 = vmax.f32 %v5732_v4, %v5811_v37 }
  0xd7   : > { %v304_v35 = vmax.f32 %v278_v1, %v5962_v62  ;;  %v2843_v5 = vpack.c.bf16 %v5965_v52, %v5962_v62  ;;  %v2844_v59 = vpack.c.bf16 %v5980_v48, %v5977_v47  ;;  %v5993_v0 = vmax.f32 %v1099_v14, %v5972_v26 }
  0xd8   : > { %v305_v11 = vmax.f32 %v279_v10, %v5965_v52  ;;  %v5996_v18 = vmax.f32 %v1100_v58, %v5974_v13  ;;  %v1177_v41 = vmax.f32 %v1151_v6, %v5972_v26  ;;  %v1178_v31 = vmax.f32 %v1152_v42, %v5974_v13 }
  0xd9   : > { %v2858_v53 = vpack.c.bf16 %v5974_v13, %v5972_v26  ;;  %v377_v63 = vrot.slane %v304_v35, 6  ;;  %4454 = vmatprep.mubr.msk.bf16.mxu1 %vm2872_vm0, %v2843_v5  ;;  %v252_v58 = vmax.f32 %v224_v3, %v5823_v61  ;;  %v253_v34 = vmax.f32 %v225_v2, %v5826_v7 }
  0xda   : > { %v378_v14 = vrot.slane %v305_v11, 6  ;;  %4455 = vmatmul.mubr.msk.bf16.gmra.mxu1 %vm2872_vm0, %v2844_v59  ;;  %v226_v36 = vmax.f32 %v5808_v32, %v5823_v61  ;;  %v1246_v39 = vrot.slane %v1177_v41, 6  ;;  %v1247_v6 = vrot.slane %v1178_v31, 6 }
  0xdb   : > { %4413 = vmatmul.mubr.msk.bf16.gmra.mxu0 %vm2872_vm0, %v2858_v53  ;;  %v449_v42 = vsel %vm340_vm1, -inf, %v377_v63  ;;  %v227_v15 = vmax.f32 %v5811_v37, %v5826_v7  ;;  %v280_v51 = vmax.f32 %v252_v58, %v5962_v62 }
  0xdc   : > { %v379_v24 = vsel %vm340_vm1, %v377_v63, %v378_v14  ;;  %v465_v1 = vsel %vm340_vm1, %v378_v14, -inf  ;;  %v562_v10 = vrot.slane %v449_v42, 1  ;;  %v707_v3 = vrot.slane %v449_v42, 2 }
  0xdd   : > { %v6019_v2 = vsel %vm340_vm1, %v1246_v39, %v1247_v6  ;;  %v6022_v32 = vsel %vm340_vm1, -inf, %v1246_v39  ;;  %v6025_v35 = vsel %vm340_vm1, %v1247_v6, -inf  ;;  %v563_v11 = vrot.slane %v379_v24, 1 }
  0xde   : > { %7618 = vst [vmem:[#allocation8_spill] sm:$0xff] %v6019_v2  ;;  %7619 = vst [vmem:[#allocation16_spill] sm:$0xff] %v6022_v32  ;;  %v565_v59 = vrot.slane %v465_v1, 1  ;;  %v708_v41 = vrot.slane %v379_v24, 2  ;;  %v710_v53 = vrot.slane %v465_v1, 2  ;;  %v852_v63 = vrot.slane %v449_v42, 3 }
  0xdf   : > { %7620 = vst [vmem:[#allocation5_spill] sm:$0xff] %v6025_v35  ;;  %v564_v31 = vsel %vm501_vm2, %v562_v10, %v563_v11  ;;  %v853_v14 = vrot.slane %v379_v24, 3  ;;  %v855_v4 = vrot.slane %v465_v1, 3  ;;  %v997_v32 = vrot.slane %v449_v42, 4 }
  0xe0   : > { %v566_v8 = vsel %vm501_vm2, %v563_v11, %v565_v59  ;;  %v638_v56 = vmax.f32 %v449_v42, %v564_v31  ;;  %v709_v39 = vsel %vm646_vm3, %v707_v3, %v708_v41  ;;  %v711_v54 = vsel %vm646_vm3, %v708_v41, %v710_v53 }
  0xe1   : > { %v639_v6 = vmax.f32 %v379_v24, %v566_v8  ;;  %v854_v5 = vsel %vm791_vm4, %v852_v63, %v853_v14  ;;  %v856_v35 = vsel %vm791_vm4, %v853_v14, %v855_v4  ;;  %v998_v2 = vrot.slane %v379_v24, 4 }
  0xe2   : > { %v783_v37 = vmax.f32 %v638_v56, %v709_v39  ;;  %v1000_v10 = vrot.slane %v465_v1, 4  ;;  %v281_v11 = vmax.f32 %v253_v34, %v5965_v52  ;;  %v254_v59 = vmax.f32 %v226_v36, %v5962_v62 }
  0xe3   : > { %v784_v40 = vmax.f32 %v639_v6, %v711_v54  ;;  %v999_v8 = vsel %vm936_vm5, %v997_v32, %v998_v2  ;;  %v255_v31 = vmax.f32 %v227_v15, %v5965_v52  ;;  %v306_v56 = vmax.f32 %v280_v51, %v5977_v47 }
  0xe4   : > { %v928_v3 = vmax.f32 %v783_v37, %v854_v5  ;;  %v1001_v41 = vsel %vm936_vm5, %v998_v2, %v1000_v10  ;;  %v307_v4 = vmax.f32 %v281_v11, %v5980_v48  ;;  %v282_v54 = vmax.f32 %v254_v59, %v5977_v47 }
  0xe5   : > { %v929_v42 = vmax.f32 %v784_v40, %v856_v35  ;;  %v283_v58 = vmax.f32 %v255_v31, %v5980_v48  ;;  %v1101_v34 = vmax.f32 %v5905_v25, %v5972_v26  ;;  %v380_v15 = vrot.slane %v306_v56, 6 }
  0xe6   : > { %v6044_v24 = vmax.f32 %v928_v3, %v999_v8  ;;  %v381_v40 = vrot.slane %v307_v4, 6  ;;  %v383_v2 = vrot.slane %v282_v54, 6  ;;  %v7621_v32 = vmax.f32 %v5921_v50, %v5972_v26 }
  0xe7   : > { %v6051_v1 = vmax.f32 %v929_v42, %v1001_v41  ;;  %v384_v5 = vrot.slane %v283_v58, 6  ;;  %v7622_v53 = vmax.f32 %v5927_v19, %v5974_v13  ;;  %v450_v50 = vsel %vm340_vm1, -inf, %v380_v15 }
  0xe8   : > { %v1155_v51 = vmax.f32 %v5993_v0, %v6044_v24  ;;  %v1179_v35 = vmax.f32 %v7621_v32, %v6044_v24  ;;  %v6060_v37 = vmax.f32 %v1101_v34, %v6044_v24  ;;  %v382_v14 = vsel %vm340_vm1, %v380_v15, %v381_v40 }
  0xe9   : > { %v1156_v25 = vmax.f32 %v5996_v18, %v6051_v1  ;;  %v1180_v63 = vmax.f32 %v7622_v53, %v6051_v1  ;;  %v2859_v0 = vpack.c.bf16 %v6051_v1, %v6044_v24  ;;  %v466_v6 = vsel %vm340_vm1, %v381_v40, -inf }
  0xea   : > { %v1249_v39 = vrot.slane %v1179_v35, 6  ;;  %v568_v10 = vrot.slane %v382_v14, 1  ;;  %v567_v18 = vrot.slane %v450_v50, 1  ;;  %v570_v59 = vrot.slane %v466_v6, 1 }
  0xeb   : > { %v1250_v11 = vrot.slane %v1180_v63, 6  ;;  %4416 = vmatprep.mubr.msk.bf16.mxu0 %vm2872_vm0, %v2859_v0  ;;  %v712_v3 = vrot.slane %v450_v50, 2  ;;  %v713_v8 = vrot.slane %v382_v14, 2  ;;  %v715_v41 = vrot.slane %v466_v6, 2 }
  0xec   : > { %v6075_v19 = vsel %vm340_vm1, -inf, %v1249_v39  ;;  %v857_v31 = vrot.slane %v450_v50, 3  ;;  %v569_v54 = vsel %vm501_vm2, %v567_v18, %v568_v10  ;;  %v571_v34 = vsel %vm501_vm2, %v568_v10, %v570_v59 }
  0xed   : > { %v6078_v42 = vsel %vm340_vm1, %v1249_v39, %v1250_v11  ;;  %v6081_v56 = vsel %vm340_vm1, %v1250_v11, -inf  ;;  %v640_v15 = vmax.f32 %v450_v50, %v569_v54  ;;  %v714_v40 = vsel %vm646_vm3, %v712_v3, %v713_v8 }
  0xee   : > { %7623 = vst [vmem:[#allocation15_spill] sm:$0xff] %v6078_v42  ;;  %v641_v32 = vmax.f32 %v382_v14, %v571_v34  ;;  %v716_v35 = vsel %vm646_vm3, %v713_v8, %v715_v41  ;;  %v858_v53 = vrot.slane %v382_v14, 3  ;;  %v860_v63 = vrot.slane %v466_v6, 3 }
  0xef   : > { %v785_v0 = vmax.f32 %v640_v15, %v714_v40  ;;  %v1002_v39 = vrot.slane %v450_v50, 4  ;;  %v1003_v11 = vrot.slane %v382_v14, 4  ;;  %v1005_v36 = vrot.slane %v466_v6, 4 }
  0xf0   : > { %v786_v42 = vmax.f32 %v641_v32, %v716_v35  ;;  %v859_v4 = vsel %vm791_vm4, %v857_v31, %v858_v53  ;;  %v861_v18 = vsel %vm791_vm4, %v858_v53, %v860_v63  ;;  %v385_v58 = vsel %vm340_vm1, %v383_v2, %v384_v5 }
  0xf1   : > { %v930_v10 = vmax.f32 %v785_v0, %v859_v4  ;;  %v1004_v59 = vsel %vm936_vm5, %v1002_v39, %v1003_v11  ;;  %v1006_v3 = vsel %vm936_vm5, %v1003_v11, %v1005_v36  ;;  %v451_v8 = vsel %vm340_vm1, -inf, %v383_v2 }
  0xf2   : > { %v931_v41 = vmax.f32 %v786_v42, %v861_v18  ;;  %v467_v54 = vsel %vm340_vm1, %v384_v5, -inf  ;;  %v572_v50 = vrot.slane %v451_v8, 1  ;;  %v573_v14 = vrot.slane %v385_v58, 1 }
  0xf3   : > { %v6096_v6 = vmax.f32 %v930_v10, %v1004_v59  ;;  %v575_v34 = vrot.slane %v467_v54, 1  ;;  %v717_v31 = vrot.slane %v451_v8, 2  ;;  %v718_v15 = vrot.slane %v385_v58, 2 }
  0xf4   : > { %v6098_v40 = vmax.f32 %v931_v41, %v1006_v3  ;;  %v574_v4 = vsel %vm501_vm2, %v572_v50, %v573_v14  ;;  %v720_v32 = vrot.slane %v467_v54, 2  ;;  %v862_v35 = vrot.slane %v451_v8, 3 }
  0xf5   : > { %v1181_v36 = vmax.f32 %v1155_v51, %v6096_v6  ;;  %v576_v2 = vsel %vm501_vm2, %v573_v14, %v575_v34  ;;  %v642_v42 = vmax.f32 %v451_v8, %v574_v4  ;;  %v719_v5 = vsel %vm646_vm3, %v717_v31, %v718_v15 }
  0xf6   : > { %v1182_v53 = vmax.f32 %v1156_v25, %v6098_v40  ;;  %v2860_v63 = vpack.c.bf16 %v6098_v40, %v6096_v6  ;;  %v643_v0 = vmax.f32 %v385_v58, %v576_v2  ;;  %v721_v39 = vsel %vm646_vm3, %v718_v15, %v720_v32 }
  0xf7   : > { %v1252_v11 = vrot.slane %v1181_v36, 6  ;;  %v787_v18 = vmax.f32 %v642_v42, %v719_v5  ;;  %v863_v10 = vrot.slane %v385_v58, 3  ;;  %v865_v59 = vrot.slane %v467_v54, 3 }
  0xf8   : > { %v1253_v3 = vrot.slane %v1182_v53, 6  ;;  %4417 = vmatmul.mubr.msk.bf16.gmra.mxu0 %vm2872_vm0, %v2860_v63  ;;  %v788_v51 = vmax.f32 %v643_v0, %v721_v39  ;;  %v1007_v41 = vrot.slane %v451_v8, 4  ;;  %v1008_v50 = vrot.slane %v385_v58, 4 }
  0xf9   : > { %v6110_v14 = vsel %vm340_vm1, -inf, %v1252_v11  ;;  %v864_v25 = vsel %vm791_vm4, %v862_v35, %v863_v10  ;;  %v866_v34 = vsel %vm791_vm4, %v863_v10, %v865_v59  ;;  %v1010_v31 = vrot.slane %v467_v54, 4 }
  0xfa   : > { %v6115_v15 = vsel %vm340_vm1, %v1252_v11, %v1253_v3  ;;  %v6118_v4 = vsel %vm340_vm1, %v1253_v3, -inf  ;;  %v932_v36 = vmax.f32 %v787_v18, %v864_v25  ;;  %v933_v58 = vmax.f32 %v788_v51, %v866_v34 }
  0xfb   : > { %v1009_v2 = vsel %vm936_vm5, %v1007_v41, %v1008_v50  ;;  %v1011_v42 = vsel %vm936_vm5, %v1008_v50, %v1010_v31  ;;  %v7624_v54 = vmax.f32 %v5907_v20, %v5974_v13  ;;  %v1157_v53 = vmax.f32 %v6060_v37, %v6096_v6 }
  0xfc   : > { %v6124_v35 = vmax.f32 %v932_v36, %v1009_v2  ;;  %v228_v63 = vmax.f32 %v5823_v61, %v5962_v62  ;;  %v6134_v0 = vmax.f32 %v933_v58, %v1011_v42  ;;  %v229_v39 = vmax.f32 %v5826_v7, %v5965_v52 }
  0xfd   : > { %v1130_v5 = vmax.f32 %v7624_v54, %v6051_v1  ;;  %v1103_v11 = vmax.f32 %v5972_v26, %v6044_v24  ;;  %v1104_v18 = vmax.f32 %v5974_v13, %v6051_v1  ;;  %v1105_v61 = vmax.f32 %v6044_v24, %v6096_v6 }
  0xfe   : > { %v1183_v10 = vmax.f32 %v1157_v53, %v6124_v35  ;;  %v256_v37 = vmax.f32 %v228_v63, %v5977_v47  ;;  %v2861_v62 = vpack.c.bf16 %v6134_v0, %v6124_v35  ;;  %v257_v7 = vmax.f32 %v229_v39, %v5980_v48 }
  0xff   : > { %v1158_v20 = vmax.f32 %v1130_v5, %v6098_v40  ;;  %v1106_v52 = vmax.f32 %v6051_v1, %v6098_v40  ;;  %v6159_v51 = vmax.f32 %v1103_v11, %v6096_v6  ;;  %v6162_v48 = vmax.f32 %v1104_v18, %v6098_v40 }
 0x100   : > { %v1255_v59 = vrot.slane %v1183_v10, 6  ;;  %v386_v3 = vrot.slane %v256_v37, 6  ;;  %4420 = vmatprep.mubr.msk.bf16.mxu0 %vm2872_vm0, %v2861_v62  ;;  %v387_v24 = vrot.slane %v257_v7, 6  ;;  %v6165_v1 = vmax.f32 %v1105_v61, %v6124_v35 }
 0x101   : > { %v1184_v13 = vmax.f32 %v1158_v20, %v6134_v0  ;;  %v6172_v34 = vmax.f32 %v1106_v52, %v6134_v0 }
 0x102   : > { %v6168_v50 = vsel %vm340_vm1, -inf, %v1255_v59  ;;  %v452_v25 = vsel %vm340_vm1, -inf, %v386_v3  ;;  %v388_v5 = vsel %vm340_vm1, %v386_v3, %v387_v24  ;;  %v468_v53 = vsel %vm340_vm1, %v387_v24, -inf }
 0x103   : > { %v1256_v41 = vrot.slane %v1184_v13, 6  ;;  %7625 = vst [vmem:[#allocation18_spill] sm:$0xff] %v6168_v50  ;;  %v1439_v31 = vrot.slane %v6168_v50, 1  ;;  %v1583_v36 = vrot.slane %v6168_v50, 2  ;;  %v577_v24 = vrot.slane %v452_v25, 1 }
 0x104   : > { %v580_v2 = vrot.slane %v468_v53, 1  ;;  %v722_v37 = vrot.slane %v452_v25, 2  ;;  %v723_v61 = vrot.slane %v388_v5, 2  ;;  %v725_v10 = vrot.slane %v468_v53, 2 }
 0x105   : > { %v6179_v42 = vsel %vm340_vm1, %v1255_v59, %v1256_v41  ;;  %v6182_v54 = vsel %vm340_vm1, %v1256_v41, -inf  ;;  %v578_v41 = vrot.slane %v388_v5, 1  ;;  %v870_v8 = vrot.slane %v468_v53, 3 }
 0x106   : > { %7626 = vst [vmem:[#allocation11_spill] sm:$0xff] %v6182_v54  ;;  %v1440_v63 = vrot.slane %v6179_v42, 1  ;;  %v1442_v39 = vrot.slane %v6182_v54, 1  ;;  %v1584_v11 = vrot.slane %v6179_v42, 2  ;;  %v1586_v18 = vrot.slane %v6182_v54, 2 }
 0x107   : > { %v726_v58 = vsel %vm646_vm3, %v723_v61, %v725_v10  ;;  %v1012_v32 = vrot.slane %v452_v25, 4  ;;  %v1013_v26 = vrot.slane %v388_v5, 4  ;;  %v7629_v10 = vmax.f32 %v5492_v49, %v5497_v33 }
 0x108   : > { %v1441_v62 = vsel %vm501_vm2, %v1439_v31, %v1440_v63  ;;  %v6196_v7 = vsel %vm501_vm2, %v1440_v63, %v1442_v39  ;;  %v1585_v52 = vsel %vm646_vm3, %v1583_v36, %v1584_v11  ;;  %v6200_v13 = vsel %vm646_vm3, %v1584_v11, %v1586_v18 }
 0x109   : > { %7627 = vst [vmem:[#allocation10_spill] sm:$0xff] %v6196_v7  ;;  %v1515_v59 = vmax.f32 %v6168_v50, %v1441_v62  ;;  %v579_v63 = vsel %vm501_vm2, %v577_v24, %v578_v41  ;;  %v867_v39 = vrot.slane %v452_v25, 3  ;;  %v868_v36 = vrot.slane %v388_v5, 3 }
 0x10a   : > { %v581_v11 = vsel %vm501_vm2, %v578_v41, %v580_v2  ;;  %v644_v18 = vmax.f32 %v452_v25, %v579_v63  ;;  %v724_v62 = vsel %vm646_vm3, %v722_v37, %v723_v61  ;;  %v1160_v2 = vmax.f32 %v6162_v48, %v6134_v0 }
 0x10b   : > { %v6205_v31 = vmax.f32 %v1515_v59, %v1585_v52  ;;  %v645_v20 = vmax.f32 %v388_v5, %v581_v11  ;;  %v869_v3 = vsel %vm791_vm4, %v867_v39, %v868_v36  ;;  %v1015_v52 = vrot.slane %v468_v53, 4 }
 0x10c   : > { %v789_v47 = vmax.f32 %v644_v18, %v724_v62  ;;  %v1159_v59 = vmax.f32 %v6159_v51, %v6124_v35  ;;  %v1983_v37 = vmax.f32 %v7629_v10, %v5502_v29  ;;  %v1014_v25 = vsel %vm936_vm5, %v1012_v32, %v1013_v26 }
 0x10d   : > { %7628 = vst [vmem:[#allocation17_spill] sm:$0xff] %v6205_v31  ;;  %v790_v24 = vmax.f32 %v645_v20, %v726_v58  ;;  %v871_v31 = vsel %vm791_vm4, %v868_v36, %v870_v8  ;;  %v1016_v5 = vsel %vm936_vm5, %v1013_v26, %v1015_v52  ;;  %v7630_v51 = vmax.f32 %v5495_v30, %v5499_v60 }
 0x10e   : > { %v934_v61 = vmax.f32 %v789_v47, %v869_v3  ;;  %v6228_v8 = vmax.f32 %v1983_v37, %v5506_v22  ;;  %v2093_v48 = vrot.slane %v1983_v37, 6  ;;  %v3297_v20 = vpack.c.bf16 %v5495_v30, %v5492_v49 }
 0x10f   : > { %v1984_v58 = vmax.f32 %v7630_v51, %v5504_v17  ;;  %v935_v53 = vmax.f32 %v790_v24, %v871_v31  ;;  %v3298_v26 = vpack.c.bf16 %v5499_v60, %v5497_v33  ;;  %v7631_v36 = vmax.f32 %v6096_v6, %v6124_v35 }
 0x110   : > { %v1079_v41 = vmax.f32 %v934_v61, %v1014_v25  ;;  %v6239_v31 = vsel %vm340_vm1, -inf, %v2093_v48  ;;  %v7632_v62 = vmax.f32 %v6098_v40, %v6134_v0 }
 0x111   : > { %v6233_v47 = vmax.f32 %v1984_v58, %v5508_v46  ;;  %v2094_v32 = vrot.slane %v1984_v58, 6  ;;  %v1080_v3 = vmax.f32 %v935_v53, %v1016_v5 }
 0x112   : > { %v1135_v49 = vmax.f32 %v7631_v36, %v1079_v41  ;;  %v1161_v30 = vmax.f32 %v6165_v1, %v1079_v41  ;;  %v1185_v11 = vmax.f32 %v1159_v59, %v1079_v41 }
 0x113   : > { %v6247_v18 = vsel %vm340_vm1, %v2093_v48, %v2094_v32  ;;  %v1136_v52 = vmax.f32 %v7632_v62, %v1080_v3  ;;  %v1162_v24 = vmax.f32 %v6172_v34, %v1080_v3  ;;  %v1186_v10 = vmax.f32 %v1160_v2, %v1080_v3 }
 0x114   : > { %v2862_v37 = vpack.c.bf16 %v1080_v3, %v1079_v41  ;;  %v1258_v61 = vrot.slane %v1185_v11, 6  ;;  %v1261_v25 = vrot.slane %v1161_v30, 6  ;;  %v1264_v5 = vrot.slane %v1135_v49, 6 }
 0x115   : > { %v1259_v35 = vrot.slane %v1186_v10, 6  ;;  %v1262_v51 = vrot.slane %v1162_v24, 6  ;;  %v1265_v1 = vrot.slane %v1136_v52, 6  ;;  %v6256_v59 = vsel %vm340_vm1, %v2094_v32, -inf }
 0x116   : > { %4421 = vmatmul.mubr.msk.bf16.gmra.mxu0 %vm2872_vm0, %v2862_v37  ;;  %v6259_v40 = vsel %vm340_vm1, -inf, %v1258_v61  ;;  %v6262_v0 = vsel %vm340_vm1, -inf, %v1261_v25  ;;  %v6265_v34 = vsel %vm340_vm1, -inf, %v1264_v5 }
 0x117   : > { %7633 = vst [vmem:[#allocation9_spill] sm:$0xff] %v6265_v34  ;;  %4460 = vmatprep.mubr.msk.bf16.mxu0 %vm2872_vm0, %v3297_v20  ;;  %v6270_v58 = vsel %vm340_vm1, %v1258_v61, %v1259_v35  ;;  %v6273_v53 = vsel %vm340_vm1, %v1261_v25, %v1262_v51  ;;  %v6276_v48 = vsel %vm340_vm1, %v1264_v5, %v1265_v1  ;;  %v6279_v41 = vsel %vm340_vm1, %v1259_v35, -inf }
 0x118   : > { %v6282_v32 = vsel %vm340_vm1, %v1262_v51, -inf  ;;  %v6285_v3 = vsel %vm340_vm1, %v1265_v1, -inf  ;;  %v1444_v20 = vrot.slane %v6259_v40, 1  ;;  %v1445_v36 = vrot.slane %v6270_v58, 1 }
 0x119   : > { %v1447_v49 = vrot.slane %v6279_v41, 1  ;;  %v1449_v30 = vrot.slane %v6262_v0, 1  ;;  %v1450_v11 = vrot.slane %v6273_v53, 1  ;;  %v1452_v62 = vrot.slane %v6282_v32, 1 }
 0x11a   : > { %v1446_v52 = vsel %vm501_vm2, %v1444_v20, %v1445_v36  ;;  %v1454_v24 = vrot.slane %v6265_v34, 1  ;;  %v1455_v10 = vrot.slane %v6276_v48, 1  ;;  %v1457_v37 = vrot.slane %v6285_v3, 1 }
 0x11b   : > { %v1448_v61 = vsel %vm501_vm2, %v1445_v36, %v1447_v49  ;;  %v1451_v25 = vsel %vm501_vm2, %v1449_v30, %v1450_v11  ;;  %v1453_v5 = vsel %vm501_vm2, %v1450_v11, %v1452_v62  ;;  %v1517_v35 = vmax.f32 %v6259_v40, %v1446_v52 }
 0x11c   : > { %v1456_v51 = vsel %vm501_vm2, %v1454_v24, %v1455_v10  ;;  %v6303_v1 = vsel %vm501_vm2, %v1455_v10, %v1457_v37  ;;  %v1518_v20 = vmax.f32 %v6270_v58, %v1448_v61  ;;  %v1519_v39 = vmax.f32 %v6262_v0, %v1451_v25 }
 0x11d   : > { %7634 = vst [vmem:[#allocation14_spill] sm:$0xff] %v6303_v1  ;;  %v1520_v63 = vmax.f32 %v6273_v53, %v1453_v5  ;;  %v1521_v6 = vmax.f32 %v6265_v34, %v1456_v51  ;;  %v1588_v49 = vrot.slane %v6259_v40, 2  ;;  %v1589_v30 = vrot.slane %v6270_v58, 2 }
 0x11e   : > { %4461 = vmatmul.mubr.msk.bf16.vlgmr.msra.gmra.mxu0 %vm2872_vm0, %v3298_v26  ;;  %v1591_v11 = vrot.slane %v6279_v41, 2  ;;  %v1593_v62 = vrot.slane %v6262_v0, 2  ;;  %v1594_v52 = vrot.slane %v6273_v53, 2  ;;  %v1596_v24 = vrot.slane %v6282_v32, 2 }
 0x11f   : > { %v1598_v10 = vrot.slane %v6265_v34, 2  ;;  %v7523_v37 = vrot.slane %v6276_v48, 2  ;;  %v1590_v25 = vsel %vm646_vm3, %v1588_v49, %v1589_v30  ;;  %v1732_v51 = vrot.slane %v6259_v40, 3 }
 0x120   : > { %v1592_v26 = vsel %vm646_vm3, %v1589_v30, %v1591_v11  ;;  %v1595_v5 = vsel %vm646_vm3, %v1593_v62, %v1594_v52  ;;  %v1597_v36 = vsel %vm646_vm3, %v1594_v52, %v1596_v24  ;;  %v1661_v1 = vmax.f32 %v1517_v35, %v1590_v25 }
 0x121   : > { %v1600_v2 = vsel %vm646_vm3, %v1598_v10, %v7523_v37  ;;  %v1662_v54 = vmax.f32 %v1518_v20, %v1592_v26  ;;  %v6329_v50 = vmax.f32 %v1519_v39, %v1595_v5  ;;  %v6331_v7 = vmax.f32 %v1520_v63, %v1597_v36 }
 0x122   : > { %v6333_v61 = vmax.f32 %v1521_v6, %v1600_v2  ;;  %v1733_v49 = vrot.slane %v6270_v58, 3  ;;  %v1735_v30 = vrot.slane %v6279_v41, 3  ;;  %v1737_v11 = vrot.slane %v6262_v0, 3 }
 0x123   : > { %v1738_v62 = vrot.slane %v6273_v53, 3  ;;  %v1740_v52 = vrot.slane %v6282_v32, 3  ;;  %v1876_v5 = vrot.slane %v6259_v40, 4  ;;  %v2685_v35 = vrot.slane %v6239_v31, 4 }
 0x124   : > { %7635 = vst [vmem:[#allocation13_spill] sm:$0xff] %v6333_v61  ;;  %v1734_v24 = vsel %vm791_vm4, %v1732_v51, %v1733_v49  ;;  %v1736_v6 = vsel %vm791_vm4, %v1733_v49, %v1735_v30  ;;  %v1877_v51 = vrot.slane %v6270_v58, 4  ;;  %v1879_v49 = vrot.slane %v6279_v41, 4 }
 0x125   : > { %v6346_v2 = vsel %vm791_vm4, %v1737_v11, %v1738_v62  ;;  %v6349_v20 = vsel %vm791_vm4, %v1738_v62, %v1740_v52  ;;  %v1805_v36 = vmax.f32 %v1661_v1, %v1734_v24  ;;  %v1806_v10 = vmax.f32 %v1662_v54, %v1736_v6 }
 0x126   : > { %v1881_v30 = vrot.slane %v6262_v0, 4  ;;  %v1882_v11 = vrot.slane %v6273_v53, 4  ;;  %v1884_v62 = vrot.slane %v6282_v32, 4  ;;  %v1878_v24 = vsel %vm936_vm5, %v1876_v5, %v1877_v51 }
 0x127   : > { %v1880_v40 = vsel %vm936_vm5, %v1877_v51, %v1879_v49  ;;  %v2254_v41 = vrot.slane %v6247_v18, 1  ;;  %v6373_v53 = vmax.f32 %v1805_v36, %v1878_v24  ;;  %v2256_v6 = vrot.slane %v6256_v59, 1 }
 0x128   : > { %v6367_v58 = vsel %vm936_vm5, %v1881_v30, %v1882_v11  ;;  %v6371_v0 = vsel %vm936_vm5, %v1882_v11, %v1884_v62  ;;  %v6375_v32 = vmax.f32 %v1806_v10, %v1880_v40  ;;  %v7636_v52 = vrot.slane %v6239_v31, 1 }
 0x129   : > { %v2397_v51 = vrot.slane %v6239_v31, 2  ;;  %v2398_v49 = vrot.slane %v6247_v18, 2  ;;  %v2400_v30 = vrot.slane %v6256_v59, 2  ;;  %v2257_v54 = vsel %vm501_vm2, %v2254_v41, %v2256_v6 }
 0x12a   : > { %v2255_v5 = vsel %vm501_vm2, %v7636_v52, %v2254_v41  ;;  %v2541_v36 = vrot.slane %v6239_v31, 3  ;;  %v2542_v10 = vrot.slane %v6247_v18, 3  ;;  %v2366_v62 = vmax.f32 %v6247_v18, %v2257_v54 }
 0x12b   : > { %v2365_v11 = vmax.f32 %v6239_v31, %v2255_v5  ;;  %v2399_v24 = vsel %vm646_vm3, %v2397_v51, %v2398_v49  ;;  %v2401_v52 = vsel %vm646_vm3, %v2398_v49, %v2400_v30  ;;  %v2544_v40 = vrot.slane %v6256_v59, 3 }
 0x12c   : > { %v2543_v63 = vsel %vm791_vm4, %v2541_v36, %v2542_v10  ;;  %v2686_v41 = vrot.slane %v6247_v18, 4  ;;  %v2510_v6 = vmax.f32 %v2366_v62, %v2401_v52  ;;  %v2688_v39 = vrot.slane %v6256_v59, 4 }
 0x12d   : > { %v2509_v1 = vmax.f32 %v2365_v11, %v2399_v24  ;;  %v2545_v5 = vsel %vm791_vm4, %v2542_v10, %v2544_v40  ;;  %v7637_v54 = vrot.slane %v6233_v47, 6  ;;  %v7638_v51 = vrot.slane %v6228_v8, 6 }
 0x12e   : > { %v2687_v11 = vsel %vm936_vm5, %v2685_v35, %v2686_v41  ;;  %v2654_v10 = vmax.f32 %v2510_v6, %v2545_v5  ;;  %v2689_v59 = vsel %vm936_vm5, %v2686_v41, %v2688_v39 }
 0x12f   : > { %v2098_v49 = vsel %vm340_vm1, %v7638_v51, %v7637_v54  ;;  %v2653_v30 = vmax.f32 %v2509_v1, %v2543_v63  ;;  %v7639_v36 = vmov %v7638_v51  ;;  %v7640_v18 = vmov %v7637_v54 }
 0x130   : > { %v2190_v31 = vsel %vm340_vm1, -inf, %v7639_v36  ;;  %v2206_v62 = vsel %vm340_vm1, %v7640_v18, -inf  ;;  %v2259_v52 = vrot.slane %v2098_v49, 1  ;;  %v2403_v54 = vrot.slane %v2098_v49, 2 }
 0x131   : > { %v2258_v24 = vrot.slane %v2190_v31, 1  ;;  %v2797_v40 = vmax.f32 %v2653_v30, %v2687_v11  ;;  %v2261_v37 = vrot.slane %v2206_v62, 1  ;;  %v2402_v26 = vrot.slane %v2190_v31, 2 }
 0x132   : > { %v2798_v63 = vmax.f32 %v2654_v10, %v2689_v59  ;;  %v2405_v1 = vrot.slane %v2206_v62, 2  ;;  %v2546_v51 = vrot.slane %v2190_v31, 3  ;;  %v2547_v18 = vrot.slane %v2098_v49, 3 }
 0x133   : > { %v2260_v35 = vsel %vm501_vm2, %v2258_v24, %v2259_v52  ;;  %v2262_v36 = vsel %vm501_vm2, %v2259_v52, %v2261_v37  ;;  %v2404_v61 = vsel %vm646_vm3, %v2402_v26, %v2403_v54  ;;  %v2549_v41 = vrot.slane %v2206_v62, 3 }
 0x134   : > { %v2367_v25 = vmax.f32 %v2190_v31, %v2260_v35  ;;  %v3563_v6 = vpack.c.bf16 %v2798_v63, %v2797_v40  ;;  %v2368_v5 = vmax.f32 %v2098_v49, %v2262_v36  ;;  %v2406_v39 = vsel %vm646_vm3, %v2403_v54, %v2405_v1 }
 0x135   : > { %v2548_v11 = vsel %vm791_vm4, %v2546_v51, %v2547_v18  ;;  %v2690_v34 = vrot.slane %v2190_v31, 4  ;;  %v2691_v10 = vrot.slane %v2098_v49, 4  ;;  %v2550_v24 = vsel %vm791_vm4, %v2547_v18, %v2549_v41 }
 0x136   : > { %v2511_v30 = vmax.f32 %v2367_v25, %v2404_v61  ;;  %4494 = vmatprep.mubr.msk.bf16.mxu1 %vm2872_vm0, %v3563_v6  ;;  %v2512_v59 = vmax.f32 %v2368_v5, %v2406_v39  ;;  %v2693_v37 = vrot.slane %v2206_v62, 4  ;;  %v7641_v52 = vrot.slane %v5652_v16, 1 }
 0x137   : > { %v7642_v26 = vrot.slane %v5655_v9, 1  ;;  %v2692_v54 = vsel %vm936_vm5, %v2690_v34, %v2691_v10  ;;  %v7643_v61 = vrot.slane %v5658_v12, 1  ;;  %v1543_v51 = vrot.slane %v5655_v9, 2 }
 0x138   : > { %v2655_v63 = vmax.f32 %v2511_v30, %v2548_v11  ;;  %v7644_v25 = vmov %v7641_v52  ;;  %v2656_v35 = vmax.f32 %v2512_v59, %v2550_v24  ;;  %v2694_v62 = vsel %vm936_vm5, %v2691_v10, %v2693_v37 }
 0x139   : > { %v1401_v40 = vsel %vm501_vm2, %v7642_v26, %v7641_v52  ;;  %v1403_v49 = vsel %vm501_vm2, %v7644_v25, %v7643_v61  ;;  %v1544_v18 = vrot.slane %v5652_v16, 2  ;;  %v1546_v34 = vrot.slane %v5658_v12, 2 }
 0x13a   : > { %v1499_v31 = vmax.f32 %v5655_v9, %v1401_v40  ;;  %v1500_v1 = vmax.f32 %v5652_v16, %v1403_v49  ;;  %v2799_v36 = vmax.f32 %v2655_v63, %v2692_v54  ;;  %v1687_v6 = vrot.slane %v5655_v9, 3 }
 0x13b   : > { %v2800_v5 = vmax.f32 %v2656_v35, %v2694_v62  ;;  %v1688_v39 = vrot.slane %v5652_v16, 3  ;;  %v1690_v41 = vrot.slane %v5658_v12, 3  ;;  %v1831_v30 = vrot.slane %v5655_v9, 4 }
 0x13c   : > { %v1545_v11 = vsel %vm646_vm3, %v1543_v51, %v1544_v18  ;;  %v1547_v10 = vsel %vm646_vm3, %v1544_v18, %v1546_v34  ;;  %v1832_v59 = vrot.slane %v5652_v16, 4  ;;  %v1834_v24 = vrot.slane %v5658_v12, 4 }
 0x13d   : > { %v3564_v37 = vpack.c.bf16 %v2800_v5, %v2799_v36  ;;  %v1643_v52 = vmax.f32 %v1499_v31, %v1545_v11  ;;  %v1644_v26 = vmax.f32 %v1500_v1, %v1547_v10  ;;  %v1689_v40 = vsel %vm791_vm4, %v1687_v6, %v1688_v39 }
 0x13e   : > { %v1691_v63 = vsel %vm791_vm4, %v1688_v39, %v1690_v41  ;;  %v1833_v54 = vsel %vm936_vm5, %v1831_v30, %v1832_v59  ;;  %v1835_v61 = vsel %vm936_vm5, %v1832_v59, %v1834_v24  ;;  %v1405_v9 = vrot.slane %v5716_v38, 1 }
 0x13f   : > { %4495 = vmatmul.mubr.msk.bf16.vlgmr.msra.gmra.mxu1 %vm2872_vm0, %v3564_v37  ;;  %v1787_v25 = vmax.f32 %v1643_v52, %v1689_v40  ;;  %v1788_v49 = vmax.f32 %v1644_v26, %v1691_v63  ;;  %v1548_v16 = vrot.slane %v5712_v57, 2  ;;  %v1549_v12 = vrot.slane %v5716_v38, 2 }
 0x140   : > { %v7645_v31 = vrot.slane %v5712_v57, 1  ;;  %v7646_v62 = vrot.slane %v5719_v23, 1  ;;  %v1551_v51 = vrot.slane %v5719_v23, 2  ;;  %v1692_v36 = vrot.slane %v5712_v57, 3 }
 0x141   : > { %v6458_v18 = vmax.f32 %v1787_v25, %v1833_v54  ;;  %v6460_v34 = vmax.f32 %v1788_v49, %v1835_v61  ;;  %v1550_v39 = vsel %vm646_vm3, %v1548_v16, %v1549_v12  ;;  %v1693_v30 = vrot.slane %v5716_v38, 3 }
 0x142   : > { %v1406_v35 = vsel %vm501_vm2, %v7645_v31, %v1405_v9  ;;  %v1408_v1 = vsel %vm501_vm2, %v1405_v9, %v7646_v62  ;;  %v1552_v41 = vsel %vm646_vm3, %v1549_v12, %v1551_v51  ;;  %v1695_v11 = vrot.slane %v5719_v23, 3 }
 0x143   : > { %v1501_v6 = vmax.f32 %v5712_v57, %v1406_v35  ;;  %v1502_v5 = vmax.f32 %v5716_v38, %v1408_v1  ;;  %v2037_v10 = vmax.f32 %v6228_v8, %v6458_v18  ;;  %v2038_v59 = vmax.f32 %v6233_v47, %v6460_v34 }
 0x144   : > { %v1694_v52 = vsel %vm791_vm4, %v1692_v36, %v1693_v30  ;;  %v1696_v26 = vsel %vm791_vm4, %v1693_v30, %v1695_v11  ;;  %v1836_v40 = vrot.slane %v5712_v57, 4  ;;  %v1837_v63 = vrot.slane %v5716_v38, 4 }
 0x145   : > { %v1645_v24 = vmax.f32 %v1501_v6, %v1550_v39  ;;  %v1646_v37 = vmax.f32 %v1502_v5, %v1552_v41  ;;  %v2099_v54 = vrot.slane %v2037_v10, 6  ;;  %v2100_v61 = vrot.slane %v2038_v59, 6 }
 0x146   : > { %v1838_v49 = vsel %vm936_vm5, %v1836_v40, %v1837_v63  ;;  %v1839_v8 = vrot.slane %v5719_v23, 4  ;;  %v1957_v47 = vmax.f32 %v5497_v33, %v5502_v29  ;;  %v1958_v16 = vmax.f32 %v5499_v60, %v5504_v17 }
 0x147   : > { %v1789_v9 = vmax.f32 %v1645_v24, %v1694_v52  ;;  %v1790_v25 = vmax.f32 %v1646_v37, %v1696_v26  ;;  %v2101_v12 = vsel %vm340_vm1, %v2099_v54, %v2100_v61  ;;  %v2191_v57 = vsel %vm340_vm1, -inf, %v2099_v54 }
 0x148   : > { %v2207_v38 = vsel %vm340_vm1, %v2100_v61, -inf  ;;  %v2263_v35 = vrot.slane %v2191_v57, 1  ;;  %v2264_v62 = vrot.slane %v2101_v12, 1  ;;  %v2407_v51 = vrot.slane %v2191_v57, 2 }
 0x149   : > { %v6485_v31 = vmax.f32 %v1789_v9, %v1838_v49  ;;  %v2266_v1 = vrot.slane %v2207_v38, 1  ;;  %v2408_v36 = vrot.slane %v2101_v12, 2  ;;  %v2410_v23 = vrot.slane %v2207_v38, 2 }
 0x14a   : > { %v2551_v6 = vrot.slane %v2191_v57, 3  ;;  %v2552_v5 = vrot.slane %v2101_v12, 3  ;;  %v2265_v33 = vsel %vm501_vm2, %v2263_v35, %v2264_v62  ;;  %v2554_v39 = vrot.slane %v2207_v38, 3 }
 0x14b   : > { %v2267_v60 = vsel %vm501_vm2, %v2264_v62, %v2266_v1  ;;  %v2695_v41 = vrot.slane %v2191_v57, 4  ;;  %v2369_v30 = vmax.f32 %v2191_v57, %v2265_v33  ;;  %v2409_v10 = vsel %vm646_vm3, %v2407_v51, %v2408_v36 }
 0x14c   : > { %v2370_v11 = vmax.f32 %v2101_v12, %v2267_v60  ;;  %v2411_v59 = vsel %vm646_vm3, %v2408_v36, %v2410_v23  ;;  %v2553_v24 = vsel %vm791_vm4, %v2551_v6, %v2552_v5  ;;  %v2555_v37 = vsel %vm791_vm4, %v2552_v5, %v2554_v39 }
 0x14d   : > { %v2696_v52 = vrot.slane %v2101_v12, 4  ;;  %v2698_v26 = vrot.slane %v2207_v38, 4  ;;  %v2513_v40 = vmax.f32 %v2369_v30, %v2409_v10  ;;  %v1840_v61 = vsel %vm936_vm5, %v1837_v63, %v1839_v8 }
 0x14e   : > { %v2514_v54 = vmax.f32 %v2370_v11, %v2411_v59  ;;  %v1985_v9 = vmax.f32 %v1957_v47, %v5506_v22  ;;  %v6497_v35 = vmax.f32 %v1790_v25, %v1840_v61  ;;  %v1986_v62 = vmax.f32 %v1958_v16, %v5508_v46 }
 0x14f   : > { %v2697_v49 = vsel %vm936_vm5, %v2695_v41, %v2696_v52  ;;  %v2699_v57 = vsel %vm936_vm5, %v2696_v52, %v2698_v26  ;;  %v2657_v1 = vmax.f32 %v2513_v40, %v2553_v24  ;;  %v3299_v12 = vpack.c.bf16 %v5504_v17, %v5502_v29 }
 0x150   : > { %v2658_v51 = vmax.f32 %v2514_v54, %v2555_v37  ;;  %v2013_v36 = vmax.f32 %v1985_v9, %v6458_v18  ;;  %v2014_v38 = vmax.f32 %v1986_v62, %v6460_v34  ;;  %v3300_v63 = vpack.c.bf16 %v5508_v46, %v5506_v22 }
 0x151   : > { %v1410_v8 = vrot.slane %v5793_v55, 1  ;;  %v1553_v47 = vrot.slane %v5787_v45, 2  ;;  %v2801_v25 = vmax.f32 %v2657_v1, %v2697_v49  ;;  %4464 = vmatprep.mubr.msk.bf16.mxu0 %vm2872_vm0, %v3299_v12  ;;  %v1554_v6 = vrot.slane %v5793_v55, 2 }
 0x152   : > { %v2802_v23 = vmax.f32 %v2658_v51, %v2699_v57  ;;  %v2039_v16 = vmax.f32 %v2013_v36, %v6485_v31  ;;  %v2040_v5 = vmax.f32 %v2014_v38, %v6497_v35  ;;  %4465 = vmatmul.mubr.msk.bf16.gmra.mxu0 %vm2872_vm0, %v3300_v63  ;;  %v7647_v33 = vrot.slane %v5787_v45, 1 }
 0x153   : > { %v7648_v39 = vrot.slane %v5796_v21, 1  ;;  %v1556_v30 = vrot.slane %v5796_v21, 2  ;;  %v1555_v52 = vsel %vm646_vm3, %v1553_v47, %v1554_v6  ;;  %v1697_v40 = vrot.slane %v5787_v45, 3 }
 0x154   : > { %v1411_v60 = vsel %vm501_vm2, %v7647_v33, %v1410_v8  ;;  %v3565_v11 = vpack.c.bf16 %v2802_v23, %v2801_v25  ;;  %v2102_v10 = vrot.slane %v2039_v16, 6  ;;  %v2103_v37 = vrot.slane %v2040_v5, 6 }
 0x155   : > { %v1413_v41 = vsel %vm501_vm2, %v1410_v8, %v7648_v39  ;;  %v1503_v59 = vmax.f32 %v5787_v45, %v1411_v60  ;;  %v1557_v26 = vsel %vm646_vm3, %v1554_v6, %v1556_v30  ;;  %v1698_v49 = vrot.slane %v5793_v55, 3 }
 0x156   : > { %v1504_v24 = vmax.f32 %v5793_v55, %v1413_v41  ;;  %4498 = vmatprep.mubr.msk.bf16.mxu1 %vm2872_vm0, %v3565_v11  ;;  %v2192_v54 = vsel %vm340_vm1, -inf, %v2102_v10  ;;  %v2104_v57 = vsel %vm340_vm1, %v2102_v10, %v2103_v37  ;;  %v2208_v62 = vsel %vm340_vm1, %v2103_v37, -inf }
 0x157   : > { %v1647_v61 = vmax.f32 %v1503_v59, %v1555_v52  ;;  %v2268_v1 = vrot.slane %v2192_v54, 1  ;;  %v2412_v51 = vrot.slane %v2192_v54, 2  ;;  %v2269_v36 = vrot.slane %v2104_v57, 1 }
 0x158   : > { %v1648_v9 = vmax.f32 %v1504_v24, %v1557_v26  ;;  %v2271_v12 = vrot.slane %v2208_v62, 1  ;;  %v2413_v38 = vrot.slane %v2104_v57, 2  ;;  %v2415_v63 = vrot.slane %v2208_v62, 2 }
 0x159   : > { %v2556_v8 = vrot.slane %v2192_v54, 3  ;;  %v2557_v47 = vrot.slane %v2104_v57, 3  ;;  %v2559_v25 = vrot.slane %v2208_v62, 3  ;;  %v2700_v23 = vrot.slane %v2192_v54, 4 }
 0x15a   : > { %v2270_v16 = vsel %vm501_vm2, %v2268_v1, %v2269_v36  ;;  %v2272_v6 = vsel %vm501_vm2, %v2269_v36, %v2271_v12  ;;  %v2414_v5 = vsel %vm646_vm3, %v2412_v51, %v2413_v38  ;;  %v2416_v33 = vsel %vm646_vm3, %v2413_v38, %v2415_v63 }
 0x15b   : > { %v2371_v60 = vmax.f32 %v2192_v54, %v2270_v16  ;;  %v2372_v39 = vmax.f32 %v2104_v57, %v2272_v6  ;;  %v2558_v41 = vsel %vm791_vm4, %v2556_v8, %v2557_v47  ;;  %v2560_v30 = vsel %vm791_vm4, %v2557_v47, %v2559_v25 }
 0x15c   : > { %v2701_v11 = vrot.slane %v2104_v57, 4  ;;  %v2703_v10 = vrot.slane %v2208_v62, 4  ;;  %v1699_v59 = vsel %vm791_vm4, %v1697_v40, %v1698_v49  ;;  %v1700_v24 = vrot.slane %v5796_v21, 3 }
 0x15d   : > { %v2515_v37 = vmax.f32 %v2371_v60, %v2414_v5  ;;  %v2516_v52 = vmax.f32 %v2372_v39, %v2416_v33  ;;  %v1791_v26 = vmax.f32 %v1647_v61, %v1699_v59  ;;  %v1841_v1 = vrot.slane %v5787_v45, 4 }
 0x15e   : > { %v2702_v51 = vsel %vm936_vm5, %v2700_v23, %v2701_v11  ;;  %v2704_v54 = vsel %vm936_vm5, %v2701_v11, %v2703_v10  ;;  %v1701_v36 = vsel %vm791_vm4, %v1698_v49, %v1700_v24  ;;  %v1842_v12 = vrot.slane %v5793_v55, 4 }
 0x15f   : > { %v2659_v38 = vmax.f32 %v2515_v37, %v2558_v41  ;;  %v2660_v57 = vmax.f32 %v2516_v52, %v2560_v30  ;;  %v1792_v62 = vmax.f32 %v1648_v9, %v1701_v36  ;;  %v1844_v40 = vrot.slane %v5796_v21, 4 }
 0x160   : > { %v1843_v63 = vsel %vm936_vm5, %v1841_v1, %v1842_v12  ;;  %v1959_v61 = vmax.f32 %v5502_v29, %v5506_v22  ;;  %v1960_v45 = vmax.f32 %v5504_v17, %v5508_v46  ;;  %v1415_v8 = vrot.slane %v5887_v27, 1 }
 0x161   : > { %v2803_v47 = vmax.f32 %v2659_v38, %v2702_v51  ;;  %v2804_v25 = vmax.f32 %v2660_v57, %v2704_v54  ;;  %v1845_v49 = vsel %vm936_vm5, %v1842_v12, %v1844_v40  ;;  %v6551_v55 = vmax.f32 %v1791_v26, %v1843_v63 }
 0x162   : > { %v6553_v23 = vmax.f32 %v1792_v62, %v1845_v49  ;;  %v1987_v21 = vmax.f32 %v1959_v61, %v6458_v18  ;;  %v1988_v9 = vmax.f32 %v1960_v45, %v6460_v34  ;;  %v7649_v16 = vrot.slane %v5880_v28, 1 }
 0x163   : > { %v3566_v6 = vpack.c.bf16 %v2804_v25, %v2803_v47  ;;  %v7650_v17 = vrot.slane %v5890_v43, 1  ;;  %v1558_v60 = vrot.slane %v5880_v28, 2  ;;  %v1559_v11 = vrot.slane %v5887_v27, 2 }
 0x164   : > { %v1416_v29 = vsel %vm501_vm2, %v7649_v16, %v1415_v8  ;;  %v2015_v39 = vmax.f32 %v1987_v21, %v6485_v31  ;;  %v2016_v41 = vmax.f32 %v1988_v9, %v6497_v35  ;;  %v1561_v10 = vrot.slane %v5890_v43, 2 }
 0x165   : > { %v1418_v5 = vsel %vm501_vm2, %v1415_v8, %v7650_v17  ;;  %v1505_v33 = vmax.f32 %v5880_v28, %v1416_v29  ;;  %4499 = vmatmul.mubr.msk.bf16.gmra.mxu1 %vm2872_vm0, %v3566_v6  ;;  %v1702_v59 = vrot.slane %v5880_v28, 3  ;;  %v1703_v24 = vrot.slane %v5887_v27, 3 }
 0x166   : > { %v1506_v30 = vmax.f32 %v5887_v27, %v1418_v5  ;;  %v1705_v37 = vrot.slane %v5890_v43, 3  ;;  %v2041_v52 = vmax.f32 %v2015_v39, %v6551_v55  ;;  %v2042_v26 = vmax.f32 %v2016_v41, %v6553_v23 }
 0x167   : > { %v1560_v1 = vsel %vm646_vm3, %v1558_v60, %v1559_v11  ;;  %v1846_v51 = vrot.slane %v5880_v28, 4  ;;  %v1562_v54 = vsel %vm646_vm3, %v1559_v11, %v1561_v10  ;;  %v1704_v12 = vsel %vm791_vm4, %v1702_v59, %v1703_v24 }
 0x168   : > { %v1649_v36 = vmax.f32 %v1505_v33, %v1560_v1  ;;  %v1706_v38 = vsel %vm791_vm4, %v1703_v24, %v1705_v37  ;;  %v2105_v57 = vrot.slane %v2041_v52, 6  ;;  %v2106_v62 = vrot.slane %v2042_v26, 6 }
 0x169   : > { %v1650_v40 = vmax.f32 %v1506_v30, %v1562_v54  ;;  %v1847_v63 = vrot.slane %v5887_v27, 4  ;;  %v1849_v45 = vrot.slane %v5890_v43, 4  ;;  %v1961_v8 = vmax.f32 %v5506_v22, %v6458_v18 }
 0x16a   : > { %v1793_v61 = vmax.f32 %v1649_v36, %v1704_v12  ;;  %v1962_v28 = vmax.f32 %v5508_v46, %v6460_v34  ;;  %v2107_v47 = vsel %vm340_vm1, %v2105_v57, %v2106_v62  ;;  %v2193_v25 = vsel %vm340_vm1, -inf, %v2105_v57 }
 0x16b   : > { %v2209_v49 = vsel %vm340_vm1, %v2106_v62, -inf  ;;  %v1794_v21 = vmax.f32 %v1650_v40, %v1706_v38  ;;  %v2273_v9 = vrot.slane %v2193_v25, 1  ;;  %v2274_v16 = vrot.slane %v2107_v47, 1 }
 0x16c   : > { %v2276_v29 = vrot.slane %v2209_v49, 1  ;;  %v2417_v27 = vrot.slane %v2193_v25, 2  ;;  %v2418_v6 = vrot.slane %v2107_v47, 2  ;;  %v2420_v17 = vrot.slane %v2209_v49, 2 }
 0x16d   : > { %v2561_v43 = vrot.slane %v2193_v25, 3  ;;  %v2562_v5 = vrot.slane %v2107_v47, 3  ;;  %v2275_v22 = vsel %vm501_vm2, %v2273_v9, %v2274_v16  ;;  %v2564_v46 = vrot.slane %v2209_v49, 3 }
 0x16e   : > { %v2277_v33 = vsel %vm501_vm2, %v2274_v16, %v2276_v29  ;;  %v2705_v60 = vrot.slane %v2193_v25, 4  ;;  %v2373_v39 = vmax.f32 %v2193_v25, %v2275_v22  ;;  %v2419_v30 = vsel %vm646_vm3, %v2417_v27, %v2418_v6  ;;  %v7653_v27 = vld [vmem:[#allocation7_spill] sm:$0xff] }
 0x16f   : > { %v2374_v41 = vmax.f32 %v2107_v47, %v2277_v33  ;;  %v2421_v11 = vsel %vm646_vm3, %v2418_v6, %v2420_v17  ;;  %v2563_v10 = vsel %vm791_vm4, %v2561_v43, %v2562_v5  ;;  %v2565_v59 = vsel %vm791_vm4, %v2562_v5, %v2564_v46 }
 0x170   : > { %v2706_v24 = vrot.slane %v2107_v47, 4  ;;  %v2708_v37 = vrot.slane %v2209_v49, 4  ;;  %v2517_v52 = vmax.f32 %v2373_v39, %v2419_v30  ;;  %v1848_v1 = vsel %vm936_vm5, %v1846_v51, %v1847_v63 }
 0x171   : > { %v2518_v26 = vmax.f32 %v2374_v41, %v2421_v11  ;;  %v1850_v54 = vsel %vm936_vm5, %v1847_v63, %v1849_v45  ;;  %v6600_v38 = vmax.f32 %v1793_v61, %v1848_v1  ;;  %v1989_v25 = vmax.f32 %v1961_v8, %v6485_v31  ;;  %v7651_v45 = vld [vmem:[#allocation6_spill] sm:$0xff] }
 0x172   : > { %v2707_v36 = vsel %vm936_vm5, %v2705_v60, %v2706_v24  ;;  %v2709_v12 = vsel %vm936_vm5, %v2706_v24, %v2708_v37  ;;  %v6602_v57 = vmax.f32 %v1794_v21, %v1850_v54  ;;  %v2661_v62 = vmax.f32 %v2517_v52, %v2563_v10 }
 0x173   : > { %v2662_v40 = vmax.f32 %v2518_v26, %v2565_v59  ;;  %v1990_v47 = vmax.f32 %v1962_v28, %v6497_v35  ;;  %v3301_v49 = vpack.c.bf16 %v6460_v34, %v6458_v18  ;;  %v3302_v51 = vpack.c.bf16 %v6497_v35, %v6485_v31 }
 0x174   : > { %v1420_v63 = vrot.slane %v5950_v44, 1  ;;  %v1563_v9 = vrot.slane %v7651_v45, 2  ;;  %v2805_v61 = vmax.f32 %v2661_v62, %v2707_v36  ;;  %v2017_v21 = vmax.f32 %v1989_v25, %v6551_v55 }
 0x175   : > { %v2806_v16 = vmax.f32 %v2662_v40, %v2709_v12  ;;  %v2018_v29 = vmax.f32 %v1990_v47, %v6553_v23  ;;  %4468 = vmatprep.mubr.msk.bf16.mxu0 %vm2872_vm0, %v3301_v49  ;;  %v7652_v8 = vrot.slane %v7651_v45, 1  ;;  %v7654_v6 = vrot.slane %v7653_v27, 1 }
 0x176   : > { %v1564_v43 = vrot.slane %v5950_v44, 2  ;;  %v1566_v5 = vrot.slane %v7653_v27, 2  ;;  %v2043_v33 = vmax.f32 %v2017_v21, %v6600_v38  ;;  %4469 = vmatmul.mubr.msk.bf16.gmra.mxu0 %vm2872_vm0, %v3302_v51  ;;  %v1707_v11 = vrot.slane %v7651_v45, 3 }
 0x177   : > { %v1421_v28 = vsel %vm501_vm2, %v7652_v8, %v1420_v63  ;;  %v1423_v17 = vsel %vm501_vm2, %v1420_v63, %v7654_v6  ;;  %v3567_v22 = vpack.c.bf16 %v2806_v16, %v2805_v61  ;;  %v2044_v46 = vmax.f32 %v2018_v29, %v6602_v57 }
 0x178   : > { %v1507_v60 = vmax.f32 %v7651_v45, %v1421_v28  ;;  %v1508_v39 = vmax.f32 %v5950_v44, %v1423_v17  ;;  %v1565_v41 = vsel %vm646_vm3, %v1563_v9, %v1564_v43  ;;  %v1567_v30 = vsel %vm646_vm3, %v1564_v43, %v1566_v5 }
 0x179   : > { %4502 = vmatprep.mubr.msk.bf16.mxu1 %vm2872_vm0, %v3567_v22  ;;  %v2108_v10 = vrot.slane %v2043_v33, 6  ;;  %v2109_v59 = vrot.slane %v2044_v46, 6  ;;  %v1708_v37 = vrot.slane %v5950_v44, 3  ;;  %v1710_v26 = vrot.slane %v7653_v27, 3 }
 0x17a   : > { %v1651_v24 = vmax.f32 %v1507_v60, %v1565_v41  ;;  %v1652_v52 = vmax.f32 %v1508_v39, %v1567_v30  ;;  %v1851_v1 = vrot.slane %v7651_v45, 4  ;;  %v1852_v54 = vrot.slane %v5950_v44, 4 }
 0x17b   : > { %v2110_v36 = vsel %vm340_vm1, %v2108_v10, %v2109_v59  ;;  %v2194_v12 = vsel %vm340_vm1, -inf, %v2108_v10  ;;  %v2210_v62 = vsel %vm340_vm1, %v2109_v59, -inf  ;;  %v1709_v40 = vsel %vm791_vm4, %v1707_v11, %v1708_v37 }
 0x17c   : > { %v2278_v25 = vrot.slane %v2194_v12, 1  ;;  %v2279_v47 = vrot.slane %v2110_v36, 1  ;;  %v2281_v49 = vrot.slane %v2210_v62, 1  ;;  %v2422_v51 = vrot.slane %v2194_v12, 2 }
 0x17d   : > { %v2423_v63 = vrot.slane %v2110_v36, 2  ;;  %v2425_v9 = vrot.slane %v2210_v62, 2  ;;  %v2566_v61 = vrot.slane %v2194_v12, 3  ;;  %v2567_v16 = vrot.slane %v2110_v36, 3 }
 0x17e   : > { %v2280_v45 = vsel %vm501_vm2, %v2278_v25, %v2279_v47  ;;  %v2282_v44 = vsel %vm501_vm2, %v2279_v47, %v2281_v49  ;;  %v2569_v21 = vrot.slane %v2210_v62, 3  ;;  %v2710_v29 = vrot.slane %v2194_v12, 4 }
 0x17f   : > { %v2375_v8 = vmax.f32 %v2194_v12, %v2280_v45  ;;  %v2376_v28 = vmax.f32 %v2110_v36, %v2282_v44  ;;  %v2424_v6 = vsel %vm646_vm3, %v2422_v51, %v2423_v63  ;;  %v2426_v17 = vsel %vm646_vm3, %v2423_v63, %v2425_v9  ;;  %v7658_v45 = vld [vmem:[#allocation5_spill] sm:$0xff] }
 0x180   : > { %v2568_v43 = vsel %vm791_vm4, %v2566_v61, %v2567_v16  ;;  %v2570_v5 = vsel %vm791_vm4, %v2567_v16, %v2569_v21  ;;  %v2711_v22 = vrot.slane %v2110_v36, 4  ;;  %v2713_v33 = vrot.slane %v2210_v62, 4  ;;  %v7656_v62 = vld [vmem:[#allocation16_spill] sm:$0xff] }
 0x181   : > { %v2519_v46 = vmax.f32 %v2375_v8, %v2424_v6  ;;  %v2520_v60 = vmax.f32 %v2376_v28, %v2426_v17  ;;  %v1711_v39 = vsel %vm791_vm4, %v1708_v37, %v1710_v26  ;;  %v1795_v41 = vmax.f32 %v1651_v24, %v1709_v40  ;;  %v7655_v24 = vld [vmem:[#allocation8_spill] sm:$0xff] }
 0x182   : > { %v2712_v30 = vsel %vm936_vm5, %v2710_v29, %v2711_v22  ;;  %v2714_v11 = vsel %vm936_vm5, %v2711_v22, %v2713_v33  ;;  %v1796_v10 = vmax.f32 %v1652_v52, %v1711_v39  ;;  %v1853_v59 = vsel %vm936_vm5, %v1851_v1, %v1852_v54 }
 0x183   : > { %v2663_v12 = vmax.f32 %v2519_v46, %v2568_v43  ;;  %v2664_v25 = vmax.f32 %v2520_v60, %v2570_v5  ;;  %v1854_v47 = vrot.slane %v7653_v27, 4  ;;  %v6651_v49 = vmax.f32 %v1795_v41, %v1853_v59 }
 0x184   : > { %v1963_v36 = vmax.f32 %v6458_v18, %v6485_v31  ;;  %v1964_v37 = vmax.f32 %v6460_v34, %v6497_v35  ;;  %v1425_v26 = vrot.slane %v7655_v24, 1  ;;  %v1568_v40 = vrot.slane %v7656_v62, 2 }
 0x185   : > { %v2807_v51 = vmax.f32 %v2663_v12, %v2712_v30  ;;  %v2808_v52 = vmax.f32 %v2664_v25, %v2714_v11  ;;  %v1855_v1 = vsel %vm936_vm5, %v1852_v54, %v1854_v47  ;;  %v1569_v63 = vrot.slane %v7655_v24, 2 }
 0x186   : > { %v6661_v9 = vmax.f32 %v1796_v10, %v1855_v1  ;;  %v1991_v27 = vmax.f32 %v1963_v36, %v6551_v55  ;;  %v1992_v61 = vmax.f32 %v1964_v37, %v6553_v23  ;;  %v7657_v18 = vrot.slane %v7656_v62, 1 }
 0x187   : > { %v3568_v16 = vpack.c.bf16 %v2808_v52, %v2807_v51  ;;  %v7659_v44 = vrot.slane %v7658_v45, 1  ;;  %v1570_v54 = vsel %vm646_vm3, %v1568_v40, %v1569_v63  ;;  %v1571_v17 = vrot.slane %v7658_v45, 2  ;;  %v6694_v51 = vpop.f32.mrf.mxu1  ;;  %v6696_v52 = vpop.f32.mrf.mxu0 }
 0x188   : > { %v1426_v34 = vsel %vm501_vm2, %v7657_v18, %v1425_v26  ;;  %v2019_v8 = vmax.f32 %v1991_v27, %v6600_v38  ;;  %v2020_v28 = vmax.f32 %v1992_v61, %v6602_v57  ;;  %v1712_v5 = vrot.slane %v7656_v62, 3 }
 0x189   : > { %v1428_v21 = vsel %vm501_vm2, %v1425_v26, %v7659_v44  ;;  %v1509_v29 = vmax.f32 %v7656_v62, %v1426_v34  ;;  %4503 = vmatmul.mubr.msk.bf16.gmra.mxu1 %vm2872_vm0, %v3568_v16  ;;  %v1713_v22 = vrot.slane %v7655_v24, 3  ;;  %v1715_v33 = vrot.slane %v7658_v45, 3 }
 0x18a   : > { %v1510_v6 = vmax.f32 %v7655_v24, %v1428_v21  ;;  %v2045_v46 = vmax.f32 %v2019_v8, %v6651_v49  ;;  %v2046_v60 = vmax.f32 %v2020_v28, %v6661_v9  ;;  %v1572_v39 = vsel %vm646_vm3, %v1569_v63, %v1571_v17 }
 0x18b   : > { %v1653_v43 = vmax.f32 %v1509_v29, %v1570_v54  ;;  %v1856_v41 = vrot.slane %v7656_v62, 4  ;;  %v1714_v11 = vsel %vm791_vm4, %v1712_v5, %v1713_v22  ;;  %v1716_v10 = vsel %vm791_vm4, %v1713_v22, %v1715_v33 }
 0x18c   : > { %v1654_v30 = vmax.f32 %v1510_v6, %v1572_v39  ;;  %v1857_v59 = vrot.slane %v7655_v24, 4  ;;  %v2111_v12 = vrot.slane %v2045_v46, 6  ;;  %v2112_v25 = vrot.slane %v2046_v60, 6 }
 0x18d   : > { %v1797_v47 = vmax.f32 %v1653_v43, %v1714_v11  ;;  %v1859_v36 = vrot.slane %v7658_v45, 4  ;;  %v1965_v40 = vmax.f32 %v6485_v31, %v6551_v55  ;;  %v1966_v62 = vmax.f32 %v6497_v35, %v6553_v23  ;;  %v6702_v31 = vpop.f32.mrf.mxu1  ;;  %v6704_v45 = vpop.f32.mrf.mxu0 }
 0x18e   : > { %v1798_v37 = vmax.f32 %v1654_v30, %v1716_v10  ;;  %v1858_v26 = vsel %vm936_vm5, %v1856_v41, %v1857_v59  ;;  %v2113_v24 = vsel %vm340_vm1, %v2111_v12, %v2112_v25  ;;  %v2195_v1 = vsel %vm340_vm1, -inf, %v2111_v12 }
 0x18f   : > { %v2211_v63 = vsel %vm340_vm1, %v2112_v25, -inf  ;;  %v1860_v27 = vsel %vm936_vm5, %v1857_v59, %v1859_v36  ;;  %v2283_v61 = vrot.slane %v2195_v1, 1  ;;  %v2284_v18 = vrot.slane %v2113_v24, 1  ;;  %v6708_v17 = vpop.f32.mrf.mxu1  ;;  %v6710_v43 = vpop.f32.mrf.mxu0 }
 0x190   : > { %v2286_v34 = vrot.slane %v2211_v63, 1  ;;  %v2427_v16 = vrot.slane %v2195_v1, 2  ;;  %v2428_v35 = vrot.slane %v2113_v24, 2  ;;  %v2430_v44 = vrot.slane %v2211_v63, 2 }
 0x191   : > { %v2571_v21 = vrot.slane %v2195_v1, 3  ;;  %v2572_v29 = vrot.slane %v2113_v24, 3  ;;  %v2285_v54 = vsel %vm501_vm2, %v2283_v61, %v2284_v18  ;;  %v2574_v28 = vrot.slane %v2211_v63, 3  ;;  %v6716_v11 = vpop.f32.mrf.mxu1  ;;  %v6718_v10 = vpop.f32.mrf.mxu0 }
 0x192   : > { %v2287_v8 = vsel %vm501_vm2, %v2284_v18, %v2286_v34  ;;  %v2715_v6 = vrot.slane %v2195_v1, 4  ;;  %v2377_v5 = vmax.f32 %v2195_v1, %v2285_v54  ;;  %v2429_v33 = vsel %vm646_vm3, %v2427_v16, %v2428_v35 }
 0x193   : > { %v2378_v22 = vmax.f32 %v2113_v24, %v2287_v8  ;;  %v2431_v46 = vsel %vm646_vm3, %v2428_v35, %v2430_v44  ;;  %v2573_v60 = vsel %vm791_vm4, %v2571_v21, %v2572_v29  ;;  %v2575_v39 = vsel %vm791_vm4, %v2572_v29, %v2574_v28  ;;  %v7662_v44 = vld [vmem:[#allocation15_spill] sm:$0xff] }
 0x194   : > { %v2716_v41 = vrot.slane %v2113_v24, 4  ;;  %v2718_v30 = vrot.slane %v2211_v63, 4  ;;  %v2521_v59 = vmax.f32 %v2377_v5, %v2429_v33  ;;  %v6720_v25 = vmax.f32 %v1797_v47, %v1858_v26  ;;  %v6728_v24 = vpop.f32.mrf.mxu0 }
 0x195   : > { %v2522_v12 = vmax.f32 %v2378_v22, %v2431_v46  ;;  %v6722_v36 = vmax.f32 %v1798_v37, %v1860_v27  ;;  %v1993_v18 = vmax.f32 %v1965_v40, %v6600_v38  ;;  %v1994_v34 = vmax.f32 %v1966_v62, %v6602_v57  ;;  %7660 = vst [vmem:[#allocation12_spill] sm:$0xff] %v6728_v24  ;;  %v6734_v37 = vpop.f32.mrf.mxu1 }
 0x196   : > { %v2717_v1 = vsel %vm936_vm5, %v2715_v6, %v2716_v41  ;;  %v2719_v61 = vsel %vm936_vm5, %v2716_v41, %v2718_v30  ;;  %v2665_v63 = vmax.f32 %v2521_v59, %v2573_v60  ;;  %v3303_v35 = vpack.c.bf16 %v6553_v23, %v6551_v55  ;;  %7661 = vst [vmem:[#allocation21_spill] sm:$0xff] %v6734_v37  ;;  %v6740_v21 = vpop.f32.mrf.mxu0 }
 0x197   : > { %v2666_v16 = vmax.f32 %v2522_v12, %v2575_v39  ;;  %v3304_v47 = vpack.c.bf16 %v6602_v57, %v6600_v38  ;;  %v2021_v26 = vmax.f32 %v1993_v18, %v6651_v49  ;;  %v2022_v27 = vmax.f32 %v1994_v34, %v6661_v9  ;;  %7663 = vst [vmem:[#allocation22_spill] sm:$0xff] %v6740_v21  ;;  %v6757_v12 = vpop.f32.mrf.mxu1 }
 0x198   : > { %v1430_v40 = vrot.slane %v7662_v44, 1  ;;  %v1573_v62 = vrot.slane %v6075_v19, 2  ;;  %v2809_v29 = vmax.f32 %v2665_v63, %v2717_v1  ;;  %4472 = vmatprep.mubr.msk.bf16.mxu0 %vm2872_vm0, %v3303_v35  ;;  %v1574_v8 = vrot.slane %v7662_v44, 2  ;;  %7666 = vst [vmem:[#allocation19_spill] sm:$0xff] %v6757_v12  ;;  %v6759_v1 = vpop.f32.mrf.mxu0 }
 0x199   : > { %v2810_v54 = vmax.f32 %v2666_v16, %v2719_v61  ;;  %v1576_v28 = vrot.slane %v6081_v56, 2  ;;  %v2047_v6 = vmax.f32 %v2021_v26, %v6720_v25  ;;  %v2048_v5 = vmax.f32 %v2022_v27, %v6722_v36  ;;  %4473 = vmatmul.mubr.msk.bf16.gmra.mxu0 %vm2872_vm0, %v3304_v47  ;;  %7667 = vst [vmem:[#allocation20_spill] sm:$0xff] %v6759_v1 }
 0x19a   : > { %v7664_v22 = vrot.slane %v6075_v19, 1  ;;  %v7665_v46 = vrot.slane %v6081_v56, 1  ;;  %v1575_v59 = vsel %vm646_vm3, %v1573_v62, %v1574_v8  ;;  %v1717_v63 = vrot.slane %v6075_v19, 3 }
 0x19b   : > { %v3569_v39 = vpack.c.bf16 %v2810_v54, %v2809_v29  ;;  %v2114_v61 = vrot.slane %v2047_v6, 6  ;;  %v2115_v18 = vrot.slane %v2048_v5, 6  ;;  %v1577_v34 = vsel %vm646_vm3, %v1574_v8, %v1576_v28  ;;  %v6770_v5 = vpop.f32.mrf.mxu1 }
 0x19c   : > { %v1431_v33 = vsel %vm501_vm2, %v7664_v22, %v1430_v40  ;;  %v1433_v60 = vsel %vm501_vm2, %v1430_v40, %v7665_v46  ;;  %v1718_v47 = vrot.slane %v7662_v44, 3  ;;  %v1720_v26 = vrot.slane %v6081_v56, 3  ;;  %7668 = vst [vmem:[#allocation6_spill] sm:$0xff] %v6770_v5  ;;  %v6772_v22 = vpop.f32.mrf.mxu0 }
 0x19d   : > { %v1511_v41 = vmax.f32 %v6075_v19, %v1431_v33  ;;  %v1512_v30 = vmax.f32 %v7662_v44, %v1433_v60  ;;  %4506 = vmatprep.mubr.msk.bf16.mxu1 %vm2872_vm0, %v3569_v39  ;;  %v2116_v27 = vsel %vm340_vm1, %v2114_v61, %v2115_v18  ;;  %v2196_v40 = vsel %vm340_vm1, -inf, %v2114_v61  ;;  %7669 = vst [vmem:[#allocation7_spill] sm:$0xff] %v6772_v22  ;;  %v6780_v37 = vpop.f32.mrf.mxu1 }
 0x19e   : > { %v2212_v62 = vsel %vm340_vm1, %v2115_v18, -inf  ;;  %v1861_v29 = vrot.slane %v6075_v19, 4  ;;  %v2288_v54 = vrot.slane %v2196_v40, 1  ;;  %v2289_v8 = vrot.slane %v2116_v27, 1  ;;  %v6782_v24 = vpop.f32.mrf.mxu0 }
 0x19f   : > { %v1655_v16 = vmax.f32 %v1511_v41, %v1575_v59  ;;  %v1656_v35 = vmax.f32 %v1512_v30, %v1577_v34  ;;  %v2291_v28 = vrot.slane %v2212_v62, 1  ;;  %v2432_v6 = vrot.slane %v2196_v40, 2 }
 0x1a0   : > { %v2433_v33 = vrot.slane %v2116_v27, 2  ;;  %v2435_v46 = vrot.slane %v2212_v62, 2  ;;  %v2576_v60 = vrot.slane %v2196_v40, 3  ;;  %v2577_v39 = vrot.slane %v2116_v27, 3 }
 0x1a1   : > { %v2290_v41 = vsel %vm501_vm2, %v2288_v54, %v2289_v8  ;;  %v2292_v30 = vsel %vm501_vm2, %v2289_v8, %v2291_v28  ;;  %v2579_v59 = vrot.slane %v2212_v62, 3  ;;  %v2720_v61 = vrot.slane %v2196_v40, 4 }
 0x1a2   : > { %v2379_v18 = vmax.f32 %v2196_v40, %v2290_v41  ;;  %v2380_v19 = vmax.f32 %v2116_v27, %v2292_v30  ;;  %v2434_v34 = vsel %vm646_vm3, %v2432_v6, %v2433_v33  ;;  %v2436_v1 = vsel %vm646_vm3, %v2433_v33, %v2435_v46 }
 0x1a3   : > { %v2578_v5 = vsel %vm791_vm4, %v2576_v60, %v2577_v39  ;;  %v2580_v22 = vsel %vm791_vm4, %v2577_v39, %v2579_v59  ;;  %v2721_v12 = vrot.slane %v2116_v27, 4  ;;  %v2723_v21 = vrot.slane %v2212_v62, 4 }
 0x1a4   : > { %v2523_v54 = vmax.f32 %v2379_v18, %v2434_v34  ;;  %v2524_v8 = vmax.f32 %v2380_v19, %v2436_v1  ;;  %v1719_v28 = vsel %vm791_vm4, %v1717_v63, %v1718_v47  ;;  %v1721_v40 = vsel %vm791_vm4, %v1718_v47, %v1720_v26  ;;  %v6796_v26 = vpop.f32.mrf.mxu1 }
 0x1a5   : > { %v2722_v6 = vsel %vm936_vm5, %v2720_v61, %v2721_v12  ;;  %v2724_v33 = vsel %vm936_vm5, %v2721_v12, %v2723_v21  ;;  %v1799_v46 = vmax.f32 %v1655_v16, %v1719_v28  ;;  %v1800_v60 = vmax.f32 %v1656_v35, %v1721_v40  ;;  %v6798_v21 = vpop.f32.mrf.mxu0 }
 0x1a6   : > { %v2667_v41 = vmax.f32 %v2523_v54, %v2578_v5  ;;  %v2668_v39 = vmax.f32 %v2524_v8, %v2580_v22  ;;  %v1862_v27 = vrot.slane %v7662_v44, 4  ;;  %v1864_v62 = vrot.slane %v6081_v56, 4  ;;  %v6819_v40 = vpop.f32.mrf.mxu1 }
 0x1a7   : > { %v1967_v30 = vmax.f32 %v6551_v55, %v6600_v38  ;;  %v1968_v1 = vmax.f32 %v6553_v23, %v6602_v57  ;;  %v1435_v63 = vrot.slane %v6115_v15, 1  ;;  %v1578_v47 = vrot.slane %v6110_v14, 2 }
 0x1a8   : > { %v2811_v12 = vmax.f32 %v2667_v41, %v2722_v6  ;;  %v2812_v16 = vmax.f32 %v2668_v39, %v2724_v33  ;;  %v1863_v44 = vsel %vm936_vm5, %v1861_v29, %v1862_v27  ;;  %v1865_v56 = vsel %vm936_vm5, %v1862_v27, %v1864_v62  ;;  %v6821_v6 = vpop.f32.mrf.mxu0 }
 0x1a9   : > { %v6802_v35 = vmax.f32 %v1799_v46, %v1863_v44  ;;  %v6804_v55 = vmax.f32 %v1800_v60, %v1865_v56  ;;  %v1995_v23 = vmax.f32 %v1967_v30, %v6651_v49  ;;  %v1996_v5 = vmax.f32 %v1968_v1, %v6661_v9  ;;  %7672 = vst [vmem:[#allocation8_spill] sm:$0xff] %v6821_v6 }
 0x1aa   : > { %v3570_v22 = vpack.c.bf16 %v2812_v16, %v2811_v12  ;;  %v7670_v59 = vrot.slane %v6110_v14, 1  ;;  %v7671_v18 = vrot.slane %v6118_v4, 1  ;;  %v1579_v29 = vrot.slane %v6115_v15, 2 }
 0x1ab   : > { %v2023_v34 = vmax.f32 %v1995_v23, %v6720_v25  ;;  %v2024_v54 = vmax.f32 %v1996_v5, %v6722_v36  ;;  %v1581_v46 = vrot.slane %v6118_v4, 2  ;;  %v1722_v60 = vrot.slane %v6110_v14, 3  ;;  %v6836_v5 = vpop.f32.mrf.mxu1 }
 0x1ac   : > { %v1436_v61 = vsel %vm501_vm2, %v7670_v59, %v1435_v63  ;;  %v1438_v19 = vsel %vm501_vm2, %v1435_v63, %v7671_v18  ;;  %4507 = vmatmul.mubr.msk.bf16.gmra.mxu1 %vm2872_vm0, %v3570_v22  ;;  %v1580_v33 = vsel %vm646_vm3, %v1578_v47, %v1579_v29  ;;  %v1723_v41 = vrot.slane %v6115_v15, 3  ;;  %7673 = vst [vmem:[#allocation16_spill] sm:$0xff] %v6836_v5  ;;  %v6838_v22 = vpop.f32.mrf.mxu0 }
 0x1ad   : > { %v1513_v8 = vmax.f32 %v6110_v14, %v1436_v61  ;;  %v1514_v28 = vmax.f32 %v6115_v15, %v1438_v19  ;;  %v2049_v39 = vmax.f32 %v2023_v34, %v6802_v35  ;;  %v2050_v27 = vmax.f32 %v2024_v54, %v6804_v55  ;;  %7674 = vst [vmem:[#allocation5_spill] sm:$0xff] %v6838_v22 }
 0x1ae   : > { %v1725_v30 = vrot.slane %v6118_v4, 3  ;;  %v1582_v1 = vsel %vm646_vm3, %v1579_v29, %v1581_v46  ;;  %v1724_v63 = vsel %vm791_vm4, %v1722_v60, %v1723_v41  ;;  %v1866_v12 = vrot.slane %v6110_v14, 4 }
 0x1af   : > { %v1657_v62 = vmax.f32 %v1513_v8, %v1580_v33  ;;  %v1867_v47 = vrot.slane %v6115_v15, 4  ;;  %v2117_v16 = vrot.slane %v2049_v39, 6  ;;  %v2118_v44 = vrot.slane %v2050_v27, 6  ;;  %v6847_v27 = vpop.f32.mrf.mxu1 }
 0x1b0   : > { %v1658_v56 = vmax.f32 %v1514_v28, %v1582_v1  ;;  %v1726_v23 = vsel %vm791_vm4, %v1723_v41, %v1725_v30  ;;  %v1869_v18 = vrot.slane %v6118_v4, 4  ;;  %v1969_v19 = vmax.f32 %v6600_v38, %v6651_v49  ;;  %7675 = vst [vmem:[#allocation15_spill] sm:$0xff] %v6847_v27  ;;  %v6849_v4 = vpop.f32.mrf.mxu0 }
 0x1b1   : > { %v1801_v59 = vmax.f32 %v1657_v62, %v1724_v63  ;;  %v1868_v61 = vsel %vm936_vm5, %v1866_v12, %v1867_v47  ;;  %v2119_v14 = vsel %vm340_vm1, %v2117_v16, %v2118_v44  ;;  %v2197_v15 = vsel %vm340_vm1, -inf, %v2117_v16  ;;  %7676 = vst [vmem:[#allocation23_spill] sm:$0xff] %v6849_v4 }
 0x1b2   : > { %v2213_v29 = vsel %vm340_vm1, %v2118_v44, -inf  ;;  %v1802_v34 = vmax.f32 %v1658_v56, %v1726_v23  ;;  %v2293_v54 = vrot.slane %v2197_v15, 1  ;;  %v2294_v8 = vrot.slane %v2119_v14, 1 }
 0x1b3   : > { %v2296_v28 = vrot.slane %v2213_v29, 1  ;;  %v2437_v33 = vrot.slane %v2197_v15, 2  ;;  %v2438_v46 = vrot.slane %v2119_v14, 2  ;;  %v2440_v60 = vrot.slane %v2213_v29, 2 }
 0x1b4   : > { %v2581_v41 = vrot.slane %v2197_v15, 3  ;;  %v2582_v39 = vrot.slane %v2119_v14, 3  ;;  %v2295_v38 = vsel %vm501_vm2, %v2293_v54, %v2294_v8  ;;  %v2584_v30 = vrot.slane %v2213_v29, 3 }
 0x1b5   : > { %v2297_v62 = vsel %vm501_vm2, %v2294_v8, %v2296_v28  ;;  %v2725_v1 = vrot.slane %v2197_v15, 4  ;;  %v2381_v63 = vmax.f32 %v2197_v15, %v2295_v38  ;;  %v2439_v16 = vsel %vm646_vm3, %v2437_v33, %v2438_v46  ;;  %v6860_v8 = vpop.f32.mrf.mxu1  ;;  %v6862_v15 = vpop.f32.mrf.mxu0 }
 0x1b6   : > { %v2382_v12 = vmax.f32 %v2119_v14, %v2297_v62  ;;  %v2441_v44 = vsel %vm646_vm3, %v2438_v46, %v2440_v60  ;;  %v2583_v56 = vsel %vm791_vm4, %v2581_v41, %v2582_v39  ;;  %v2585_v23 = vsel %vm791_vm4, %v2582_v39, %v2584_v30  ;;  %v7682_v62 = vld [vmem:[#allocation11_spill] sm:$0xff] }
 0x1b7   : > { %v2726_v22 = vrot.slane %v2119_v14, 4  ;;  %v2728_v27 = vrot.slane %v2213_v29, 4  ;;  %v2525_v5 = vmax.f32 %v2381_v63, %v2439_v16  ;;  %v1870_v54 = vsel %vm936_vm5, %v1867_v47, %v1869_v18 }
 0x1b8   : > { %v2526_v4 = vmax.f32 %v2382_v12, %v2441_v44  ;;  %v6858_v6 = vmax.f32 %v1801_v59, %v1868_v61  ;;  %v6866_v46 = vmax.f32 %v1802_v34, %v1870_v54  ;;  %v1970_v14 = vmax.f32 %v6602_v57, %v6661_v9  ;;  %v7680_v57 = vld [vmem:[#allocation18_spill] sm:$0xff]  ;;  %v6892_v12 = vpop.f32.mrf.mxu1  ;;  %v7685_v44 = vld [vmem:[#allocation17_spill] sm:$0xff] }
 0x1b9   : > { %v2727_v28 = vsel %vm936_vm5, %v2725_v1, %v2726_v22  ;;  %v2729_v33 = vsel %vm936_vm5, %v2726_v22, %v2728_v27  ;;  %v2669_v29 = vmax.f32 %v2525_v5, %v2583_v56  ;;  %v1997_v41 = vmax.f32 %v1969_v19, %v6720_v25  ;;  %v7677_v22 = vld [vmem:[#allocation10_spill] sm:$0xff] }
 0x1ba   : > { %v2670_v60 = vmax.f32 %v2526_v4, %v2585_v23  ;;  %v3305_v47 = vpack.c.bf16 %v6661_v9, %v6651_v49  ;;  %v1998_v59 = vmax.f32 %v1970_v14, %v6722_v36  ;;  %v3306_v61 = vpack.c.bf16 %v6722_v36, %v6720_v25 }
 0x1bb   : > { %v7678_v18 = vmax.f32 %v6179_v42, %v7677_v22  ;;  %v7679_v39 = vrot.slane %v6179_v42, 3  ;;  %v7681_v5 = vrot.slane %v7680_v57, 3  ;;  %v2813_v19 = vmax.f32 %v2669_v29, %v2727_v28 }
 0x1bc   : > { %v2814_v4 = vmax.f32 %v2670_v60, %v2729_v33  ;;  %v2025_v38 = vmax.f32 %v1997_v41, %v6802_v35  ;;  %4476 = vmatprep.mubr.msk.bf16.mxu0 %vm2872_vm0, %v3305_v47  ;;  %v7683_v30 = vrot.slane %v7682_v62, 3  ;;  %v2026_v16 = vmax.f32 %v1998_v59, %v6804_v55 }
 0x1bd   : > { %v1660_v34 = vmax.f32 %v7678_v18, %v6200_v13  ;;  %v1729_v27 = vsel %vm791_vm4, %v7681_v5, %v7679_v39  ;;  %v7684_v1 = vmov %v7679_v39  ;;  %v6894_v13 = vpop.f32.mrf.mxu0  ;;  %4477 = vmatmul.mubr.msk.bf16.gmra.mxu0 %vm2872_vm0, %v3306_v61  ;;  %v7686_v54 = vrot.slane %v6179_v42, 4  ;;  %v6925_v5 = vpop.f32.mrf.mxu1 }
 0x1be   : > { %v1731_v63 = vsel %vm791_vm4, %v7684_v1, %v7683_v30  ;;  %v1803_v56 = vmax.f32 %v7685_v44, %v1729_v27  ;;  %v7687_v28 = vrot.slane %v7680_v57, 4  ;;  %v3571_v14 = vpack.c.bf16 %v2814_v4, %v2813_v19 }
 0x1bf   : > { %v1804_v23 = vmax.f32 %v1660_v34, %v1731_v63  ;;  %v2051_v29 = vmax.f32 %v2025_v38, %v6858_v6  ;;  %v7688_v60 = vrot.slane %v7682_v62, 4  ;;  %v7689_v41 = vmov %v7686_v54  ;;  %v6927_v27 = vpop.f32.mrf.mxu0 }
 0x1c0   : > { %v1873_v33 = vsel %vm936_vm5, %v7687_v28, %v7686_v54  ;;  %v1971_v59 = vmax.f32 %v6651_v49, %v6720_v25  ;;  %v2052_v61 = vmax.f32 %v2026_v16, %v6866_v46  ;;  %v1972_v34 = vmax.f32 %v6661_v9, %v6722_v36  ;;  %4510 = vmatprep.mubr.msk.bf16.mxu1 %vm2872_vm0, %v3571_v14 }
 0x1c1   : > { %v1875_v47 = vsel %vm936_vm5, %v7689_v41, %v7688_v60  ;;  %v6913_v22 = vmax.f32 %v1803_v56, %v1873_v33  ;;  %v2120_v39 = vrot.slane %v2051_v29, 6  ;;  %v1973_v42 = vmax.f32 %v6720_v25, %v6802_v35  ;;  %7690 = vst [vmem:[#allocation10_spill] sm:$0xff] %v6927_v27  ;;  %v6941_v33 = vpop.f32.mrf.mxu1  ;;  %v6943_v14 = vpop.f32.mrf.mxu0 }
 0x1c2   : > { %v6915_v18 = vmax.f32 %v1804_v23, %v1875_v47  ;;  %v1999_v57 = vmax.f32 %v1971_v59, %v6802_v35  ;;  %v1974_v49 = vmax.f32 %v6722_v36, %v6804_v55  ;;  %v2121_v19 = vrot.slane %v2052_v61, 6  ;;  %7691 = vst [vmem:[#allocation18_spill] sm:$0xff] %v6941_v33  ;;  %7692 = vst [vmem:[#allocation11_spill] sm:$0xff] %v6943_v14 }
 0x1c3   : > { %v2000_v4 = vmax.f32 %v1972_v34, %v6804_v55  ;;  %v3307_v9 = vpack.c.bf16 %v6804_v55, %v6802_v35  ;;  %v3308_v38 = vpack.c.bf16 %v6866_v46, %v6858_v6  ;;  %v2198_v62 = vsel %vm340_vm1, -inf, %v2120_v39  ;;  %v6954_v27 = vpop.f32.mrf.mxu1 }
 0x1c4   : > { %v2027_v25 = vmax.f32 %v1999_v57, %v6858_v6  ;;  %v2001_v30 = vmax.f32 %v1973_v42, %v6858_v6  ;;  %v2002_v36 = vmax.f32 %v1974_v49, %v6866_v46  ;;  %v2122_v1 = vsel %vm340_vm1, %v2120_v39, %v2121_v19 }
 0x1c5   : > { %v2214_v63 = vsel %vm340_vm1, %v2121_v19, -inf  ;;  %v2298_v16 = vrot.slane %v2198_v62, 1  ;;  %v2442_v44 = vrot.slane %v2198_v62, 2  ;;  %4480 = vmatprep.mubr.msk.bf16.mxu0 %vm2872_vm0, %v3307_v9  ;;  %v2299_v56 = vrot.slane %v2122_v1, 1 }
 0x1c6   : > { %v2301_v23 = vrot.slane %v2214_v63, 1  ;;  %v2443_v54 = vrot.slane %v2122_v1, 2  ;;  %v2445_v28 = vrot.slane %v2214_v63, 2  ;;  %v2586_v29 = vrot.slane %v2198_v62, 3  ;;  %4481 = vmatmul.mubr.msk.bf16.gmra.mxu0 %vm2872_vm0, %v3308_v38 }
 0x1c7   : > { %v2587_v60 = vrot.slane %v2122_v1, 3  ;;  %v2589_v41 = vrot.slane %v2214_v63, 3  ;;  %v2730_v47 = vrot.slane %v2198_v62, 4  ;;  %v2300_v59 = vsel %vm501_vm2, %v2298_v16, %v2299_v56  ;;  %v6956_v16 = vpop.f32.mrf.mxu0 }
 0x1c8   : > { %v2302_v61 = vsel %vm501_vm2, %v2299_v56, %v2301_v23  ;;  %v2444_v34 = vsel %vm646_vm3, %v2442_v44, %v2443_v54  ;;  %v2446_v39 = vsel %vm646_vm3, %v2443_v54, %v2445_v28  ;;  %v2383_v57 = vmax.f32 %v2198_v62, %v2300_v59 }
 0x1c9   : > { %v2384_v42 = vmax.f32 %v2122_v1, %v2302_v61  ;;  %v2588_v49 = vsel %vm791_vm4, %v2586_v29, %v2587_v60  ;;  %v2590_v19 = vsel %vm791_vm4, %v2587_v60, %v2589_v41  ;;  %v2731_v9 = vrot.slane %v2122_v1, 4  ;;  %v6980_v61 = vpop.f32.mrf.mxu0 }
 0x1ca   : > { %v2733_v14 = vrot.slane %v2214_v63, 4  ;;  %v2028_v33 = vmax.f32 %v2000_v4, %v6866_v46  ;;  %v2053_v38 = vmax.f32 %v2027_v25, %v6913_v22  ;;  %v2527_v56 = vmax.f32 %v2383_v57, %v2444_v34 }
 0x1cb   : > { %v2528_v44 = vmax.f32 %v2384_v42, %v2446_v39  ;;  %v2029_v23 = vmax.f32 %v2001_v30, %v6913_v22  ;;  %v2030_v62 = vmax.f32 %v2002_v36, %v6915_v18  ;;  %v2732_v54 = vsel %vm936_vm5, %v2730_v47, %v2731_v9  ;;  %v6978_v47 = vpop.f32.mrf.mxu1 }
 0x1cc   : > { %v2734_v28 = vsel %vm936_vm5, %v2731_v9, %v2733_v14  ;;  %v2054_v1 = vmax.f32 %v2028_v33, %v6915_v18  ;;  %v2123_v63 = vrot.slane %v2053_v38, 6  ;;  %v2671_v4 = vmax.f32 %v2527_v56, %v2588_v49 }
 0x1cd   : > { %v2672_v29 = vmax.f32 %v2528_v44, %v2590_v19  ;;  %v2055_v25 = vmax.f32 %v2029_v23, %v6373_v53  ;;  %v2056_v60 = vmax.f32 %v2030_v62, %v6375_v32  ;;  %v7693_v30 = vmax.f32 %v6329_v50, %v6346_v2  ;;  %v6984_v23 = vpop.f32.mrf.mxu1  ;;  %v6986_v62 = vpop.f32.mrf.mxu0 }
 0x1ce   : > { %v2124_v41 = vrot.slane %v2054_v1, 6  ;;  %v2199_v59 = vsel %vm340_vm1, -inf, %v2123_v63  ;;  %v7694_v33 = vmax.f32 %v6331_v7, %v6349_v20  ;;  %v2815_v34 = vmax.f32 %v2671_v4, %v2732_v54  ;;  %7695 = vst [vmem:[#allocation17_spill] sm:$0xff] %v6984_v23  ;;  %7696 = vst [vmem:[#allocation24_spill] sm:$0xff] %v6986_v62 }
 0x1cf   : > { %v6970_v36 = vmax.f32 %v7693_v30, %v6367_v58  ;;  %v2816_v39 = vmax.f32 %v2672_v29, %v2734_v28  ;;  %v2303_v57 = vrot.slane %v2199_v59, 1  ;;  %v2447_v42 = vrot.slane %v2199_v59, 2 }
 0x1d0   : > { %v6976_v14 = vmax.f32 %v7694_v33, %v6371_v0  ;;  %v2125_v49 = vsel %vm340_vm1, %v2123_v63, %v2124_v41  ;;  %v2215_v50 = vsel %vm340_vm1, %v2124_v41, -inf  ;;  %v2591_v2 = vrot.slane %v2199_v59, 3 }
 0x1d1   : > { %v2735_v58 = vrot.slane %v2199_v59, 4  ;;  %v3572_v19 = vpack.c.bf16 %v2816_v39, %v2815_v34  ;;  %v2304_v9 = vrot.slane %v2125_v49, 1  ;;  %v2306_v38 = vrot.slane %v2215_v50, 1 }
 0x1d2   : > { %v2448_v7 = vrot.slane %v2125_v49, 2  ;;  %v2450_v20 = vrot.slane %v2215_v50, 2  ;;  %v2592_v0 = vrot.slane %v2125_v49, 3  ;;  %v2594_v56 = vrot.slane %v2215_v50, 3 }
 0x1d3   : > { %v2736_v44 = vrot.slane %v2125_v49, 4  ;;  %4511 = vmatmul.mubr.msk.bf16.gmra.mxu1 %vm2872_vm0, %v3572_v19  ;;  %v2305_v54 = vsel %vm501_vm2, %v2303_v57, %v2304_v9  ;;  %v2307_v28 = vsel %vm501_vm2, %v2304_v9, %v2306_v38  ;;  %v2738_v63 = vrot.slane %v2215_v50, 4  ;;  %v6999_v50 = vpop.f32.mrf.mxu1  ;;  %v7701_v38 = vld [vmem:[#allocation9_spill] sm:$0xff] }
 0x1d4   : > { %v2449_v1 = vsel %vm646_vm3, %v2447_v42, %v2448_v7  ;;  %v2385_v4 = vmax.f32 %v2199_v59, %v2305_v54  ;;  %v2386_v29 = vmax.f32 %v2125_v49, %v2307_v28  ;;  %v2451_v41 = vsel %vm646_vm3, %v2448_v7, %v2450_v20  ;;  %v7001_v59 = vpop.f32.mrf.mxu0 }
 0x1d5   : > { %v2593_v30 = vsel %vm791_vm4, %v2591_v2, %v2592_v0  ;;  %v2595_v33 = vsel %vm791_vm4, %v2592_v0, %v2594_v56  ;;  %v2737_v34 = vsel %vm936_vm5, %v2735_v58, %v2736_v44  ;;  %v2739_v39 = vsel %vm936_vm5, %v2736_v44, %v2738_v63  ;;  %7697 = vst [vmem:[#allocation25_spill] sm:$0xff] %v7001_v59 }
 0x1d6   : > { %v2126_v19 = vrot.slane %v2055_v25, 6  ;;  %v2529_v62 = vmax.f32 %v2385_v4, %v2449_v1  ;;  %v2530_v57 = vmax.f32 %v2386_v29, %v2451_v41  ;;  %v2127_v23 = vrot.slane %v2056_v60, 6 }
 0x1d7   : > { %v1975_v42 = vmax.f32 %v6802_v35, %v6858_v6  ;;  %v1976_v2 = vmax.f32 %v6804_v55, %v6866_v46  ;;  %v7698_v58 = vrot.slane %v6285_v3, 2  ;;  %v7699_v9 = vrot.slane %v6276_v48, 2 }
 0x1d8   : > { %v2200_v49 = vsel %vm340_vm1, -inf, %v2126_v19  ;;  %v7700_v60 = vrot.slane %v6276_v48, 3  ;;  %v7702_v7 = vrot.slane %v7701_v38, 3  ;;  %v2673_v20 = vmax.f32 %v2529_v62, %v2593_v30 }
 0x1d9   : > { %v1602_v25 = vsel %vm646_vm3, %v7699_v9, %v7698_v58  ;;  %v2674_v0 = vmax.f32 %v2530_v57, %v2595_v33  ;;  %v2128_v56 = vsel %vm340_vm1, %v2126_v19, %v2127_v23  ;;  %v2216_v44 = vsel %vm340_vm1, %v2127_v23, -inf  ;;  %v7018_v58 = vpop.f32.mrf.mxu1  ;;  %v7020_v9 = vpop.f32.mrf.mxu0 }
 0x1da   : > { %v1744_v35 = vsel %vm791_vm4, %v7702_v7, %v7700_v60  ;;  %v2308_v54 = vrot.slane %v2200_v49, 1  ;;  %v2309_v55 = vrot.slane %v2128_v56, 1  ;;  %v2311_v28 = vrot.slane %v2216_v44, 1  ;;  %7703 = vst [vmem:[#allocation9_spill] sm:$0xff] %v7018_v58  ;;  %7704 = vst [vmem:[#allocation26_spill] sm:$0xff] %v7020_v9 }
 0x1db   : > { %v2452_v1 = vrot.slane %v2200_v49, 2  ;;  %v2817_v63 = vmax.f32 %v2673_v20, %v2737_v34  ;;  %v2818_v4 = vmax.f32 %v2674_v0, %v2739_v39  ;;  %v2453_v29 = vrot.slane %v2128_v56, 2 }
 0x1dc   : > { %v2455_v41 = vrot.slane %v2216_v44, 2  ;;  %v2310_v60 = vsel %vm501_vm2, %v2308_v54, %v2309_v55  ;;  %v2312_v62 = vsel %vm501_vm2, %v2309_v55, %v2311_v28  ;;  %v2596_v30 = vrot.slane %v2200_v49, 3  ;;  %v7028_v55 = vpop.f32.mrf.mxu1  ;;  %v7030_v28 = vpop.f32.mrf.mxu0 }
 0x1dd   : > { %v2597_v33 = vrot.slane %v2128_v56, 3  ;;  %v3573_v19 = vpack.c.bf16 %v2818_v4, %v2817_v63  ;;  %v2387_v23 = vmax.f32 %v2200_v49, %v2310_v60  ;;  %v2388_v57 = vmax.f32 %v2128_v56, %v2312_v62 }
 0x1de   : > { %v2454_v7 = vsel %vm646_vm3, %v2452_v1, %v2453_v29  ;;  %v2456_v34 = vsel %vm646_vm3, %v2453_v29, %v2455_v41  ;;  %v2599_v20 = vrot.slane %v2216_v44, 3  ;;  %v2740_v0 = vrot.slane %v2200_v49, 4  ;;  %v7705_v29 = vld [vmem:[#allocation14_spill] sm:$0xff] }
 0x1df   : > { %v2598_v39 = vsel %vm791_vm4, %v2596_v30, %v2597_v33  ;;  %4514 = vmatprep.mubr.msk.bf16.mxu1 %vm2872_vm0, %v3573_v19  ;;  %v2531_v9 = vmax.f32 %v2387_v23, %v2454_v7  ;;  %v2532_v58 = vmax.f32 %v2388_v57, %v2456_v34  ;;  %v2741_v54 = vrot.slane %v2128_v56, 4  ;;  %v7709_v23 = vld [vmem:[#allocation13_spill] sm:$0xff] }
 0x1e0   : > { %v2743_v59 = vrot.slane %v2216_v44, 4  ;;  %v2600_v63 = vsel %vm791_vm4, %v2597_v33, %v2599_v20  ;;  %v2003_v1 = vmax.f32 %v1975_v42, %v6913_v22  ;;  %v2004_v4 = vmax.f32 %v1976_v2, %v6915_v18  ;;  %v7055_v20 = vpop.f32.mrf.mxu0 }
 0x1e1   : > { %v7706_v41 = vmax.f32 %v6276_v48, %v7705_v29  ;;  %v2675_v60 = vmax.f32 %v2531_v9, %v2598_v39  ;;  %v2676_v62 = vmax.f32 %v2532_v58, %v2600_v63  ;;  %v2742_v30 = vsel %vm936_vm5, %v2740_v0, %v2741_v54  ;;  %v7053_v39 = vpop.f32.mrf.mxu1 }
 0x1e2   : > { %v2744_v56 = vsel %vm936_vm5, %v2741_v54, %v2743_v59  ;;  %v2031_v44 = vmax.f32 %v2003_v1, %v6373_v53  ;;  %v2032_v19 = vmax.f32 %v2004_v4, %v6375_v32  ;;  %v7707_v33 = vrot.slane %v6285_v3, 3 }
 0x1e3   : > { %v1666_v49 = vmax.f32 %v7706_v41, %v1602_v25  ;;  %v7708_v42 = vrot.slane %v6276_v48, 3  ;;  %v1809_v57 = vmax.f32 %v7709_v23, %v1744_v35  ;;  %v2819_v7 = vmax.f32 %v2675_v60, %v2742_v30 }
 0x1e4   : > { %v2820_v25 = vmax.f32 %v2676_v62, %v2744_v56  ;;  %v7710_v58 = vrot.slane %v6276_v48, 4  ;;  %v7711_v34 = vrot.slane %v7701_v38, 4  ;;  %v2057_v0 = vmax.f32 %v2031_v44, %v6970_v36  ;;  %v7083_v44 = vpop.f32.mrf.mxu1 }
 0x1e5   : > { %v1746_v2 = vsel %vm791_vm4, %v7708_v42, %v7707_v33  ;;  %v2058_v54 = vmax.f32 %v2032_v19, %v6976_v14  ;;  %v7712_v63 = vrot.slane %v6285_v3, 4  ;;  %v1977_v41 = vmax.f32 %v6858_v6, %v6913_v22  ;;  %v7085_v19 = vpop.f32.mrf.mxu0 }
 0x1e6   : > { %v1810_v9 = vmax.f32 %v1666_v49, %v1746_v2  ;;  %v1888_v59 = vsel %vm936_vm5, %v7711_v34, %v7710_v58  ;;  %v7713_v35 = vmov %v7710_v58  ;;  %v3574_v29 = vpack.c.bf16 %v2820_v25, %v2819_v7 }
 0x1e7   : > { %v1890_v1 = vsel %vm936_vm5, %v7713_v35, %v7712_v63  ;;  %v7064_v4 = vmax.f32 %v1809_v57, %v1888_v59  ;;  %v1978_v49 = vmax.f32 %v6866_v46, %v6915_v18  ;;  %v2129_v60 = vrot.slane %v2057_v0, 6  ;;  %v7096_v35 = vpop.f32.mrf.mxu1 }
 0x1e8   : > { %v7066_v38 = vmax.f32 %v1810_v9, %v1890_v1  ;;  %v2130_v62 = vrot.slane %v2058_v54, 6  ;;  %v3309_v3 = vpack.c.bf16 %v6915_v18, %v6913_v22  ;;  %v3310_v48 = vpack.c.bf16 %v6375_v32, %v6373_v53  ;;  %4515 = vmatmul.mubr.msk.bf16.gmra.mxu1 %vm2872_vm0, %v3574_v29  ;;  %7714 = vst [vmem:[#allocation14_spill] sm:$0xff] %v7096_v35  ;;  %v7098_v1 = vpop.f32.mrf.mxu0 }
 0x1e9   : > { %v2005_v30 = vmax.f32 %v1977_v41, %v6373_v53  ;;  %v2006_v56 = vmax.f32 %v1978_v49, %v6375_v32  ;;  %v1979_v6 = vmax.f32 %v6913_v22, %v6373_v53  ;;  %v1980_v46 = vmax.f32 %v6915_v18, %v6375_v32  ;;  %7715 = vst [vmem:[#allocation13_spill] sm:$0xff] %v7098_v1 }
 0x1ea   : > { %v2131_v33 = vsel %vm340_vm1, %v2129_v60, %v2130_v62  ;;  %v2201_v42 = vsel %vm340_vm1, -inf, %v2129_v60  ;;  %v2217_v2 = vsel %vm340_vm1, %v2130_v62, -inf  ;;  %4484 = vmatprep.mubr.msk.bf16.mxu0 %vm2872_vm0, %v3309_v3  ;;  %v1981_v23 = vmax.f32 %v6373_v53, %v6970_v36 }
 0x1eb   : > { %v2313_v57 = vrot.slane %v2201_v42, 1  ;;  %v2314_v22 = vrot.slane %v2131_v33, 1  ;;  %v2316_v7 = vrot.slane %v2217_v2, 1  ;;  %v2457_v25 = vrot.slane %v2201_v42, 2  ;;  %4485 = vmatmul.mubr.msk.bf16.gmra.mxu0 %vm2872_vm0, %v3310_v48 }
 0x1ec   : > { %v2458_v18 = vrot.slane %v2131_v33, 2  ;;  %v2460_v9 = vrot.slane %v2217_v2, 2  ;;  %v2601_v58 = vrot.slane %v2201_v42, 3  ;;  %v2602_v34 = vrot.slane %v2131_v33, 3 }
 0x1ed   : > { %v2315_v59 = vsel %vm501_vm2, %v2313_v57, %v2314_v22  ;;  %v2317_v0 = vsel %vm501_vm2, %v2314_v22, %v2316_v7  ;;  %v2604_v54 = vrot.slane %v2217_v2, 3  ;;  %v2745_v63 = vrot.slane %v2201_v42, 4 }
 0x1ee   : > { %v2389_v53 = vmax.f32 %v2201_v42, %v2315_v59  ;;  %v2390_v29 = vmax.f32 %v2131_v33, %v2317_v0  ;;  %v2459_v41 = vsel %vm646_vm3, %v2457_v25, %v2458_v18  ;;  %v2461_v49 = vsel %vm646_vm3, %v2458_v18, %v2460_v9  ;;  %v7110_v9 = vpop.f32.mrf.mxu1 }
 0x1ef   : > { %v2603_v60 = vsel %vm791_vm4, %v2601_v58, %v2602_v34  ;;  %v2605_v62 = vsel %vm791_vm4, %v2602_v34, %v2604_v54  ;;  %v2746_v3 = vrot.slane %v2131_v33, 4  ;;  %v2748_v48 = vrot.slane %v2217_v2, 4  ;;  %v7112_v58 = vpop.f32.mrf.mxu0 }
 0x1f0   : > { %v2533_v57 = vmax.f32 %v2389_v53, %v2459_v41  ;;  %v2534_v22 = vmax.f32 %v2390_v29, %v2461_v49  ;;  %v2033_v7 = vmax.f32 %v2005_v30, %v6970_v36  ;;  %v2034_v35 = vmax.f32 %v2006_v56, %v6976_v14  ;;  %7716 = vst [vmem:[#allocation27_spill] sm:$0xff] %v7112_v58 }
 0x1f1   : > { %v2747_v1 = vsel %vm936_vm5, %v2745_v63, %v2746_v3  ;;  %v2749_v42 = vsel %vm936_vm5, %v2746_v3, %v2748_v48  ;;  %v2007_v25 = vmax.f32 %v1979_v6, %v6970_v36  ;;  %v2008_v18 = vmax.f32 %v1980_v46, %v6976_v14 }
 0x1f2   : > { %v2677_v33 = vmax.f32 %v2533_v57, %v2603_v60  ;;  %v2678_v2 = vmax.f32 %v2534_v22, %v2605_v62  ;;  %v2059_v34 = vmax.f32 %v2033_v7, %v7064_v4  ;;  %v2060_v30 = vmax.f32 %v2034_v35, %v7066_v38  ;;  %v7127_v60 = vpop.f32.mrf.mxu1  ;;  %v7129_v62 = vpop.f32.mrf.mxu0 }
 0x1f3   : > { %v2035_v56 = vmax.f32 %v2007_v25, %v7064_v4  ;;  %v2036_v59 = vmax.f32 %v2008_v18, %v7066_v38  ;;  %v1982_v0 = vmax.f32 %v6375_v32, %v6976_v14  ;;  %v7121_v6 = vmax.f32 %v1981_v23, %v7064_v4  ;;  %7717 = vst [vmem:[#allocation28_spill] sm:$0xff] %v7127_v60 }
 0x1f4   : > { %v2821_v46 = vmax.f32 %v2677_v33, %v2747_v1  ;;  %v2822_v54 = vmax.f32 %v2678_v2, %v2749_v42  ;;  %v2132_v63 = vrot.slane %v2059_v34, 6  ;;  %v2133_v53 = vrot.slane %v2060_v30, 6  ;;  %7718 = vst [vmem:[#allocation29_spill] sm:$0xff] %v7129_v62 }
 0x1f5   : > { %v2135_v29 = vrot.slane %v2035_v56, 6  ;;  %v2136_v41 = vrot.slane %v2036_v59, 6  ;;  %v7124_v49 = vmax.f32 %v1982_v0, %v7066_v38  ;;  %v7137_v59 = vpop.f32.mrf.mxu1  ;;  %v7139_v0 = vpop.f32.mrf.mxu0 }
 0x1f6   : > { %v3575_v3 = vpack.c.bf16 %v2822_v54, %v2821_v46  ;;  %v2134_v32 = vsel %vm340_vm1, %v2132_v63, %v2133_v53  ;;  %v2202_v23 = vsel %vm340_vm1, -inf, %v2132_v63  ;;  %v2218_v1 = vsel %vm340_vm1, %v2133_v53, -inf  ;;  %7719 = vst [vmem:[#allocation30_spill] sm:$0xff] %v7137_v59  ;;  %7720 = vst [vmem:[#allocation31_spill] sm:$0xff] %v7139_v0 }
 0x1f7   : > { %v2318_v48 = vrot.slane %v2202_v23, 1  ;;  %v2319_v57 = vrot.slane %v2134_v32, 1  ;;  %v2321_v22 = vrot.slane %v2218_v1, 1  ;;  %v2462_v7 = vrot.slane %v2202_v23, 2 }
 0x1f8   : > { %4518 = vmatprep.mubr.msk.bf16.mxu1 %vm2872_vm0, %v3575_v3  ;;  %v2463_v42 = vrot.slane %v2134_v32, 2  ;;  %v2465_v25 = vrot.slane %v2218_v1, 2  ;;  %v2606_v18 = vrot.slane %v2202_v23, 3  ;;  %v2607_v33 = vrot.slane %v2134_v32, 3 }
 0x1f9   : > { %v2320_v2 = vsel %vm501_vm2, %v2318_v48, %v2319_v57  ;;  %v2322_v34 = vsel %vm501_vm2, %v2319_v57, %v2321_v22  ;;  %v2609_v30 = vrot.slane %v2218_v1, 3  ;;  %v2750_v56 = vrot.slane %v2202_v23, 4 }
 0x1fa   : > { %v2391_v46 = vmax.f32 %v2202_v23, %v2320_v2  ;;  %v2392_v54 = vmax.f32 %v2134_v32, %v2322_v34  ;;  %v2464_v63 = vsel %vm646_vm3, %v2462_v7, %v2463_v42  ;;  %v2466_v53 = vsel %vm646_vm3, %v2463_v42, %v2465_v25  ;;  %v7150_v42 = vpop.f32.mrf.mxu1  ;;  %v7152_v25 = vpop.f32.mrf.mxu0 }
 0x1fb   : > { %v2608_v3 = vsel %vm791_vm4, %v2606_v18, %v2607_v33  ;;  %v2610_v35 = vsel %vm791_vm4, %v2607_v33, %v2609_v30  ;;  %v2751_v62 = vrot.slane %v2134_v32, 4  ;;  %v2753_v48 = vrot.slane %v2218_v1, 4  ;;  %7721 = vst [vmem:[#allocation32_spill] sm:$0xff] %v7150_v42  ;;  %7722 = vst [vmem:[#allocation33_spill] sm:$0xff] %v7152_v25 }
 0x1fc   : > { %v2535_v60 = vmax.f32 %v2391_v46, %v2464_v63  ;;  %v2536_v57 = vmax.f32 %v2392_v54, %v2466_v53  ;;  %v2137_v22 = vsel %vm340_vm1, %v2135_v29, %v2136_v41  ;;  %v2203_v59 = vsel %vm340_vm1, -inf, %v2135_v29 }
 0x1fd   : > { %v2752_v0 = vsel %vm936_vm5, %v2750_v56, %v2751_v62  ;;  %v2754_v23 = vsel %vm936_vm5, %v2751_v62, %v2753_v48  ;;  %v2219_v7 = vsel %vm340_vm1, %v2136_v41, -inf  ;;  %v2323_v2 = vrot.slane %v2203_v59, 1 }
 0x1fe   : > { %v2679_v18 = vmax.f32 %v2535_v60, %v2608_v3  ;;  %v2680_v32 = vmax.f32 %v2536_v57, %v2610_v35  ;;  %v2324_v1 = vrot.slane %v2137_v22, 1  ;;  %v2326_v33 = vrot.slane %v2219_v7, 1  ;;  %v7158_v60 = vpop.f32.mrf.mxu1  ;;  %v7160_v35 = vpop.f32.mrf.mxu0 }
 0x1ff   : > { %v2467_v34 = vrot.slane %v2203_v59, 2  ;;  %v2468_v30 = vrot.slane %v2137_v22, 2  ;;  %v2470_v46 = vrot.slane %v2219_v7, 2  ;;  %v2611_v54 = vrot.slane %v2203_v59, 3 }
 0x200   : > { %v2823_v29 = vmax.f32 %v2679_v18, %v2752_v0  ;;  %v2824_v63 = vmax.f32 %v2680_v32, %v2754_v23  ;;  %v2325_v56 = vsel %vm501_vm2, %v2323_v2, %v2324_v1  ;;  %v2327_v62 = vsel %vm501_vm2, %v2324_v1, %v2326_v33 }
 0x201   : > { %v2393_v41 = vmax.f32 %v2203_v59, %v2325_v56  ;;  %v2394_v53 = vmax.f32 %v2137_v22, %v2327_v62  ;;  %v2469_v48 = vsel %vm646_vm3, %v2467_v34, %v2468_v30  ;;  %v2471_v25 = vsel %vm646_vm3, %v2468_v30, %v2470_v46 }
 0x202   : > { %v3576_v3 = vpack.c.bf16 %v2824_v63, %v2823_v29  ;;  %v2612_v57 = vrot.slane %v2137_v22, 3  ;;  %v2614_v42 = vrot.slane %v2219_v7, 3  ;;  %v2755_v58 = vrot.slane %v2203_v59, 4 }
 0x203   : > { %v2537_v0 = vmax.f32 %v2393_v41, %v2469_v48  ;;  %v2538_v23 = vmax.f32 %v2394_v53, %v2471_v25  ;;  %v2756_v18 = vrot.slane %v2137_v22, 4  ;;  %v2758_v2 = vrot.slane %v2219_v7, 4  ;;  %v7171_v22 = vpop.f32.mrf.mxu1  ;;  %v3070_v7 = vpop.f32.mrf.mxu0 }
 0x204   : > { %4519 = vmatmul.mubr.msk.bf16.gmra.mxu1 %vm2872_vm0, %v3576_v3  ;;  %v2613_v32 = vsel %vm791_vm4, %v2611_v54, %v2612_v57  ;;  %v2615_v1 = vsel %vm791_vm4, %v2612_v57, %v2614_v42  ;;  %v2139_v33 = vrot.slane %v7124_v49, 6  ;;  %v7723_v34 = vrot.slane %v7121_v6, 6 }
 0x205   : > { %v2681_v46 = vmax.f32 %v2537_v0, %v2613_v32  ;;  %v2682_v29 = vmax.f32 %v2538_v23, %v2615_v1  ;;  %v2757_v59 = vsel %vm936_vm5, %v2755_v58, %v2756_v18  ;;  %v2759_v25 = vsel %vm936_vm5, %v2756_v18, %v2758_v2  ;;  %v3285_v32 = vpop.f32.mrf.mxu1  ;;  %v4462_v1 = vpop.f32.mrf.mxu0 }
 0x206   : > { %v2204_v30 = vsel %vm340_vm1, -inf, %v7723_v34  ;;  %v7724_v63 = vmov %v7723_v34  ;;  %v2220_v42 = vsel %vm340_vm1, %v2139_v33, -inf }
 0x207   : > { %v2140_v54 = vsel %vm340_vm1, %v7724_v63, %v2139_v33  ;;  %v2328_v49 = vrot.slane %v2204_v30, 1  ;;  %v2472_v56 = vrot.slane %v2204_v30, 2  ;;  %v2825_v62 = vmax.f32 %v2681_v46, %v2757_v59 }
 0x208   : > { %v2826_v41 = vmax.f32 %v2682_v29, %v2759_v25  ;;  %v2329_v53 = vrot.slane %v2140_v54, 1  ;;  %v2331_v48 = vrot.slane %v2220_v42, 1  ;;  %v2473_v3 = vrot.slane %v2140_v54, 2 }
 0x209   : > { %v2475_v57 = vrot.slane %v2220_v42, 2  ;;  %v2616_v58 = vrot.slane %v2204_v30, 3  ;;  %v2617_v0 = vrot.slane %v2140_v54, 3  ;;  %v2619_v6 = vrot.slane %v2220_v42, 3 }
 0x20a   : > { %v3577_v23 = vpack.c.bf16 %v2826_v41, %v2825_v62  ;;  %v2330_v18 = vsel %vm501_vm2, %v2328_v49, %v2329_v53  ;;  %v2332_v2 = vsel %vm501_vm2, %v2329_v53, %v2331_v48  ;;  %v2474_v63 = vsel %vm646_vm3, %v2472_v56, %v2473_v3 }
 0x20b   : > { %v2395_v34 = vmax.f32 %v2204_v30, %v2330_v18  ;;  %v2396_v33 = vmax.f32 %v2140_v54, %v2332_v2  ;;  %v2476_v46 = vsel %vm646_vm3, %v2473_v3, %v2475_v57  ;;  %v2618_v29 = vsel %vm791_vm4, %v2616_v58, %v2617_v0  ;;  %v4496_v3 = vpop.f32.mrf.mxu1  ;;  %v3404_v57 = vpop.f32.mrf.mxu0 }
 0x20c   : > { %4522 = vmatprep.mubr.msk.bf16.mxu1 %vm2872_vm0, %v3577_v23  ;;  %v2620_v59 = vsel %vm791_vm4, %v2617_v0, %v2619_v6  ;;  %v2760_v25 = vrot.slane %v2204_v30, 4  ;;  %v2761_v62 = vrot.slane %v2140_v54, 4  ;;  %v2763_v53 = vrot.slane %v2220_v42, 4 }
 0x20d   : > { %v2539_v49 = vmax.f32 %v2395_v34, %v2474_v63  ;;  %v2540_v41 = vmax.f32 %v2396_v33, %v2476_v46  ;;  %v3311_v48 = vpack.c.bf16 %v6976_v14, %v6970_v36  ;;  %v3312_v56 = vpack.c.bf16 %v7066_v38, %v7064_v4  ;;  %v3670_v42 = vpop.f32.mrf.mxu1  ;;  %v4463_v0 = vpop.f32.mrf.mxu0 }
 0x20e   : > { %v2762_v18 = vsel %vm936_vm5, %v2760_v25, %v2761_v62  ;;  %v2764_v58 = vsel %vm936_vm5, %v2761_v62, %v2763_v53  ;;  %v3179_v14 = vadd.f32 %v6694_v51, %v6696_v52  ;;  %v3171_v4 = vadd.f32 %v6702_v31, %v6704_v45  ;;  %v7206_v51 = vld [vmem:[%s7481_s2] ss:$0 sm:$0xff] }
 0x20f   : > { %v2683_v23 = vmax.f32 %v2539_v49, %v2618_v29  ;;  %v2684_v2 = vmax.f32 %v2540_v41, %v2620_v59  ;;  %4488 = vmatprep.mubr.msk.bf16.mxu0 %vm2872_vm0, %v3311_v48  ;;  %v3182_v38 = vadd.f32 %v6708_v17, %v6710_v43  ;;  %v4497_v6 = vpop.f32.mrf.mxu1  ;;  %v3407_v34 = vpop.f32.mrf.mxu0  ;;  %v3174_v33 = vadd.f32 %v6716_v11, %v6718_v10 }
 0x210   : > { %4489 = vmatmul.mubr.msk.bf16.gmra.mxu0 %vm2872_vm0, %v3312_v56  ;;  %v7201_v63 = vadd.f32 %v3285_v32, %v3070_v7  ;;  %v3533_v46 = vadd.f32 %v4462_v1, %v3179_v14  ;;  %v3531_v29 = vadd.f32 %v3404_v57, %v3171_v4  ;;  %v7726_v56 = vld [vmem:[#allocation21_spill] sm:$0xff] }
 0x211   : > { %v2827_v30 = vmax.f32 %v2683_v23, %v2762_v18  ;;  %v2828_v54 = vmax.f32 %v2684_v2, %v2764_v58  ;;  %v3534_v59 = vadd.f32 %v4463_v0, %v3182_v38  ;;  %v3532_v52 = vadd.f32 %v3407_v34, %v3174_v33  ;;  %v3673_v25 = vpop.f32.mrf.mxu1  ;;  %v7725_v18 = vld [vmem:[#allocation12_spill] sm:$0xff]  ;;  %v7727_v23 = vld [vmem:[#allocation22_spill] sm:$0xff]  ;;  %v7728_v2 = vld [vmem:[#allocation19_spill] sm:$0xff] }
 0x212   : > { %v3799_v31 = vadd.f32 %v4496_v3, %v3533_v46  ;;  %v3797_v45 = vadd.f32 %v3670_v42, %v3531_v29  ;;  %v4466_v53 = vpop.f32.mrf.mxu0  ;;  %v3195_v3 = vadd.f32 %v7726_v56, %v7725_v18  ;;  %v3187_v58 = vadd.f32 %v7728_v2, %v7727_v23  ;;  %v7729_v42 = vld [vmem:[#allocation20_spill] sm:$0xff]  ;;  %v7730_v0 = vld [vmem:[#allocation6_spill] sm:$0xff] }
 0x213   : > { %v3578_v36 = vpack.c.bf16 %v2828_v54, %v2827_v30  ;;  %v3800_v17 = vadd.f32 %v4497_v6, %v3534_v59  ;;  %v3798_v43 = vadd.f32 %v3673_v25, %v3532_v52  ;;  %v7731_v6 = vld [vmem:[#allocation7_spill] sm:$0xff] }
 0x214   : > { %v3838_v62 = vadd.f32 %v7206_v51, %v3799_v31  ;;  %v3836_v11 = vadd.f32 %v7206_v51, %v3797_v45  ;;  %v3420_v48 = vpop.f32.mrf.mxu0  ;;  %v3537_v30 = vadd.f32 %v4466_v53, %v3195_v3  ;;  %v3190_v34 = vadd.f32 %v6780_v37, %v7731_v6 }
 0x215   : > { %4523 = vmatmul.mubr.msk.bf16.gmra.mxu1 %vm2872_vm0, %v3578_v36  ;;  %v7211_v10 = vadd.f32 %v7206_v51, %v3800_v17  ;;  %v7214_v7 = vadd.f32 %v7206_v51, %v3798_v43  ;;  %v3198_v36 = vadd.f32 %v7730_v0, %v7729_v42  ;;  %v3535_v14 = vadd.f32 %v3420_v48, %v3187_v58 }
 0x216   : > { %v4285_v32 = vmul.f32 -1.442695, %v3838_v62  ;;  %v4283_v1 = vmul.f32 -1.442695, %v3836_v11  ;;  %v4467_v57 = vpop.f32.mrf.mxu0 }
 0x217   : > { %v4286_v49 = vmul.f32 -1.442695, %v7211_v10  ;;  %v4284_v41 = vmul.f32 -1.442695, %v7214_v7  ;;  %v3538_v31 = vadd.f32 %v4467_v57, %v3198_v36 }
 0x218   : > { %4571 = vpow2.f32 %v4285_v32  ;;  %v3423_v4 = vpop.f32.mrf.mxu0 }
 0x219   : > { %4573 = vpow2.f32 %v4283_v1  ;;  %v3536_v43 = vadd.f32 %v3423_v4, %v3190_v34 }
 0x21a   : > { %4575 = vpow2.f32 %v4286_v49 }
 0x21b   : > { %4577 = vpow2.f32 %v4284_v41 }
 0x225   : > { %v4572_v54 = vpop.eup %4571  ;;  %v4500_v46 = vpop.f32.mrf.mxu1 }
 0x226   : > { %v4574_v38 = vpop.eup %4573  ;;  %v3966_v33 = vadd.f32 1.0, %v4572_v54  ;;  %v3803_v52 = vadd.f32 %v4500_v46, %v3537_v30 }
 0x227   : > { %v4576_v29 = vpop.eup %4575  ;;  %v3964_v59 = vadd.f32 1.0, %v4574_v38  ;;  %v3686_v17 = vpop.f32.mrf.mxu1 }
 0x228   : > { %v4578_v45 = vpop.eup %4577  ;;  %4579 = vrcp.f32 %v3966_v33  ;;  %v3967_v25 = vadd.f32 1.0, %v4576_v29  ;;  %v3842_v1 = vadd.f32 %v7206_v51, %v3803_v52  ;;  %v3801_v49 = vadd.f32 %v3686_v17, %v3535_v14  ;;  %v7732_v17 = vld [vmem:[#allocation8_spill] sm:$0xff] }
 0x229   : > { %4581 = vrcp.f32 %v3964_v59  ;;  %v3965_v32 = vadd.f32 1.0, %v4578_v45  ;;  %v4501_v41 = vpop.f32.mrf.mxu1  ;;  %v3203_v45 = vadd.f32 %v6819_v40, %v6798_v21 }
 0x22a   : > { %4583 = vrcp.f32 %v3967_v25  ;;  %v4289_v37 = vmul.f32 -1.442695, %v3842_v1  ;;  %v3840_v53 = vadd.f32 %v7206_v51, %v3801_v49  ;;  %v3804_v48 = vadd.f32 %v4501_v41, %v3538_v31 }
 0x22b   : > { %4585 = vrcp.f32 %v3965_v32  ;;  %v3689_v18 = vpop.f32.mrf.mxu1 }
 0x22c   : > { %4587 = vpow2.f32 %v4289_v37  ;;  %v4287_v56 = vmul.f32 -1.442695, %v3840_v53  ;;  %v7229_v3 = vadd.f32 %v7206_v51, %v3804_v48  ;;  %v3802_v57 = vadd.f32 %v3689_v18, %v3536_v43  ;;  %v7733_v43 = vld [vmem:[#allocation16_spill] sm:$0xff]  ;;  %v7734_v18 = vld [vmem:[#allocation5_spill] sm:$0xff] }
 0x22d   : > { %v3214_v32 = vadd.f32 %v7733_v43, %v7732_v17 }
 0x22e   : > { %4589 = vpow2.f32 %v4287_v56  ;;  %v4290_v23 = vmul.f32 -1.442695, %v7229_v3  ;;  %v7234_v2 = vadd.f32 %v7206_v51, %v3802_v57  ;;  %v7735_v56 = vld [vmem:[#allocation15_spill] sm:$0xff] }
 0x22f   : > { %v3206_v57 = vadd.f32 %v7735_v56, %v7734_v18  ;;  %v3230_v18 = vadd.f32 %v6925_v5, %v6894_v13 }
 0x230   : > { %4591 = vpow2.f32 %v4290_v23  ;;  %v4288_v58 = vmul.f32 -1.442695, %v7234_v2 }
 0x232   : > { %4593 = vpow2.f32 %v4288_v58 }
 0x235   : > { %v4580_v30 = vpop.eup %4579 }
 0x236   : > { %v4582_v54 = vpop.eup %4581  ;;  %v4062_v42 = vmul.f32 %v4580_v30, %v3838_v62  ;;  %v4470_v33 = vpop.f32.mrf.mxu0 }
 0x237   : > { %v4584_v0 = vpop.eup %4583  ;;  %v4060_v36 = vmul.f32 %v4582_v54, %v3836_v11 }
 0x238   : > { %v4586_v14 = vpop.eup %4585  ;;  %4095 = vst.msk [vmem:[%s7239_s20 + $0x10] sm:$0xff] %vm4092_vm6, %v4062_v42  ;;  %v4063_v4 = vmul.f32 %v4584_v0, %v7211_v10  ;;  %v3436_v52 = vpop.f32.mrf.mxu0 }
 0x239   : > { %4093 = vst.msk [vmem:[%s7239_s20] sm:$0xff] %vm4092_vm6, %v4060_v36  ;;  %v4061_v38 = vmul.f32 %v4586_v14, %v7214_v7  ;;  %v4588_v6 = vpop.eup %4587  ;;  %v3211_v7 = vadd.f32 %v6796_v26, %v6782_v24  ;;  %v3539_v49 = vadd.f32 %v3436_v52, %v3203_v45 }
 0x23a   : > { %4096 = vst.msk [vmem:[%s7239_s20 + $0x18] sm:$0xff] %vm4092_vm6, %v4063_v4  ;;  %v3970_v62 = vadd.f32 1.0, %v4588_v6  ;;  %v4471_v31 = vpop.f32.mrf.mxu0 }
 0x23b   : > { %4094 = vst.msk [vmem:[%s7239_s20 + $0x8] sm:$0xff] %vm4092_vm6, %v4061_v38  ;;  %v4590_v11 = vpop.eup %4589  ;;  %v3541_v25 = vadd.f32 %v4470_v33, %v3211_v7  ;;  %v3542_v58 = vadd.f32 %v4471_v31, %v3214_v32  ;;  %v7736_v32 = vld [vmem:[#allocation23_spill] sm:$0xff] }
 0x23c   : > { %4595 = vrcp.f32 %v3970_v62  ;;  %v3968_v34 = vadd.f32 1.0, %v4590_v11  ;;  %v3439_v37 = vpop.f32.mrf.mxu0 }
 0x23d   : > { %v4592_v46 = vpop.eup %4591  ;;  %v3540_v54 = vadd.f32 %v3439_v37, %v3206_v57 }
 0x23e   : > { %4597 = vrcp.f32 %v3968_v34  ;;  %v3971_v29 = vadd.f32 1.0, %v4592_v46 }
 0x23f   : > { %v4594_v59 = vpop.eup %4593 }
 0x240   : > { %4599 = vrcp.f32 %v3971_v29  ;;  %v3969_v10 = vadd.f32 1.0, %v4594_v59 }
 0x242   : > { %4601 = vrcp.f32 %v3969_v10 }
 0x249   : > { %v4504_v41 = vpop.f32.mrf.mxu1  ;;  %v4596_v48 = vpop.eup %4595 }
 0x24a   : > { %v3807_v23 = vadd.f32 %v4504_v41, %v3541_v25  ;;  %v4066_v24 = vmul.f32 %v4596_v48, %v3842_v1  ;;  %v3219_v41 = vadd.f32 %v6892_v12, %v6862_v15 }
 0x24b   : > { %v3702_v26 = vpop.f32.mrf.mxu1  ;;  %v4598_v30 = vpop.eup %4597 }
 0x24c   : > { %v3846_v21 = vadd.f32 %v7206_v51, %v3807_v23  ;;  %v3805_v40 = vadd.f32 %v3702_v26, %v3539_v49  ;;  %4099 = vst.msk [vmem:[%s7239_s20 + $0x30] sm:$0xff] %vm4092_vm6, %v4066_v24  ;;  %v4064_v42 = vmul.f32 %v4598_v30, %v3840_v53  ;;  %v3227_v49 = vadd.f32 %v6860_v8, %v7736_v32  ;;  %v7737_v30 = vld [vmem:[#allocation10_spill] sm:$0xff]  ;;  %v7739_v32 = vld [vmem:[#allocation11_spill] sm:$0xff] }
 0x24d   : > { %v4505_v0 = vpop.f32.mrf.mxu1  ;;  %v4600_v36 = vpop.eup %4599 }
 0x24e   : > { %v4293_v14 = vmul.f32 -1.442695, %v3846_v21  ;;  %v3844_v4 = vadd.f32 %v7206_v51, %v3805_v40  ;;  %v3808_v38 = vadd.f32 %v4505_v0, %v3542_v58  ;;  %4097 = vst.msk [vmem:[%s7239_s20 + $0x20] sm:$0xff] %vm4092_vm6, %v4064_v42  ;;  %v4067_v1 = vmul.f32 %v4600_v36, %v7229_v3  ;;  %v7738_v40 = vld [vmem:[#allocation18_spill] sm:$0xff] }
 0x24f   : > { %v3705_v6 = vpop.f32.mrf.mxu1  ;;  %v4602_v62 = vpop.eup %4601  ;;  %v3222_v8 = vadd.f32 %v7738_v40, %v7737_v30 }
 0x250   : > { %4603 = vpow2.f32 %v4293_v14  ;;  %v4291_v11 = vmul.f32 -1.442695, %v3844_v4  ;;  %v3847_v34 = vadd.f32 %v7206_v51, %v3808_v38  ;;  %v3806_v33 = vadd.f32 %v3705_v6, %v3540_v54  ;;  %4100 = vst.msk [vmem:[%s7239_s20 + $0x38] sm:$0xff] %vm4092_vm6, %v4067_v1 }
 0x251   : > { %v4065_v53 = vmul.f32 %v4602_v62, %v7234_v2 }
 0x252   : > { %4605 = vpow2.f32 %v4291_v11  ;;  %v4294_v46 = vmul.f32 -1.442695, %v3847_v34  ;;  %v3845_v29 = vadd.f32 %v7206_v51, %v3806_v33 }
 0x253   : > { %4098 = vst.msk [vmem:[%s7239_s20 + $0x28] sm:$0xff] %vm4092_vm6, %v4065_v53 }
 0x254   : > { %4607 = vpow2.f32 %v4294_v46  ;;  %v4292_v59 = vmul.f32 -1.442695, %v3845_v29 }
 0x256   : > { %4609 = vpow2.f32 %v4292_v59 }
 0x259   : > { %v4474_v31 = vpop.f32.mrf.mxu0 }
 0x25a   : > { %v3545_v37 = vadd.f32 %v4474_v31, %v3227_v49  ;;  %v3243_v49 = vadd.f32 %v6954_v27, %v7739_v32 }
 0x25b   : > { %v3452_v43 = vpop.f32.mrf.mxu0 }
 0x25c   : > { %v3543_v56 = vadd.f32 %v3452_v43, %v3219_v41 }
 0x25d   : > { %v4604_v3 = vpop.eup %4603  ;;  %v4475_v48 = vpop.f32.mrf.mxu0 }
 0x25e   : > { %v3974_v10 = vadd.f32 1.0, %v4604_v3  ;;  %v3546_v58 = vadd.f32 %v4475_v48, %v3230_v18  ;;  %v7740_v18 = vld [vmem:[#allocation17_spill] sm:$0xff] }
 0x25f   : > { %v4606_v52 = vpop.eup %4605  ;;  %v3455_v24 = vpop.f32.mrf.mxu0 }
 0x260   : > { %4611 = vrcp.f32 %v3974_v10  ;;  %v3972_v7 = vadd.f32 1.0, %v4606_v52  ;;  %v3544_v14 = vadd.f32 %v3455_v24, %v3222_v8 }
 0x261   : > { %v4608_v45 = vpop.eup %4607 }
 0x262   : > { %4613 = vrcp.f32 %v3972_v7  ;;  %v3975_v25 = vadd.f32 1.0, %v4608_v45 }
 0x263   : > { %v4610_v17 = vpop.eup %4609 }
 0x264   : > { %4615 = vrcp.f32 %v3975_v25  ;;  %v3973_v2 = vadd.f32 1.0, %v4610_v17 }
 0x266   : > { %4617 = vrcp.f32 %v3973_v2 }
 0x26c   : > { %v4508_v57 = vpop.f32.mrf.mxu1 }
 0x26d   : > { %v3811_v23 = vadd.f32 %v4508_v57, %v3545_v37  ;;  %v4612_v26 = vpop.eup %4611  ;;  %v3235_v37 = vadd.f32 %v6978_v47, %v6956_v16 }
 0x26e   : > { %v3718_v54 = vpop.f32.mrf.mxu1  ;;  %v4070_v42 = vmul.f32 %v4612_v26, %v3846_v21  ;;  %v7741_v26 = vld [vmem:[#allocation24_spill] sm:$0xff] }
 0x26f   : > { %v3850_v15 = vadd.f32 %v7206_v51, %v3811_v23  ;;  %v3809_v12 = vadd.f32 %v3718_v54, %v3543_v56  ;;  %v4614_v0 = vpop.eup %4613  ;;  %v3246_v56 = vadd.f32 %v7740_v18, %v6980_v61  ;;  %v3238_v30 = vadd.f32 %v6999_v50, %v7741_v26 }
 0x270   : > { %v4509_v36 = vpop.f32.mrf.mxu1  ;;  %4103 = vst.msk [vmem:[%s7239_s20 + $0x50] sm:$0xff] %vm4092_vm6, %v4070_v42  ;;  %v4068_v13 = vmul.f32 %v4614_v0, %v3844_v4 }
 0x271   : > { %v4297_v5 = vmul.f32 -1.442695, %v3850_v15  ;;  %v3848_v38 = vadd.f32 %v7206_v51, %v3809_v12  ;;  %v3812_v1 = vadd.f32 %v4509_v36, %v3546_v58  ;;  %v4616_v6 = vpop.eup %4615 }
 0x272   : > { %4101 = vst.msk [vmem:[%s7239_s20 + $0x40] sm:$0xff] %vm4092_vm6, %v4068_v13  ;;  %v4071_v62 = vmul.f32 %v4616_v6, %v3847_v34  ;;  %v3721_v11 = vpop.f32.mrf.mxu1 }
 0x273   : > { %4619 = vpow2.f32 %v4297_v5  ;;  %v4295_v21 = vmul.f32 -1.442695, %v3848_v38  ;;  %v3851_v33 = vadd.f32 %v7206_v51, %v3812_v1  ;;  %v4618_v53 = vpop.eup %4617  ;;  %v3810_v46 = vadd.f32 %v3721_v11, %v3544_v14 }
 0x274   : > { %4104 = vst.msk [vmem:[%s7239_s20 + $0x58] sm:$0xff] %vm4092_vm6, %v4071_v62  ;;  %v4069_v59 = vmul.f32 %v4618_v53, %v3845_v29 }
 0x275   : > { %4621 = vpow2.f32 %v4295_v21  ;;  %v4298_v4 = vmul.f32 -1.442695, %v3851_v33  ;;  %v3849_v3 = vadd.f32 %v7206_v51, %v3810_v46 }
 0x276   : > { %4102 = vst.msk [vmem:[%s7239_s20 + $0x48] sm:$0xff] %vm4092_vm6, %v4069_v59 }
 0x277   : > { %4623 = vpow2.f32 %v4298_v4  ;;  %v4296_v10 = vmul.f32 -1.442695, %v3849_v3  ;;  %v7742_v4 = vld [vmem:[#allocation25_spill] sm:$0xff] }
 0x279   : > { %4625 = vpow2.f32 %v4296_v10  ;;  %v7743_v10 = vld [vmem:[#allocation9_spill] sm:$0xff] }
 0x27d   : > { %v4478_v25 = vpop.f32.mrf.mxu0 }
 0x27e   : > { %v3549_v48 = vadd.f32 %v4478_v25, %v3243_v49 }
 0x27f   : > { %v3468_v43 = vpop.f32.mrf.mxu0 }
 0x280   : > { %v4620_v34 = vpop.eup %4619  ;;  %v3547_v57 = vadd.f32 %v3468_v43, %v3235_v37  ;;  %v3254_v43 = vadd.f32 %v7083_v44, %v7055_v20 }
 0x281   : > { %v3978_v52 = vadd.f32 1.0, %v4620_v34  ;;  %v4479_v41 = vpop.f32.mrf.mxu0  ;;  %v3259_v34 = vadd.f32 %v7743_v10, %v7742_v4  ;;  %v7746_v4 = vld [vmem:[#allocation13_spill] sm:$0xff] }
 0x282   : > { %v4622_v7 = vpop.eup %4621  ;;  %v3550_v54 = vadd.f32 %v4479_v41, %v3246_v56  ;;  %v3267_v10 = vadd.f32 %v7110_v9, %v7746_v4  ;;  %v7750_v9 = vld [vmem:[#allocation30_spill] sm:$0xff] }
 0x283   : > { %4627 = vrcp.f32 %v3978_v52  ;;  %v3976_v31 = vadd.f32 1.0, %v4622_v7  ;;  %v3471_v24 = vpop.f32.mrf.mxu0  ;;  %v7744_v7 = vld [vmem:[#allocation26_spill] sm:$0xff] }
 0x284   : > { %v4624_v45 = vpop.eup %4623  ;;  %v3548_v12 = vadd.f32 %v3471_v24, %v3238_v30 }
 0x285   : > { %4629 = vrcp.f32 %v3976_v31  ;;  %v3979_v17 = vadd.f32 1.0, %v4624_v45  ;;  %v3262_v45 = vadd.f32 %v7053_v39, %v7030_v28 }
 0x286   : > { %v4626_v2 = vpop.eup %4625  ;;  %v4482_v21 = vpop.f32.mrf.mxu0 }
 0x287   : > { %4631 = vrcp.f32 %v3979_v17  ;;  %v3977_v29 = vadd.f32 1.0, %v4626_v2  ;;  %v3553_v31 = vadd.f32 %v4482_v21, %v3259_v34 }
 0x288   : > { %v3484_v59 = vpop.f32.mrf.mxu0 }
 0x289   : > { %4633 = vrcp.f32 %v3977_v29 }
 0x28a   : > { %v4483_v52 = vpop.f32.mrf.mxu0 }
 0x28b   : > { %v3554_v49 = vadd.f32 %v4483_v52, %v3262_v45 }
 0x28c   : > { %v3487_v2 = vpop.f32.mrf.mxu0 }
 0x28d   : > { %v3552_v56 = vadd.f32 %v3487_v2, %v3254_v43  ;;  %v7749_v2 = vld [vmem:[#allocation29_spill] sm:$0xff] }
 0x290   : > { %v4628_v23 = vpop.eup %4627 }
 0x291   : > { %v4074_v40 = vmul.f32 %v4628_v23, %v3850_v15 }
 0x292   : > { %v4630_v27 = vpop.eup %4629 }
 0x293   : > { %v4512_v58 = vpop.f32.mrf.mxu1  ;;  %4107 = vst.msk [vmem:[%s7239_s20 + $0x70] sm:$0xff] %vm4092_vm6, %v4074_v40  ;;  %v4072_v16 = vmul.f32 %v4630_v27, %v3848_v38 }
 0x294   : > { %v3815_v8 = vadd.f32 %v4512_v58, %v3549_v48  ;;  %v4632_v0 = vpop.eup %4631 }
 0x295   : > { %v3734_v42 = vpop.f32.mrf.mxu1  ;;  %4105 = vst.msk [vmem:[%s7239_s20 + $0x60] sm:$0xff] %vm4092_vm6, %v4072_v16  ;;  %v4075_v14 = vmul.f32 %v4632_v0, %v3851_v33 }
 0x296   : > { %v7304_v47 = vadd.f32 %v7206_v51, %v3815_v8  ;;  %v3813_v61 = vadd.f32 %v3734_v42, %v3547_v57  ;;  %v4634_v1 = vpop.eup %4633 }
 0x297   : > { %v4513_v36 = vpop.f32.mrf.mxu1  ;;  %4108 = vst.msk [vmem:[%s7239_s20 + $0x78] sm:$0xff] %vm4092_vm6, %v4075_v14  ;;  %v4073_v11 = vmul.f32 %v4634_v1, %v3849_v3  ;;  %v3251_v3 = vadd.f32 %v7028_v55, %v7744_v7  ;;  %v7747_v7 = vld [vmem:[#allocation27_spill] sm:$0xff] }
 0x298   : > { %v4301_v50 = vmul.f32 -1.442695, %v7304_v47  ;;  %v7310_v15 = vadd.f32 %v7206_v51, %v3813_v61  ;;  %v3816_v13 = vadd.f32 %v4513_v36, %v3550_v54 }
 0x299   : > { %v3737_v5 = vpop.f32.mrf.mxu1  ;;  %4106 = vst.msk [vmem:[%s7239_s20 + $0x68] sm:$0xff] %vm4092_vm6, %v4073_v11  ;;  %v3551_v25 = vadd.f32 %v3484_v59, %v3251_v3  ;;  %v7748_v3 = vld [vmem:[#allocation28_spill] sm:$0xff] }
 0x29a   : > { %4635 = vpow2.f32 %v4301_v50  ;;  %v4299_v38 = vmul.f32 -1.442695, %v7310_v15  ;;  %v7316_v6 = vadd.f32 %v7206_v51, %v3816_v13  ;;  %v3814_v62 = vadd.f32 %v3737_v5, %v3548_v12 }
 0x29c   : > { %4637 = vpow2.f32 %v4299_v38  ;;  %v4302_v33 = vmul.f32 -1.442695, %v7316_v6  ;;  %v7320_v53 = vadd.f32 %v7206_v51, %v3814_v62  ;;  %v7745_v62 = vld [vmem:[#allocation14_spill] sm:$0xff] }
 0x29d   : > { %v3275_v21 = vadd.f32 %v7745_v62, %v7085_v19 }
 0x29e   : > { %4639 = vpow2.f32 %v4302_v33  ;;  %v4300_v46 = vmul.f32 -1.442695, %v7320_v53 }
 0x2a0   : > { %4641 = vpow2.f32 %v4300_v46 }
 0x2a7   : > { %v4636_v29 = vpop.eup %4635 }
 0x2a8   : > { %v4516_v17 = vpop.f32.mrf.mxu1  ;;  %v3982_v41 = vadd.f32 1.0, %v4636_v29  ;;  %v3270_v29 = vadd.f32 %v7750_v9, %v7749_v2 }
 0x2a9   : > { %v3819_v32 = vadd.f32 %v4516_v17, %v3553_v31  ;;  %v4638_v48 = vpop.eup %4637  ;;  %v3278_v31 = vadd.f32 %v7748_v3, %v7747_v7 }
 0x2aa   : > { %v3750_v37 = vpop.f32.mrf.mxu1  ;;  %4643 = vrcp.f32 %v3982_v41  ;;  %v3980_v57 = vadd.f32 1.0, %v4638_v48 }
 0x2ab   : > { %v7334_v18 = vadd.f32 %v7206_v51, %v3819_v32  ;;  %v3817_v55 = vadd.f32 %v3750_v37, %v3551_v25  ;;  %v4640_v39 = vpop.eup %4639  ;;  %v4486_v61 = vpop.f32.mrf.mxu0 }
 0x2ac   : > { %v4517_v28 = vpop.f32.mrf.mxu1  ;;  %4645 = vrcp.f32 %v3980_v57  ;;  %v3983_v44 = vadd.f32 1.0, %v4640_v39  ;;  %v3557_v34 = vadd.f32 %v4486_v61, %v3275_v21 }
 0x2ad   : > { %v4305_v23 = vmul.f32 -1.442695, %v7334_v18  ;;  %v7338_v58 = vadd.f32 %v7206_v51, %v3817_v55  ;;  %v3820_v20 = vadd.f32 %v4517_v28, %v3554_v49  ;;  %v4642_v26 = vpop.eup %4641  ;;  %v3500_v14 = vpop.f32.mrf.mxu0 }
 0x2ae   : > { %v3753_v24 = vpop.f32.mrf.mxu1  ;;  %v3981_v54 = vadd.f32 1.0, %v4642_v26 }
 0x2af   : > { %4647 = vpow2.f32 %v4305_v23  ;;  %v4303_v30 = vmul.f32 -1.442695, %v7338_v58  ;;  %v7342_v40 = vadd.f32 %v7206_v51, %v3820_v20  ;;  %v3818_v8 = vadd.f32 %v3753_v24, %v3552_v56  ;;  %v4487_v46 = vpop.f32.mrf.mxu0 }
 0x2b0   : > { %4649 = vrcp.f32 %v3983_v44  ;;  %v3558_v32 = vadd.f32 %v4487_v46, %v3278_v31 }
 0x2b1   : > { %4651 = vpow2.f32 %v4303_v30  ;;  %v4306_v27 = vmul.f32 -1.442695, %v7342_v40  ;;  %v7346_v42 = vadd.f32 %v7206_v51, %v3818_v8  ;;  %v3503_v17 = vpop.f32.mrf.mxu0 }
 0x2b2   : > { %4653 = vrcp.f32 %v3981_v54  ;;  %v3556_v37 = vadd.f32 %v3503_v17, %v3270_v29  ;;  %v7751_v54 = vld [vmem:[#allocation31_spill] sm:$0xff] }
 0x2b3   : > { %4655 = vpow2.f32 %v4306_v27  ;;  %v4304_v16 = vmul.f32 -1.442695, %v7346_v42  ;;  %v7752_v27 = vld [vmem:[#allocation32_spill] sm:$0xff] }
 0x2b5   : > { %4657 = vpow2.f32 %v4304_v16  ;;  %v3291_v16 = vadd.f32 %v7752_v27, %v7751_v54 }
 0x2b7   : > { %v4644_v12 = vpop.eup %4643 }
 0x2b8   : > { %v4078_v0 = vmul.f32 %v4644_v12, %v7304_v47 }
 0x2b9   : > { %v4646_v36 = vpop.eup %4645 }
 0x2ba   : > { %4111 = vst.msk [vmem:[%s7239_s20 + $0x90] sm:$0xff] %vm4092_vm6, %v4078_v0  ;;  %v4076_v13 = vmul.f32 %v4646_v36, %v7310_v15 }
 0x2bc   : > { %v4648_v50 = vpop.eup %4647  ;;  %4109 = vst.msk [vmem:[%s7239_s20 + $0x80] sm:$0xff] %vm4092_vm6, %v4076_v13 }
 0x2bd   : > { %v4650_v5 = vpop.eup %4649  ;;  %v3986_v1 = vadd.f32 1.0, %v4648_v50 }
 0x2be   : > { %v4652_v38 = vpop.eup %4651  ;;  %v4079_v11 = vmul.f32 %v4650_v5, %v7316_v6  ;;  %v3555_v6 = vadd.f32 %v3500_v14, %v3267_v10  ;;  %v7753_v14 = vld [vmem:[#allocation33_spill] sm:$0xff] }
 0x2bf   : > { %v4654_v47 = vpop.eup %4653  ;;  %4659 = vrcp.f32 %v3986_v1  ;;  %v3984_v33 = vadd.f32 1.0, %v4652_v38  ;;  %v3283_v50 = vadd.f32 %v7158_v60, %v7753_v14  ;;  %v3294_v38 = vadd.f32 %v7171_v22, %v7160_v35 }
 0x2c0   : > { %v4656_v59 = vpop.eup %4655  ;;  %4112 = vst.msk [vmem:[%s7239_s20 + $0x98] sm:$0xff] %vm4092_vm6, %v4079_v11  ;;  %v4077_v15 = vmul.f32 %v4654_v47, %v7320_v53 }
 0x2c1   : > { %4661 = vrcp.f32 %v3984_v33  ;;  %v3987_v19 = vadd.f32 1.0, %v4656_v59 }
 0x2c2   : > { %v4658_v52 = vpop.eup %4657  ;;  %4110 = vst.msk [vmem:[%s7239_s20 + $0x88] sm:$0xff] %vm4092_vm6, %v4077_v15 }
 0x2c3   : > { %4663 = vrcp.f32 %v3987_v19  ;;  %v3985_v25 = vadd.f32 1.0, %v4658_v52 }
 0x2c4   : > { %v4520_v45 = vpop.f32.mrf.mxu1 }
 0x2c5   : > { %v3823_v43 = vadd.f32 %v4520_v45, %v3557_v34  ;;  %4665 = vrcp.f32 %v3985_v25 }
 0x2c6   : > { %v3766_v53 = vpop.f32.mrf.mxu1 }
 0x2c7   : > { %v7370_v49 = vadd.f32 %v7206_v51, %v3823_v43  ;;  %v3821_v41 = vadd.f32 %v3766_v53, %v3555_v6 }
 0x2c8   : > { %v4521_v48 = vpop.f32.mrf.mxu1 }
 0x2c9   : > { %v4309_v55 = vmul.f32 -1.442695, %v7370_v49  ;;  %v7374_v56 = vadd.f32 %v7206_v51, %v3821_v41  ;;  %v3824_v57 = vadd.f32 %v4521_v48, %v3558_v32 }
 0x2ca   : > { %v3769_v28 = vpop.f32.mrf.mxu1 }
 0x2cb   : > { %4667 = vpow2.f32 %v4309_v55  ;;  %v4307_v39 = vmul.f32 -1.442695, %v7374_v56  ;;  %v7378_v23 = vadd.f32 %v7206_v51, %v3824_v57  ;;  %v3822_v20 = vadd.f32 %v3769_v28, %v3556_v37 }
 0x2cc   : > { %v4660_v44 = vpop.eup %4659 }
 0x2cd   : > { %4669 = vpow2.f32 %v4307_v39  ;;  %v4310_v24 = vmul.f32 -1.442695, %v7378_v23  ;;  %v7382_v26 = vadd.f32 %v7206_v51, %v3822_v20  ;;  %v4082_v30 = vmul.f32 %v4660_v44, %v7334_v18 }
 0x2ce   : > { %v4662_v8 = vpop.eup %4661 }
 0x2cf   : > { %4671 = vpow2.f32 %v4310_v24  ;;  %v4308_v61 = vmul.f32 -1.442695, %v7382_v26  ;;  %4115 = vst.msk [vmem:[%s7239_s20 + $0xb0] sm:$0xff] %vm4092_vm6, %v4082_v30  ;;  %v4080_v0 = vmul.f32 %v4662_v8, %v7338_v58 }
 0x2d0   : > { %v4490_v12 = vpop.f32.mrf.mxu0  ;;  %v4664_v36 = vpop.eup %4663 }
 0x2d1   : > { %4673 = vpow2.f32 %v4308_v61  ;;  %v3561_v18 = vadd.f32 %v4490_v12, %v3291_v16  ;;  %4113 = vst.msk [vmem:[%s7239_s20 + $0xa0] sm:$0xff] %vm4092_vm6, %v4080_v0  ;;  %v4083_v5 = vmul.f32 %v4664_v36, %v7342_v40 }
 0x2d2   : > { %v3516_v13 = vpop.f32.mrf.mxu0  ;;  %v4666_v1 = vpop.eup %4665 }
 0x2d3   : > { %v3559_v62 = vadd.f32 %v3516_v13, %v3283_v50  ;;  %4116 = vst.msk [vmem:[%s7239_s20 + $0xb8] sm:$0xff] %vm4092_vm6, %v4083_v5  ;;  %v4081_v58 = vmul.f32 %v4666_v1, %v7346_v42 }
 0x2d4   : > { %v4491_v21 = vpop.f32.mrf.mxu0 }
 0x2d5   : > { %v4524_v11 = vpop.f32.mrf.mxu1  ;;  %v3562_v47 = vadd.f32 %v4491_v21, %v3294_v38  ;;  %4114 = vst.msk [vmem:[%s7239_s20 + $0xa8] sm:$0xff] %vm4092_vm6, %v4081_v58 }
 0x2d6   : > { %v3827_v60 = vadd.f32 %v4524_v11, %v3561_v18  ;;  %v3519_v33 = vpop.f32.mrf.mxu0 }
 0x2d7   : > { %v3782_v46 = vpop.f32.mrf.mxu1  ;;  %v3560_v35 = vadd.f32 %v3519_v33, %v7201_v63 }
 0x2d8   : > { %v3866_v59 = vadd.f32 %v7206_v51, %v3827_v60  ;;  %v3825_v40 = vadd.f32 %v3782_v46, %v3559_v62  ;;  %v4668_v4 = vpop.eup %4667 }
 0x2d9   : > { %v4525_v10 = vpop.f32.mrf.mxu1  ;;  %v3990_v22 = vadd.f32 1.0, %v4668_v4 }
 0x2da   : > { %v4313_v15 = vmul.f32 -1.442695, %v3866_v59  ;;  %v3864_v34 = vadd.f32 %v7206_v51, %v3825_v40  ;;  %v3828_v19 = vadd.f32 %v4525_v10, %v3562_v47  ;;  %v4670_v42 = vpop.eup %4669 }
 0x2db   : > { %4675 = vrcp.f32 %v3990_v22  ;;  %v3988_v52 = vadd.f32 1.0, %v4670_v42  ;;  %v3785_v3 = vpop.f32.mrf.mxu1 }
 0x2dc   : > { %v4311_v7 = vmul.f32 -1.442695, %v3864_v34  ;;  %v3867_v31 = vadd.f32 %v7206_v51, %v3828_v19  ;;  %v4672_v6 = vpop.eup %4671  ;;  %4677 = vpow2.f32 %v4313_v15  ;;  %v3826_v45 = vadd.f32 %v3785_v3, %v3560_v35 }
 0x2dd   : > { %4679 = vrcp.f32 %v3988_v52  ;;  %v3991_v25 = vadd.f32 1.0, %v4672_v6 }
 0x2de   : > { %v4314_v17 = vmul.f32 -1.442695, %v3867_v31  ;;  %v4674_v63 = vpop.eup %4673  ;;  %4681 = vpow2.f32 %v4311_v7  ;;  %v3865_v2 = vadd.f32 %v7206_v51, %v3826_v45 }
 0x2df   : > { %4683 = vrcp.f32 %v3991_v25  ;;  %v3989_v9 = vadd.f32 1.0, %v4674_v63 }
 0x2e0   : > { %4685 = vpow2.f32 %v4314_v17  ;;  %v4312_v29 = vmul.f32 -1.442695, %v3865_v2 }
 0x2e1   : > { %4687 = vrcp.f32 %v3989_v9 }
 0x2e2   : > { %4689 = vpow2.f32 %v4312_v29 }
 0x2e8   : > { %v4676_v43 = vpop.eup %4675 }
 0x2e9   : > { %v4678_v32 = vpop.eup %4677  ;;  %v4086_v53 = vmul.f32 %v4676_v43, %v7370_v49 }
 0x2ea   : > { %v4680_v41 = vpop.eup %4679  ;;  %v3994_v37 = vadd.f32 1.0, %v4678_v32 }
 0x2eb   : > { %v4682_v48 = vpop.eup %4681  ;;  %4119 = vst.msk [vmem:[%s7239_s20 + $0xd0] sm:$0xff] %vm4092_vm6, %v4086_v53  ;;  %v4084_v51 = vmul.f32 %v4680_v41, %v7374_v56 }
 0x2ec   : > { %v4684_v55 = vpop.eup %4683  ;;  %4691 = vrcp.f32 %v3994_v37  ;;  %v3992_v57 = vadd.f32 1.0, %v4682_v48 }
 0x2ed   : > { %v4686_v28 = vpop.eup %4685  ;;  %4117 = vst.msk [vmem:[%s7239_s20 + $0xc0] sm:$0xff] %vm4092_vm6, %v4084_v51  ;;  %v4087_v39 = vmul.f32 %v4684_v55, %v7378_v23 }
 0x2ee   : > { %v4688_v49 = vpop.eup %4687  ;;  %4693 = vrcp.f32 %v3992_v57  ;;  %v3995_v20 = vadd.f32 1.0, %v4686_v28 }
 0x2ef   : > { %v4690_v44 = vpop.eup %4689  ;;  %4120 = vst.msk [vmem:[%s7239_s20 + $0xd8] sm:$0xff] %vm4092_vm6, %v4087_v39  ;;  %v4085_v56 = vmul.f32 %v4688_v49, %v7382_v26 }
 0x2f0   : > { %4695 = vrcp.f32 %v3995_v20  ;;  %v3993_v24 = vadd.f32 1.0, %v4690_v44 }
 0x2f1   : > { %4118 = vst.msk [vmem:[%s7239_s20 + $0xc8] sm:$0xff] %vm4092_vm6, %v4085_v56 }
 0x2f2   : > { %4697 = vrcp.f32 %v3993_v24 }
 0x2f9   : > { %v4692_v30 = vpop.eup %4691 }
 0x2fa   : > { %v4090_v23 = vmul.f32 %v4692_v30, %v3866_v59 }
 0x2fb   : > { %v4694_v8 = vpop.eup %4693 }
 0x2fc   : > { %4123 = vst.msk [vmem:[%s7239_s20 + $0xf0] sm:$0xff] %vm4092_vm6, %v4090_v23  ;;  %v4088_v54 = vmul.f32 %v4694_v8, %v3864_v34 }
 0x2fd   : > { %v4696_v27 = vpop.eup %4695 }
 0x2fe   : > { %4121 = vst.msk [vmem:[%s7239_s20 + $0xe0] sm:$0xff] %vm4092_vm6, %v4088_v54  ;;  %v4091_v26 = vmul.f32 %v4696_v27, %v3867_v31 }
 0x2ff   : > { %v4698_v16 = vpop.eup %4697 }
 0x300   : > { %4124 = vst.msk [vmem:[%s7239_s20 + $0xf8] sm:$0xff] %vm4092_vm6, %v4091_v26  ;;  %v4089_v61 = vmul.f32 %v4698_v16, %v3865_v2 }
 0x302   : > { %4122 = vst.msk [vmem:[%s7239_s20 + $0xe8] sm:$0xff] %vm4092_vm6, %v4089_v61 }
 0x303   : > { %4716 = shalt.err (!%p4713_p3)
}
 0x304   : > { %s4717_s6 = scalar_lea.hbm %s7429_s28, 4096  ;;  %s4721_s9 = scalar_lea.hbm %s7482_s3, 8192 }
 0x305   : > { %p4718_p4 = scmp.ne.s32.totalorder %s7429_s28, %s4717_s6  ;;  %p4722_p9 = scmp.lt.s32.totalorder %s7429_s28, %s7482_s3 }
 0x306   : > { %p4723_p10 = scmp.lt.s32.totalorder %s4721_s9, %s4717_s6 }
 0x307   : > { %p4719_p7 = pnand %p4718_p4, %p4826_p5 }
 0x308   : > { %p4724_p11 = por %p4723_p10, %p4722_p9 }
 0x309   : > { %p4720_p8 = pneg %p4719_p7 }
 0x30b   : > { %p4725_p12 = pnand %p4724_p11, %p4720_p8 }
 0x30d   : > { %4728 = shalt.err (!%p4725_p12)
}
 0x30e   : > { %s4766_s17 = smov 128   ;;  %s4767_s19 = smov 8  }
 0x30f   : > { %4526 = dma.vmem_to_hbm [thread:$0]  (%p4826_p5), %s7431_s25, 4096, %s7429_s28, %s7439_s16, %s4766_s17, %s4766_s17, %s4767_s19  }
 0x310 PF: > { %p4532_p13 = scmp.ge.s32.totalorder %s4763_s15, 2  ;;  %s4154_s20 = sand.u32 1, %s4751_s12  }
 0x311   : > { %s4155_s24 = scalar_lea.sflag [#allocation3], %s4154_s20 }
 0x312   : > { %p4529_p0 = pnand %p4532_p13, %p4830_p6 }
 0x314   : > { %p4530_p1 = pneg %p4529_p0 }
 0x316   : > { %4746 = dma.done.wait (%p4530_p1), %s4155_s24, 4096  }
 0x317   : > { %4748 = vsyncadd (%p4530_p1), %s4155_s24, 4294963200  ;;  %p13_p2 = scmp.ge.s32.totalorder %s4813_s18, 4   ;;  %s7754_s12 = smov %s4755_s13 }
 0x318   : > { %s7755_s13 = smov %s4759_s14  ;;  %s7756_s14 = smov %s4824_s21 }
 0x319   : > { %s7757_s15 = smov %s4813_s18  ;;  %15 = sbr.rel (!%p13_p2) target bundleno = 3 (0x3), region = 70 }
 0x31e   :  { %4160 = vsyncpa [#allocation3], 1 }
 0x31f   :  { %4162 = vsyncpa [#allocation3 + $0x1], 1 }

</bundles_post_ra>
